<compile_context>
chip_gen: v6e
topology: v6e:2x2x1
jax: 0.10.0
libtpu: 0.0.40
codegen_flags: <defaults>
</compile_context>

<pallas_src>
import functools
import math

import jax
import jax.numpy as jnp
from jax.experimental import pallas as pl
from jax.experimental.pallas import tpu as pltpu

# ----------------------------- model config --------------------------------
N_VOCAB = 16
SEQ_LEN = 8
D_MODEL = 128           # PyTorch default d_model
NHEAD = 4
NUM_LAYERS = 2
DIM_FF = 512            # PyTorch default dim_feedforward
BATCH = 2
LN_EPS = 1e-5
HEAD_DIM = D_MODEL // NHEAD


# ------------------------------ kernel ---------------------------------------
def _layer_norm(x, w, b):
    mu = jnp.mean(x, axis=-1, keepdims=True)
    var = jnp.mean((x - mu) ** 2, axis=-1, keepdims=True)
    return (x - mu) * jax.lax.rsqrt(var + LN_EPS) * w + b


def fused_forward_kernel(batch, seq,
                         tok_ref, emb_ref, pe_ref,
                         wq_ref, wk_ref, wv_ref,
                         bq_ref, bk_ref, bv_ref,
                         wo_ref, bo_ref,
                         ln1w_ref, ln1b_ref,
                         w1_ref, b1_ref, w2_ref, b2_ref,
                         ln2w_ref, ln2b_ref,
                         fcw_ref, fcb_ref,
                         o_ref):
    """Whole TransformerModel forward for one (B, S) batch of token ids."""
    num_layers, d_model, _ = w1_ref.shape
    nhead = wq_ref.shape[0] // num_layers
    hd = wq_ref.shape[-1]
    n_vocab = emb_ref.shape[0]
    bs = batch * seq
    scale = 1.0 / math.sqrt(hd)

    # --- embedding: one-hot (BS, V) @ (V, D) on the MXU, + positional enc ---
    tok = tok_ref[...]                                           # (BS, 1) int32
    onehot = (tok == jax.lax.broadcasted_iota(jnp.int32, (bs, n_vocab), 1)
              ).astype(jnp.float32)                              # (BS, V)
    x = jnp.dot(onehot, emb_ref[...], preferred_element_type=jnp.float32)
    x = x + pe_ref[...]                                          # pe pre-tiled to (BS, D)

    # --- encoder layers (post-norm, ReLU FFN, eval mode), statically unrolled
    for li in range(num_layers):
        # Multi-head self attention.  Heads use pre-split weights so no
        # lane-axis slicing of activations and no concatenate is needed;
        # the output projection is accumulated per head.
        attn = bo_ref[li]                                        # (1, D)
        for h in range(nhead):
            lh = li * nhead + h
            q = jnp.dot(x, wq_ref[lh],
                        preferred_element_type=jnp.float32) + bq_ref[lh]
            k = jnp.dot(x, wk_ref[lh],
                        preferred_element_type=jnp.float32) + bk_ref[lh]
            v = jnp.dot(x, wv_ref[lh],
                        preferred_element_type=jnp.float32) + bv_ref[lh]
            q3 = q.reshape(batch, seq, hd) * scale
            k3 = k.reshape(batch, seq, hd)
            v3 = v.reshape(batch, seq, hd)
            s = jnp.einsum('bqd,bkd->bqk', q3, k3,
                           preferred_element_type=jnp.float32)
            s = s - jnp.max(s, axis=-1, keepdims=True)
            p = jnp.exp(s)
            p = p * pl.reciprocal(jnp.sum(p, axis=-1, keepdims=True),
                                  approx=True)
            ctx = jnp.einsum('bqk,bkd->bqd', p, v3,
                             preferred_element_type=jnp.float32)
            attn = attn + jnp.dot(ctx.reshape(bs, hd), wo_ref[lh],
                                  preferred_element_type=jnp.float32)

        # add & norm 1 (post-norm)
        x = _layer_norm(x + attn, ln1w_ref[li], ln1b_ref[li])

        # feed-forward: Linear -> ReLU -> Linear
        h1 = jnp.dot(x, w1_ref[li],
                     preferred_element_type=jnp.float32) + b1_ref[li]
        h1 = jnp.maximum(h1, 0.0)
        ff = jnp.dot(h1, w2_ref[li],
                     preferred_element_type=jnp.float32) + b2_ref[li]

        # add & norm 2
        x = _layer_norm(x + ff, ln2w_ref[li], ln2b_ref[li])

    # --- classifier on the last token of each sequence: fc(x[:, -1, :]) ---
    last = x.reshape(batch, seq, d_model)[:, seq - 1, :]         # (B, D)
    o_ref[...] = jnp.dot(last, fcw_ref[...],
                         preferred_element_type=jnp.float32) + fcb_ref[...]


# ------------------------------ wrapper ---------------------------------------
_VMEM = pl.BlockSpec(memory_space=pltpu.MemorySpace.VMEM)


def forward(tokens, params, pe_tiled):
    """tokens: (B, S, 1) int32 -> logits (B, N_VOCAB). One fused pallas_call."""
    B, S, _ = tokens.shape
    tok = tokens.reshape(B * S, 1).astype(jnp.int32)
    args = (tok, params['emb'], pe_tiled,
            params['wq'], params['wk'], params['wv'],
            params['bq'], params['bk'], params['bv'],
            params['wo'], params['bo'],
            params['ln1w'], params['ln1b'],
            params['w1'], params['b1'], params['w2'], params['b2'],
            params['ln2w'], params['ln2b'],
            params['fc_w'], params['fc_b'])
    return pl.pallas_call(
        functools.partial(fused_forward_kernel, B, S),
        out_shape=jax.ShapeDtypeStruct((B, N_VOCAB), jnp.float32),
        in_specs=[_VMEM] * len(args),
        out_specs=_VMEM,
    )(*args)


# -------------------------- parameters / glue --------------------------------
def make_positional_encoding(seq_len, d_model):
    pos = jnp.arange(seq_len, dtype=jnp.float32)[:, None]
    div = jnp.exp(jnp.arange(0, d_model, 2, dtype=jnp.float32)
                  * (-math.log(10000.0) / d_model))
    pe = jnp.zeros((seq_len, d_model), jnp.float32)
    pe = pe.at[:, 0::2].set(jnp.sin(pos * div))
    pe = pe.at[:, 1::2].set(jnp.cos(pos * div))
    return pe                                                    # (S, D)


def init_params(key):
    def normal(k, shape, scale=0.02):
        return scale * jax.random.normal(k, shape, jnp.float32)

    LH = NUM_LAYERS * NHEAD
    keys = jax.random.split(key, 8)
    params = {
        'emb':  normal(keys[0], (N_VOCAB, D_MODEL), 1.0),
        # classifier: weight pre-transposed to (D, V), bias as (1, V)
        'fc_w': normal(keys[1], (D_MODEL, N_VOCAB)),
        'fc_b': jnp.zeros((1, N_VOCAB), jnp.float32),
        # attention projections, pre-split per (layer, head) and pre-transposed
        # to (in, out); stacked along a single leading (L*H) axis.
        'wq':   normal(keys[2], (LH, D_MODEL, HEAD_DIM)),
        'wk':   normal(keys[3], (LH, D_MODEL, HEAD_DIM)),
        'wv':   normal(keys[4], (LH, D_MODEL, HEAD_DIM)),
        'bq':   jnp.zeros((LH, 1, HEAD_DIM), jnp.float32),
        'bk':   jnp.zeros((LH, 1, HEAD_DIM), jnp.float32),
        'bv':   jnp.zeros((LH, 1, HEAD_DIM), jnp.float32),
        'wo':   normal(keys[5], (LH, HEAD_DIM, D_MODEL)),
        'bo':   jnp.zeros((NUM_LAYERS, 1, D_MODEL), jnp.float32),
        # per-layer LayerNorm / FFN params stacked along a leading L axis
        'ln1w': jnp.ones((NUM_LAYERS, 1, D_MODEL), jnp.float32),
        'ln1b': jnp.zeros((NUM_LAYERS, 1, D_MODEL), jnp.float32),
        'w1':   normal(keys[6], (NUM_LAYERS, D_MODEL, DIM_FF)),
        'b1':   jnp.zeros((NUM_LAYERS, 1, DIM_FF), jnp.float32),
        'w2':   normal(keys[7], (NUM_LAYERS, DIM_FF, D_MODEL)),
        'b2':   jnp.zeros((NUM_LAYERS, 1, D_MODEL), jnp.float32),
        'ln2w': jnp.ones((NUM_LAYERS, 1, D_MODEL), jnp.float32),
        'ln2b': jnp.zeros((NUM_LAYERS, 1, D_MODEL), jnp.float32),
    }
    return params


# ------------------------------- main ----------------------------------------
if __name__ == "__main__":
    key = jax.random.PRNGKey(0)
    pkey, xkey = jax.random.split(key)

    params = init_params(pkey)
    pe = make_positional_encoding(SEQ_LEN, D_MODEL)
    pe_tiled = jnp.tile(pe, (BATCH, 1))                          # (B*S, D)

    tokens = jax.random.randint(xkey, (BATCH, SEQ_LEN, 1), 0, N_VOCAB,
                                dtype=jnp.int32)

    logits = jax.jit(lambda t: forward(t, params, pe_tiled))(tokens)
    jax.block_until_ready(logits)
    assert logits.shape == (BATCH, N_VOCAB)
    print("KERNEL_OK")
</pallas_src>

<mosaic_0001>
module attributes {stable_mosaic.version = 11 : i64} {
  func.func @fused_forward_kernel(%arg0: memref<16x1xi32, #tpu.memory_space<vmem>>, %arg1: memref<16x128xf32, #tpu.memory_space<vmem>>, %arg2: memref<16x128xf32, #tpu.memory_space<vmem>>, %arg3: memref<8x128x32xf32, #tpu.memory_space<vmem>>, %arg4: memref<8x128x32xf32, #tpu.memory_space<vmem>>, %arg5: memref<8x128x32xf32, #tpu.memory_space<vmem>>, %arg6: memref<8x1x32xf32, #tpu.memory_space<vmem>>, %arg7: memref<8x1x32xf32, #tpu.memory_space<vmem>>, %arg8: memref<8x1x32xf32, #tpu.memory_space<vmem>>, %arg9: memref<8x32x128xf32, #tpu.memory_space<vmem>>, %arg10: memref<2x1x128xf32, #tpu.memory_space<vmem>>, %arg11: memref<2x1x128xf32, #tpu.memory_space<vmem>>, %arg12: memref<2x1x128xf32, #tpu.memory_space<vmem>>, %arg13: memref<2x128x512xf32, #tpu.memory_space<vmem>>, %arg14: memref<2x1x512xf32, #tpu.memory_space<vmem>>, %arg15: memref<2x512x128xf32, #tpu.memory_space<vmem>>, %arg16: memref<2x1x128xf32, #tpu.memory_space<vmem>>, %arg17: memref<2x1x128xf32, #tpu.memory_space<vmem>>, %arg18: memref<2x1x128xf32, #tpu.memory_space<vmem>>, %arg19: memref<128x16xf32, #tpu.memory_space<vmem>>, %arg20: memref<1x16xf32, #tpu.memory_space<vmem>>, %arg21: memref<2x16xf32, #tpu.memory_space<vmem>>) attributes {dimension_semantics = [], scalar_prefetch = 0 : i64, scratch_operands = 0 : i64, tpu.core_type = #tpu.core_type<tc>} {
    %c0 = arith.constant 0 : index
    %c0_0 = arith.constant 0 : index
    %0 = vector.load %arg0[%c0, %c0_0] : memref<16x1xi32, #tpu.memory_space<vmem>>, vector<16x1xi32>
    %1 = tpu.iota {dimensions = array<i32: 1>} : vector<16x16xi32>
    %2 = vector.broadcast %0 : vector<16x1xi32> to vector<16x16xi32>
    %3 = arith.cmpi eq, %2, %1 : vector<16x16xi32>
    %4 = arith.extui %3 : vector<16x16xi1> to vector<16x16xi32>
    %5 = arith.sitofp %4 : vector<16x16xi32> to vector<16x16xf32>
    %c0_1 = arith.constant 0 : index
    %c0_2 = arith.constant 0 : index
    %6 = vector.load %arg1[%c0_1, %c0_2] : memref<16x128xf32, #tpu.memory_space<vmem>>, vector<16x128xf32>
    %cst = arith.constant dense<0.000000e+00> : vector<16x128xf32>
    %7 = tpu.matmul %5, %6, %cst {dimension_numbers = #tpu.dot_dimension_numbers<[1], [0], [0], [1], [0, 0, 1, 1], [], []>} : vector<16x16xf32>, vector<16x128xf32>, vector<16x128xf32> -> vector<16x128xf32>
    %c0_3 = arith.constant 0 : index
    %c0_4 = arith.constant 0 : index
    %8 = vector.load %arg2[%c0_3, %c0_4] : memref<16x128xf32, #tpu.memory_space<vmem>>, vector<16x128xf32>
    %9 = arith.addf %7, %8 : vector<16x128xf32>
    %c0_5 = arith.constant 0 : index
    %c0_6 = arith.constant 0 : index
    %c0_7 = arith.constant 0 : index
    %10 = vector.load %arg10[%c0_5, %c0_6, %c0_7] : memref<2x1x128xf32, #tpu.memory_space<vmem>>, vector<1x1x128xf32>
    %11 = vector.shape_cast %10 : vector<1x1x128xf32> to vector<1x128xf32>
    %c0_8 = arith.constant 0 : index
    %c0_9 = arith.constant 0 : index
    %c0_10 = arith.constant 0 : index
    %12 = vector.load %arg3[%c0_8, %c0_9, %c0_10] : memref<8x128x32xf32, #tpu.memory_space<vmem>>, vector<1x128x32xf32>
    %13 = vector.shape_cast %12 : vector<1x128x32xf32> to vector<128x32xf32>
    %cst_11 = arith.constant dense<0.000000e+00> : vector<16x32xf32>
    %14 = tpu.matmul %9, %13, %cst_11 {dimension_numbers = #tpu.dot_dimension_numbers<[1], [0], [0], [1], [0, 0, 1, 1], [], []>} : vector<16x128xf32>, vector<128x32xf32>, vector<16x32xf32> -> vector<16x32xf32>
    %c0_12 = arith.constant 0 : index
    %c0_13 = arith.constant 0 : index
    %c0_14 = arith.constant 0 : index
    %15 = vector.load %arg6[%c0_12, %c0_13, %c0_14] : memref<8x1x32xf32, #tpu.memory_space<vmem>>, vector<1x1x32xf32>
    %16 = vector.shape_cast %15 : vector<1x1x32xf32> to vector<1x32xf32>
    %17 = vector.broadcast %16 : vector<1x32xf32> to vector<16x32xf32>
    %18 = arith.addf %14, %17 : vector<16x32xf32>
    %c0_15 = arith.constant 0 : index
    %c0_16 = arith.constant 0 : index
    %c0_17 = arith.constant 0 : index
    %19 = vector.load %arg4[%c0_15, %c0_16, %c0_17] : memref<8x128x32xf32, #tpu.memory_space<vmem>>, vector<1x128x32xf32>
    %20 = vector.shape_cast %19 : vector<1x128x32xf32> to vector<128x32xf32>
    %cst_18 = arith.constant dense<0.000000e+00> : vector<16x32xf32>
    %21 = tpu.matmul %9, %20, %cst_18 {dimension_numbers = #tpu.dot_dimension_numbers<[1], [0], [0], [1], [0, 0, 1, 1], [], []>} : vector<16x128xf32>, vector<128x32xf32>, vector<16x32xf32> -> vector<16x32xf32>
    %c0_19 = arith.constant 0 : index
    %c0_20 = arith.constant 0 : index
    %c0_21 = arith.constant 0 : index
    %22 = vector.load %arg7[%c0_19, %c0_20, %c0_21] : memref<8x1x32xf32, #tpu.memory_space<vmem>>, vector<1x1x32xf32>
    %23 = vector.shape_cast %22 : vector<1x1x32xf32> to vector<1x32xf32>
    %24 = vector.broadcast %23 : vector<1x32xf32> to vector<16x32xf32>
    %25 = arith.addf %21, %24 : vector<16x32xf32>
    %c0_22 = arith.constant 0 : index
    %c0_23 = arith.constant 0 : index
    %c0_24 = arith.constant 0 : index
    %26 = vector.load %arg5[%c0_22, %c0_23, %c0_24] : memref<8x128x32xf32, #tpu.memory_space<vmem>>, vector<1x128x32xf32>
    %27 = vector.shape_cast %26 : vector<1x128x32xf32> to vector<128x32xf32>
    %cst_25 = arith.constant dense<0.000000e+00> : vector<16x32xf32>
    %28 = tpu.matmul %9, %27, %cst_25 {dimension_numbers = #tpu.dot_dimension_numbers<[1], [0], [0], [1], [0, 0, 1, 1], [], []>} : vector<16x128xf32>, vector<128x32xf32>, vector<16x32xf32> -> vector<16x32xf32>
    %c0_26 = arith.constant 0 : index
    %c0_27 = arith.constant 0 : index
    %c0_28 = arith.constant 0 : index
    %29 = vector.load %arg8[%c0_26, %c0_27, %c0_28] : memref<8x1x32xf32, #tpu.memory_space<vmem>>, vector<1x1x32xf32>
    %30 = vector.shape_cast %29 : vector<1x1x32xf32> to vector<1x32xf32>
    %31 = vector.broadcast %30 : vector<1x32xf32> to vector<16x32xf32>
    %32 = arith.addf %28, %31 : vector<16x32xf32>
    %33 = vector.shape_cast %18 : vector<16x32xf32> to vector<2x8x32xf32>
    %cst_29 = arith.constant 0.176776692 : f32
    %34 = vector.broadcast %cst_29 : f32 to vector<2x8x32xf32>
    %35 = arith.mulf %33, %34 : vector<2x8x32xf32>
    %36 = vector.shape_cast %25 : vector<16x32xf32> to vector<2x8x32xf32>
    %37 = vector.shape_cast %32 : vector<16x32xf32> to vector<2x8x32xf32>
    "tpu.trace_start"() <{level = 10 : i32, message = "bqd,bkd->bqk"}> : () -> ()
    %cst_30 = arith.constant dense<0.000000e+00> : vector<2x8x8xf32>
    %38 = tpu.matmul %35, %36, %cst_30 {dimension_numbers = #tpu.dot_dimension_numbers<[2], [2], [1], [1], [0, 0, 0, 1, 1, 1], [0], [0]>} : vector<2x8x32xf32>, vector<2x8x32xf32>, vector<2x8x8xf32> -> vector<2x8x8xf32>
    "tpu.trace_stop"() : () -> ()
    %cst_31 = arith.constant dense<0xFF800000> : vector<2x8xf32>
    %39 = vector.multi_reduction <maximumf>, %38, %cst_31 [2] : vector<2x8x8xf32> to vector<2x8xf32>
    %40 = vector.shape_cast %39 : vector<2x8xf32> to vector<2x8x1xf32>
    %41 = vector.broadcast %40 : vector<2x8x1xf32> to vector<2x8x8xf32>
    %42 = arith.subf %38, %41 : vector<2x8x8xf32>
    %43 = math.exp %42 : vector<2x8x8xf32>
    %cst_32 = arith.constant dense<0.000000e+00> : vector<2x8xf32>
    %44 = vector.multi_reduction <add>, %43, %cst_32 [2] : vector<2x8x8xf32> to vector<2x8xf32>
    %45 = vector.shape_cast %44 : vector<2x8xf32> to vector<2x8x1xf32>
    %46 = tpu.reciprocal %45 {approx = true} : vector<2x8x1xf32> -> vector<2x8x1xf32>
    %47 = vector.broadcast %46 : vector<2x8x1xf32> to vector<2x8x8xf32>
    %48 = arith.mulf %43, %47 : vector<2x8x8xf32>
    "tpu.trace_start"() <{level = 10 : i32, message = "bqk,bkd->bqd"}> : () -> ()
    %cst_33 = arith.constant dense<0.000000e+00> : vector<2x8x32xf32>
    %49 = tpu.matmul %48, %37, %cst_33 {dimension_numbers = #tpu.dot_dimension_numbers<[2], [1], [1], [2], [0, 0, 0, 1, 1, 2], [0], [0]>} : vector<2x8x8xf32>, vector<2x8x32xf32>, vector<2x8x32xf32> -> vector<2x8x32xf32>
    "tpu.trace_stop"() : () -> ()
    %50 = vector.shape_cast %49 : vector<2x8x32xf32> to vector<16x32xf32>
    %c0_34 = arith.constant 0 : index
    %c0_35 = arith.constant 0 : index
    %c0_36 = arith.constant 0 : index
    %51 = vector.load %arg9[%c0_34, %c0_35, %c0_36] : memref<8x32x128xf32, #tpu.memory_space<vmem>>, vector<1x32x128xf32>
    %52 = vector.shape_cast %51 : vector<1x32x128xf32> to vector<32x128xf32>
    %cst_37 = arith.constant dense<0.000000e+00> : vector<16x128xf32>
    %53 = tpu.matmul %50, %52, %cst_37 {dimension_numbers = #tpu.dot_dimension_numbers<[1], [0], [0], [1], [0, 0, 1, 1], [], []>} : vector<16x32xf32>, vector<32x128xf32>, vector<16x128xf32> -> vector<16x128xf32>
    %54 = vector.broadcast %11 : vector<1x128xf32> to vector<16x128xf32>
    %55 = arith.addf %54, %53 : vector<16x128xf32>
    %c1 = arith.constant 1 : index
    %c0_38 = arith.constant 0 : index
    %c0_39 = arith.constant 0 : index
    %56 = vector.load %arg3[%c1, %c0_38, %c0_39] : memref<8x128x32xf32, #tpu.memory_space<vmem>>, vector<1x128x32xf32>
    %57 = vector.shape_cast %56 : vector<1x128x32xf32> to vector<128x32xf32>
    %cst_40 = arith.constant dense<0.000000e+00> : vector<16x32xf32>
    %58 = tpu.matmul %9, %57, %cst_40 {dimension_numbers = #tpu.dot_dimension_numbers<[1], [0], [0], [1], [0, 0, 1, 1], [], []>} : vector<16x128xf32>, vector<128x32xf32>, vector<16x32xf32> -> vector<16x32xf32>
    %c1_41 = arith.constant 1 : index
    %c0_42 = arith.constant 0 : index
    %c0_43 = arith.constant 0 : index
    %59 = vector.load %arg6[%c1_41, %c0_42, %c0_43] : memref<8x1x32xf32, #tpu.memory_space<vmem>>, vector<1x1x32xf32>
    %60 = vector.shape_cast %59 : vector<1x1x32xf32> to vector<1x32xf32>
    %61 = vector.broadcast %60 : vector<1x32xf32> to vector<16x32xf32>
    %62 = arith.addf %58, %61 : vector<16x32xf32>
    %c1_44 = arith.constant 1 : index
    %c0_45 = arith.constant 0 : index
    %c0_46 = arith.constant 0 : index
    %63 = vector.load %arg4[%c1_44, %c0_45, %c0_46] : memref<8x128x32xf32, #tpu.memory_space<vmem>>, vector<1x128x32xf32>
    %64 = vector.shape_cast %63 : vector<1x128x32xf32> to vector<128x32xf32>
    %cst_47 = arith.constant dense<0.000000e+00> : vector<16x32xf32>
    %65 = tpu.matmul %9, %64, %cst_47 {dimension_numbers = #tpu.dot_dimension_numbers<[1], [0], [0], [1], [0, 0, 1, 1], [], []>} : vector<16x128xf32>, vector<128x32xf32>, vector<16x32xf32> -> vector<16x32xf32>
    %c1_48 = arith.constant 1 : index
    %c0_49 = arith.constant 0 : index
    %c0_50 = arith.constant 0 : index
    %66 = vector.load %arg7[%c1_48, %c0_49, %c0_50] : memref<8x1x32xf32, #tpu.memory_space<vmem>>, vector<1x1x32xf32>
    %67 = vector.shape_cast %66 : vector<1x1x32xf32> to vector<1x32xf32>
    %68 = vector.broadcast %67 : vector<1x32xf32> to vector<16x32xf32>
    %69 = arith.addf %65, %68 : vector<16x32xf32>
    %c1_51 = arith.constant 1 : index
    %c0_52 = arith.constant 0 : index
    %c0_53 = arith.constant 0 : index
    %70 = vector.load %arg5[%c1_51, %c0_52, %c0_53] : memref<8x128x32xf32, #tpu.memory_space<vmem>>, vector<1x128x32xf32>
    %71 = vector.shape_cast %70 : vector<1x128x32xf32> to vector<128x32xf32>
    %cst_54 = arith.constant dense<0.000000e+00> : vector<16x32xf32>
    %72 = tpu.matmul %9, %71, %cst_54 {dimension_numbers = #tpu.dot_dimension_numbers<[1], [0], [0], [1], [0, 0, 1, 1], [], []>} : vector<16x128xf32>, vector<128x32xf32>, vector<16x32xf32> -> vector<16x32xf32>
    %c1_55 = arith.constant 1 : index
    %c0_56 = arith.constant 0 : index
    %c0_57 = arith.constant 0 : index
    %73 = vector.load %arg8[%c1_55, %c0_56, %c0_57] : memref<8x1x32xf32, #tpu.memory_space<vmem>>, vector<1x1x32xf32>
    %74 = vector.shape_cast %73 : vector<1x1x32xf32> to vector<1x32xf32>
    %75 = vector.broadcast %74 : vector<1x32xf32> to vector<16x32xf32>
    %76 = arith.addf %72, %75 : vector<16x32xf32>
    %77 = vector.shape_cast %62 : vector<16x32xf32> to vector<2x8x32xf32>
    %cst_58 = arith.constant 0.176776692 : f32
    %78 = vector.broadcast %cst_58 : f32 to vector<2x8x32xf32>
    %79 = arith.mulf %77, %78 : vector<2x8x32xf32>
    %80 = vector.shape_cast %69 : vector<16x32xf32> to vector<2x8x32xf32>
    %81 = vector.shape_cast %76 : vector<16x32xf32> to vector<2x8x32xf32>
    "tpu.trace_start"() <{level = 10 : i32, message = "bqd,bkd->bqk"}> : () -> ()
    %cst_59 = arith.constant dense<0.000000e+00> : vector<2x8x8xf32>
    %82 = tpu.matmul %79, %80, %cst_59 {dimension_numbers = #tpu.dot_dimension_numbers<[2], [2], [1], [1], [0, 0, 0, 1, 1, 1], [0], [0]>} : vector<2x8x32xf32>, vector<2x8x32xf32>, vector<2x8x8xf32> -> vector<2x8x8xf32>
    "tpu.trace_stop"() : () -> ()
    %cst_60 = arith.constant dense<0xFF800000> : vector<2x8xf32>
    %83 = vector.multi_reduction <maximumf>, %82, %cst_60 [2] : vector<2x8x8xf32> to vector<2x8xf32>
    %84 = vector.shape_cast %83 : vector<2x8xf32> to vector<2x8x1xf32>
    %85 = vector.broadcast %84 : vector<2x8x1xf32> to vector<2x8x8xf32>
    %86 = arith.subf %82, %85 : vector<2x8x8xf32>
    %87 = math.exp %86 : vector<2x8x8xf32>
    %cst_61 = arith.constant dense<0.000000e+00> : vector<2x8xf32>
    %88 = vector.multi_reduction <add>, %87, %cst_61 [2] : vector<2x8x8xf32> to vector<2x8xf32>
    %89 = vector.shape_cast %88 : vector<2x8xf32> to vector<2x8x1xf32>
    %90 = tpu.reciprocal %89 {approx = true} : vector<2x8x1xf32> -> vector<2x8x1xf32>
    %91 = vector.broadcast %90 : vector<2x8x1xf32> to vector<2x8x8xf32>
    %92 = arith.mulf %87, %91 : vector<2x8x8xf32>
    "tpu.trace_start"() <{level = 10 : i32, message = "bqk,bkd->bqd"}> : () -> ()
    %cst_62 = arith.constant dense<0.000000e+00> : vector<2x8x32xf32>
    %93 = tpu.matmul %92, %81, %cst_62 {dimension_numbers = #tpu.dot_dimension_numbers<[2], [1], [1], [2], [0, 0, 0, 1, 1, 2], [0], [0]>} : vector<2x8x8xf32>, vector<2x8x32xf32>, vector<2x8x32xf32> -> vector<2x8x32xf32>
    "tpu.trace_stop"() : () -> ()
    %94 = vector.shape_cast %93 : vector<2x8x32xf32> to vector<16x32xf32>
    %c1_63 = arith.constant 1 : index
    %c0_64 = arith.constant 0 : index
    %c0_65 = arith.constant 0 : index
    %95 = vector.load %arg9[%c1_63, %c0_64, %c0_65] : memref<8x32x128xf32, #tpu.memory_space<vmem>>, vector<1x32x128xf32>
    %96 = vector.shape_cast %95 : vector<1x32x128xf32> to vector<32x128xf32>
    %cst_66 = arith.constant dense<0.000000e+00> : vector<16x128xf32>
    %97 = tpu.matmul %94, %96, %cst_66 {dimension_numbers = #tpu.dot_dimension_numbers<[1], [0], [0], [1], [0, 0, 1, 1], [], []>} : vector<16x32xf32>, vector<32x128xf32>, vector<16x128xf32> -> vector<16x128xf32>
    %98 = arith.addf %55, %97 : vector<16x128xf32>
    %c2 = arith.constant 2 : index
    %c0_67 = arith.constant 0 : index
    %c0_68 = arith.constant 0 : index
    %99 = vector.load %arg3[%c2, %c0_67, %c0_68] : memref<8x128x32xf32, #tpu.memory_space<vmem>>, vector<1x128x32xf32>
    %100 = vector.shape_cast %99 : vector<1x128x32xf32> to vector<128x32xf32>
    %cst_69 = arith.constant dense<0.000000e+00> : vector<16x32xf32>
    %101 = tpu.matmul %9, %100, %cst_69 {dimension_numbers = #tpu.dot_dimension_numbers<[1], [0], [0], [1], [0, 0, 1, 1], [], []>} : vector<16x128xf32>, vector<128x32xf32>, vector<16x32xf32> -> vector<16x32xf32>
    %c2_70 = arith.constant 2 : index
    %c0_71 = arith.constant 0 : index
    %c0_72 = arith.constant 0 : index
    %102 = vector.load %arg6[%c2_70, %c0_71, %c0_72] : memref<8x1x32xf32, #tpu.memory_space<vmem>>, vector<1x1x32xf32>
    %103 = vector.shape_cast %102 : vector<1x1x32xf32> to vector<1x32xf32>
    %104 = vector.broadcast %103 : vector<1x32xf32> to vector<16x32xf32>
    %105 = arith.addf %101, %104 : vector<16x32xf32>
    %c2_73 = arith.constant 2 : index
    %c0_74 = arith.constant 0 : index
    %c0_75 = arith.constant 0 : index
    %106 = vector.load %arg4[%c2_73, %c0_74, %c0_75] : memref<8x128x32xf32, #tpu.memory_space<vmem>>, vector<1x128x32xf32>
    %107 = vector.shape_cast %106 : vector<1x128x32xf32> to vector<128x32xf32>
    %cst_76 = arith.constant dense<0.000000e+00> : vector<16x32xf32>
    %108 = tpu.matmul %9, %107, %cst_76 {dimension_numbers = #tpu.dot_dimension_numbers<[1], [0], [0], [1], [0, 0, 1, 1], [], []>} : vector<16x128xf32>, vector<128x32xf32>, vector<16x32xf32> -> vector<16x32xf32>
    %c2_77 = arith.constant 2 : index
    %c0_78 = arith.constant 0 : index
    %c0_79 = arith.constant 0 : index
    %109 = vector.load %arg7[%c2_77, %c0_78, %c0_79] : memref<8x1x32xf32, #tpu.memory_space<vmem>>, vector<1x1x32xf32>
    %110 = vector.shape_cast %109 : vector<1x1x32xf32> to vector<1x32xf32>
    %111 = vector.broadcast %110 : vector<1x32xf32> to vector<16x32xf32>
    %112 = arith.addf %108, %111 : vector<16x32xf32>
    %c2_80 = arith.constant 2 : index
    %c0_81 = arith.constant 0 : index
    %c0_82 = arith.constant 0 : index
    %113 = vector.load %arg5[%c2_80, %c0_81, %c0_82] : memref<8x128x32xf32, #tpu.memory_space<vmem>>, vector<1x128x32xf32>
    %114 = vector.shape_cast %113 : vector<1x128x32xf32> to vector<128x32xf32>
    %cst_83 = arith.constant dense<0.000000e+00> : vector<16x32xf32>
    %115 = tpu.matmul %9, %114, %cst_83 {dimension_numbers = #tpu.dot_dimension_numbers<[1], [0], [0], [1], [0, 0, 1, 1], [], []>} : vector<16x128xf32>, vector<128x32xf32>, vector<16x32xf32> -> vector<16x32xf32>
    %c2_84 = arith.constant 2 : index
    %c0_85 = arith.constant 0 : index
    %c0_86 = arith.constant 0 : index
    %116 = vector.load %arg8[%c2_84, %c0_85, %c0_86] : memref<8x1x32xf32, #tpu.memory_space<vmem>>, vector<1x1x32xf32>
    %117 = vector.shape_cast %116 : vector<1x1x32xf32> to vector<1x32xf32>
    %118 = vector.broadcast %117 : vector<1x32xf32> to vector<16x32xf32>
    %119 = arith.addf %115, %118 : vector<16x32xf32>
    %120 = vector.shape_cast %105 : vector<16x32xf32> to vector<2x8x32xf32>
    %cst_87 = arith.constant 0.176776692 : f32
    %121 = vector.broadcast %cst_87 : f32 to vector<2x8x32xf32>
    %122 = arith.mulf %120, %121 : vector<2x8x32xf32>
    %123 = vector.shape_cast %112 : vector<16x32xf32> to vector<2x8x32xf32>
    %124 = vector.shape_cast %119 : vector<16x32xf32> to vector<2x8x32xf32>
    "tpu.trace_start"() <{level = 10 : i32, message = "bqd,bkd->bqk"}> : () -> ()
    %cst_88 = arith.constant dense<0.000000e+00> : vector<2x8x8xf32>
    %125 = tpu.matmul %122, %123, %cst_88 {dimension_numbers = #tpu.dot_dimension_numbers<[2], [2], [1], [1], [0, 0, 0, 1, 1, 1], [0], [0]>} : vector<2x8x32xf32>, vector<2x8x32xf32>, vector<2x8x8xf32> -> vector<2x8x8xf32>
    "tpu.trace_stop"() : () -> ()
    %cst_89 = arith.constant dense<0xFF800000> : vector<2x8xf32>
    %126 = vector.multi_reduction <maximumf>, %125, %cst_89 [2] : vector<2x8x8xf32> to vector<2x8xf32>
    %127 = vector.shape_cast %126 : vector<2x8xf32> to vector<2x8x1xf32>
    %128 = vector.broadcast %127 : vector<2x8x1xf32> to vector<2x8x8xf32>
    %129 = arith.subf %125, %128 : vector<2x8x8xf32>
    %130 = math.exp %129 : vector<2x8x8xf32>
    %cst_90 = arith.constant dense<0.000000e+00> : vector<2x8xf32>
    %131 = vector.multi_reduction <add>, %130, %cst_90 [2] : vector<2x8x8xf32> to vector<2x8xf32>
    %132 = vector.shape_cast %131 : vector<2x8xf32> to vector<2x8x1xf32>
    %133 = tpu.reciprocal %132 {approx = true} : vector<2x8x1xf32> -> vector<2x8x1xf32>
    %134 = vector.broadcast %133 : vector<2x8x1xf32> to vector<2x8x8xf32>
    %135 = arith.mulf %130, %134 : vector<2x8x8xf32>
    "tpu.trace_start"() <{level = 10 : i32, message = "bqk,bkd->bqd"}> : () -> ()
    %cst_91 = arith.constant dense<0.000000e+00> : vector<2x8x32xf32>
    %136 = tpu.matmul %135, %124, %cst_91 {dimension_numbers = #tpu.dot_dimension_numbers<[2], [1], [1], [2], [0, 0, 0, 1, 1, 2], [0], [0]>} : vector<2x8x8xf32>, vector<2x8x32xf32>, vector<2x8x32xf32> -> vector<2x8x32xf32>
    "tpu.trace_stop"() : () -> ()
    %137 = vector.shape_cast %136 : vector<2x8x32xf32> to vector<16x32xf32>
    %c2_92 = arith.constant 2 : index
    %c0_93 = arith.constant 0 : index
    %c0_94 = arith.constant 0 : index
    %138 = vector.load %arg9[%c2_92, %c0_93, %c0_94] : memref<8x32x128xf32, #tpu.memory_space<vmem>>, vector<1x32x128xf32>
    %139 = vector.shape_cast %138 : vector<1x32x128xf32> to vector<32x128xf32>
    %cst_95 = arith.constant dense<0.000000e+00> : vector<16x128xf32>
    %140 = tpu.matmul %137, %139, %cst_95 {dimension_numbers = #tpu.dot_dimension_numbers<[1], [0], [0], [1], [0, 0, 1, 1], [], []>} : vector<16x32xf32>, vector<32x128xf32>, vector<16x128xf32> -> vector<16x128xf32>
    %141 = arith.addf %98, %140 : vector<16x128xf32>
    %c3 = arith.constant 3 : index
    %c0_96 = arith.constant 0 : index
    %c0_97 = arith.constant 0 : index
    %142 = vector.load %arg3[%c3, %c0_96, %c0_97] : memref<8x128x32xf32, #tpu.memory_space<vmem>>, vector<1x128x32xf32>
    %143 = vector.shape_cast %142 : vector<1x128x32xf32> to vector<128x32xf32>
    %cst_98 = arith.constant dense<0.000000e+00> : vector<16x32xf32>
    %144 = tpu.matmul %9, %143, %cst_98 {dimension_numbers = #tpu.dot_dimension_numbers<[1], [0], [0], [1], [0, 0, 1, 1], [], []>} : vector<16x128xf32>, vector<128x32xf32>, vector<16x32xf32> -> vector<16x32xf32>
    %c3_99 = arith.constant 3 : index
    %c0_100 = arith.constant 0 : index
    %c0_101 = arith.constant 0 : index
    %145 = vector.load %arg6[%c3_99, %c0_100, %c0_101] : memref<8x1x32xf32, #tpu.memory_space<vmem>>, vector<1x1x32xf32>
    %146 = vector.shape_cast %145 : vector<1x1x32xf32> to vector<1x32xf32>
    %147 = vector.broadcast %146 : vector<1x32xf32> to vector<16x32xf32>
    %148 = arith.addf %144, %147 : vector<16x32xf32>
    %c3_102 = arith.constant 3 : index
    %c0_103 = arith.constant 0 : index
    %c0_104 = arith.constant 0 : index
    %149 = vector.load %arg4[%c3_102, %c0_103, %c0_104] : memref<8x128x32xf32, #tpu.memory_space<vmem>>, vector<1x128x32xf32>
    %150 = vector.shape_cast %149 : vector<1x128x32xf32> to vector<128x32xf32>
    %cst_105 = arith.constant dense<0.000000e+00> : vector<16x32xf32>
    %151 = tpu.matmul %9, %150, %cst_105 {dimension_numbers = #tpu.dot_dimension_numbers<[1], [0], [0], [1], [0, 0, 1, 1], [], []>} : vector<16x128xf32>, vector<128x32xf32>, vector<16x32xf32> -> vector<16x32xf32>
    %c3_106 = arith.constant 3 : index
    %c0_107 = arith.constant 0 : index
    %c0_108 = arith.constant 0 : index
    %152 = vector.load %arg7[%c3_106, %c0_107, %c0_108] : memref<8x1x32xf32, #tpu.memory_space<vmem>>, vector<1x1x32xf32>
    %153 = vector.shape_cast %152 : vector<1x1x32xf32> to vector<1x32xf32>
    %154 = vector.broadcast %153 : vector<1x32xf32> to vector<16x32xf32>
    %155 = arith.addf %151, %154 : vector<16x32xf32>
    %c3_109 = arith.constant 3 : index
    %c0_110 = arith.constant 0 : index
    %c0_111 = arith.constant 0 : index
    %156 = vector.load %arg5[%c3_109, %c0_110, %c0_111] : memref<8x128x32xf32, #tpu.memory_space<vmem>>, vector<1x128x32xf32>
    %157 = vector.shape_cast %156 : vector<1x128x32xf32> to vector<128x32xf32>
    %cst_112 = arith.constant dense<0.000000e+00> : vector<16x32xf32>
    %158 = tpu.matmul %9, %157, %cst_112 {dimension_numbers = #tpu.dot_dimension_numbers<[1], [0], [0], [1], [0, 0, 1, 1], [], []>} : vector<16x128xf32>, vector<128x32xf32>, vector<16x32xf32> -> vector<16x32xf32>
    %c3_113 = arith.constant 3 : index
    %c0_114 = arith.constant 0 : index
    %c0_115 = arith.constant 0 : index
    %159 = vector.load %arg8[%c3_113, %c0_114, %c0_115] : memref<8x1x32xf32, #tpu.memory_space<vmem>>, vector<1x1x32xf32>
    %160 = vector.shape_cast %159 : vector<1x1x32xf32> to vector<1x32xf32>
    %161 = vector.broadcast %160 : vector<1x32xf32> to vector<16x32xf32>
    %162 = arith.addf %158, %161 : vector<16x32xf32>
    %163 = vector.shape_cast %148 : vector<16x32xf32> to vector<2x8x32xf32>
    %cst_116 = arith.constant 0.176776692 : f32
    %164 = vector.broadcast %cst_116 : f32 to vector<2x8x32xf32>
    %165 = arith.mulf %163, %164 : vector<2x8x32xf32>
    %166 = vector.shape_cast %155 : vector<16x32xf32> to vector<2x8x32xf32>
    %167 = vector.shape_cast %162 : vector<16x32xf32> to vector<2x8x32xf32>
    "tpu.trace_start"() <{level = 10 : i32, message = "bqd,bkd->bqk"}> : () -> ()
    %cst_117 = arith.constant dense<0.000000e+00> : vector<2x8x8xf32>
    %168 = tpu.matmul %165, %166, %cst_117 {dimension_numbers = #tpu.dot_dimension_numbers<[2], [2], [1], [1], [0, 0, 0, 1, 1, 1], [0], [0]>} : vector<2x8x32xf32>, vector<2x8x32xf32>, vector<2x8x8xf32> -> vector<2x8x8xf32>
    "tpu.trace_stop"() : () -> ()
    %cst_118 = arith.constant dense<0xFF800000> : vector<2x8xf32>
    %169 = vector.multi_reduction <maximumf>, %168, %cst_118 [2] : vector<2x8x8xf32> to vector<2x8xf32>
    %170 = vector.shape_cast %169 : vector<2x8xf32> to vector<2x8x1xf32>
    %171 = vector.broadcast %170 : vector<2x8x1xf32> to vector<2x8x8xf32>
    %172 = arith.subf %168, %171 : vector<2x8x8xf32>
    %173 = math.exp %172 : vector<2x8x8xf32>
    %cst_119 = arith.constant dense<0.000000e+00> : vector<2x8xf32>
    %174 = vector.multi_reduction <add>, %173, %cst_119 [2] : vector<2x8x8xf32> to vector<2x8xf32>
    %175 = vector.shape_cast %174 : vector<2x8xf32> to vector<2x8x1xf32>
    %176 = tpu.reciprocal %175 {approx = true} : vector<2x8x1xf32> -> vector<2x8x1xf32>
    %177 = vector.broadcast %176 : vector<2x8x1xf32> to vector<2x8x8xf32>
    %178 = arith.mulf %173, %177 : vector<2x8x8xf32>
    "tpu.trace_start"() <{level = 10 : i32, message = "bqk,bkd->bqd"}> : () -> ()
    %cst_120 = arith.constant dense<0.000000e+00> : vector<2x8x32xf32>
    %179 = tpu.matmul %178, %167, %cst_120 {dimension_numbers = #tpu.dot_dimension_numbers<[2], [1], [1], [2], [0, 0, 0, 1, 1, 2], [0], [0]>} : vector<2x8x8xf32>, vector<2x8x32xf32>, vector<2x8x32xf32> -> vector<2x8x32xf32>
    "tpu.trace_stop"() : () -> ()
    %180 = vector.shape_cast %179 : vector<2x8x32xf32> to vector<16x32xf32>
    %c3_121 = arith.constant 3 : index
    %c0_122 = arith.constant 0 : index
    %c0_123 = arith.constant 0 : index
    %181 = vector.load %arg9[%c3_121, %c0_122, %c0_123] : memref<8x32x128xf32, #tpu.memory_space<vmem>>, vector<1x32x128xf32>
    %182 = vector.shape_cast %181 : vector<1x32x128xf32> to vector<32x128xf32>
    %cst_124 = arith.constant dense<0.000000e+00> : vector<16x128xf32>
    %183 = tpu.matmul %180, %182, %cst_124 {dimension_numbers = #tpu.dot_dimension_numbers<[1], [0], [0], [1], [0, 0, 1, 1], [], []>} : vector<16x32xf32>, vector<32x128xf32>, vector<16x128xf32> -> vector<16x128xf32>
    %184 = arith.addf %141, %183 : vector<16x128xf32>
    %185 = arith.addf %9, %184 : vector<16x128xf32>
    %c0_125 = arith.constant 0 : index
    %c0_126 = arith.constant 0 : index
    %c0_127 = arith.constant 0 : index
    %186 = vector.load %arg11[%c0_125, %c0_126, %c0_127] : memref<2x1x128xf32, #tpu.memory_space<vmem>>, vector<1x1x128xf32>
    %187 = vector.shape_cast %186 : vector<1x1x128xf32> to vector<1x128xf32>
    %c0_128 = arith.constant 0 : index
    %c0_129 = arith.constant 0 : index
    %c0_130 = arith.constant 0 : index
    %188 = vector.load %arg12[%c0_128, %c0_129, %c0_130] : memref<2x1x128xf32, #tpu.memory_space<vmem>>, vector<1x1x128xf32>
    %189 = vector.shape_cast %188 : vector<1x1x128xf32> to vector<1x128xf32>
    %cst_131 = arith.constant dense<0.000000e+00> : vector<16xf32>
    %190 = vector.multi_reduction <add>, %185, %cst_131 [1] : vector<16x128xf32> to vector<16xf32>
    %191 = vector.shape_cast %190 : vector<16xf32> to vector<16x1xf32>
    %cst_132 = arith.constant 1.280000e+02 : f32
    %192 = vector.broadcast %cst_132 : f32 to vector<16x1xf32>
    %193 = arith.divf %191, %192 : vector<16x1xf32>
    %194 = vector.broadcast %193 : vector<16x1xf32> to vector<16x128xf32>
    %195 = arith.subf %185, %194 : vector<16x128xf32>
    %196 = arith.mulf %195, %195 : vector<16x128xf32>
    %cst_133 = arith.constant dense<0.000000e+00> : vector<16xf32>
    %197 = vector.multi_reduction <add>, %196, %cst_133 [1] : vector<16x128xf32> to vector<16xf32>
    %198 = vector.shape_cast %197 : vector<16xf32> to vector<16x1xf32>
    %cst_134 = arith.constant 1.280000e+02 : f32
    %199 = vector.broadcast %cst_134 : f32 to vector<16x1xf32>
    %200 = arith.divf %198, %199 : vector<16x1xf32>
    %201 = vector.broadcast %193 : vector<16x1xf32> to vector<16x128xf32>
    %202 = arith.subf %185, %201 : vector<16x128xf32>
    %cst_135 = arith.constant 9.99999974E-6 : f32
    %203 = vector.broadcast %cst_135 : f32 to vector<16x1xf32>
    %204 = arith.addf %200, %203 : vector<16x1xf32>
    %205 = math.rsqrt %204 : vector<16x1xf32>
    %206 = vector.broadcast %205 : vector<16x1xf32> to vector<16x128xf32>
    %207 = arith.mulf %202, %206 : vector<16x128xf32>
    %208 = vector.broadcast %187 : vector<1x128xf32> to vector<16x128xf32>
    %209 = arith.mulf %207, %208 : vector<16x128xf32>
    %210 = vector.broadcast %189 : vector<1x128xf32> to vector<16x128xf32>
    %211 = arith.addf %209, %210 : vector<16x128xf32>
    %c0_136 = arith.constant 0 : index
    %c0_137 = arith.constant 0 : index
    %c0_138 = arith.constant 0 : index
    %212 = vector.load %arg13[%c0_136, %c0_137, %c0_138] : memref<2x128x512xf32, #tpu.memory_space<vmem>>, vector<1x128x512xf32>
    %213 = vector.shape_cast %212 : vector<1x128x512xf32> to vector<128x512xf32>
    %cst_139 = arith.constant dense<0.000000e+00> : vector<16x512xf32>
    %214 = tpu.matmul %211, %213, %cst_139 {dimension_numbers = #tpu.dot_dimension_numbers<[1], [0], [0], [1], [0, 0, 1, 1], [], []>} : vector<16x128xf32>, vector<128x512xf32>, vector<16x512xf32> -> vector<16x512xf32>
    %c0_140 = arith.constant 0 : index
    %c0_141 = arith.constant 0 : index
    %c0_142 = arith.constant 0 : index
    %215 = vector.load %arg14[%c0_140, %c0_141, %c0_142] : memref<2x1x512xf32, #tpu.memory_space<vmem>>, vector<1x1x512xf32>
    %216 = vector.shape_cast %215 : vector<1x1x512xf32> to vector<1x512xf32>
    %217 = vector.broadcast %216 : vector<1x512xf32> to vector<16x512xf32>
    %218 = arith.addf %214, %217 : vector<16x512xf32>
    %cst_143 = arith.constant 0.000000e+00 : f32
    %219 = vector.broadcast %cst_143 : f32 to vector<16x512xf32>
    %220 = arith.maximumf %218, %219 : vector<16x512xf32>
    %c0_144 = arith.constant 0 : index
    %c0_145 = arith.constant 0 : index
    %c0_146 = arith.constant 0 : index
    %221 = vector.load %arg15[%c0_144, %c0_145, %c0_146] : memref<2x512x128xf32, #tpu.memory_space<vmem>>, vector<1x512x128xf32>
    %222 = vector.shape_cast %221 : vector<1x512x128xf32> to vector<512x128xf32>
    %cst_147 = arith.constant dense<0.000000e+00> : vector<16x128xf32>
    %223 = tpu.matmul %220, %222, %cst_147 {dimension_numbers = #tpu.dot_dimension_numbers<[1], [0], [0], [1], [0, 0, 1, 1], [], []>} : vector<16x512xf32>, vector<512x128xf32>, vector<16x128xf32> -> vector<16x128xf32>
    %c0_148 = arith.constant 0 : index
    %c0_149 = arith.constant 0 : index
    %c0_150 = arith.constant 0 : index
    %224 = vector.load %arg16[%c0_148, %c0_149, %c0_150] : memref<2x1x128xf32, #tpu.memory_space<vmem>>, vector<1x1x128xf32>
    %225 = vector.shape_cast %224 : vector<1x1x128xf32> to vector<1x128xf32>
    %226 = vector.broadcast %225 : vector<1x128xf32> to vector<16x128xf32>
    %227 = arith.addf %223, %226 : vector<16x128xf32>
    %228 = arith.addf %211, %227 : vector<16x128xf32>
    %c0_151 = arith.constant 0 : index
    %c0_152 = arith.constant 0 : index
    %c0_153 = arith.constant 0 : index
    %229 = vector.load %arg17[%c0_151, %c0_152, %c0_153] : memref<2x1x128xf32, #tpu.memory_space<vmem>>, vector<1x1x128xf32>
    %230 = vector.shape_cast %229 : vector<1x1x128xf32> to vector<1x128xf32>
    %c0_154 = arith.constant 0 : index
    %c0_155 = arith.constant 0 : index
    %c0_156 = arith.constant 0 : index
    %231 = vector.load %arg18[%c0_154, %c0_155, %c0_156] : memref<2x1x128xf32, #tpu.memory_space<vmem>>, vector<1x1x128xf32>
    %232 = vector.shape_cast %231 : vector<1x1x128xf32> to vector<1x128xf32>
    %cst_157 = arith.constant dense<0.000000e+00> : vector<16xf32>
    %233 = vector.multi_reduction <add>, %228, %cst_157 [1] : vector<16x128xf32> to vector<16xf32>
    %234 = vector.shape_cast %233 : vector<16xf32> to vector<16x1xf32>
    %cst_158 = arith.constant 1.280000e+02 : f32
    %235 = vector.broadcast %cst_158 : f32 to vector<16x1xf32>
    %236 = arith.divf %234, %235 : vector<16x1xf32>
    %237 = vector.broadcast %236 : vector<16x1xf32> to vector<16x128xf32>
    %238 = arith.subf %228, %237 : vector<16x128xf32>
    %239 = arith.mulf %238, %238 : vector<16x128xf32>
    %cst_159 = arith.constant dense<0.000000e+00> : vector<16xf32>
    %240 = vector.multi_reduction <add>, %239, %cst_159 [1] : vector<16x128xf32> to vector<16xf32>
    %241 = vector.shape_cast %240 : vector<16xf32> to vector<16x1xf32>
    %cst_160 = arith.constant 1.280000e+02 : f32
    %242 = vector.broadcast %cst_160 : f32 to vector<16x1xf32>
    %243 = arith.divf %241, %242 : vector<16x1xf32>
    %244 = vector.broadcast %236 : vector<16x1xf32> to vector<16x128xf32>
    %245 = arith.subf %228, %244 : vector<16x128xf32>
    %cst_161 = arith.constant 9.99999974E-6 : f32
    %246 = vector.broadcast %cst_161 : f32 to vector<16x1xf32>
    %247 = arith.addf %243, %246 : vector<16x1xf32>
    %248 = math.rsqrt %247 : vector<16x1xf32>
    %249 = vector.broadcast %248 : vector<16x1xf32> to vector<16x128xf32>
    %250 = arith.mulf %245, %249 : vector<16x128xf32>
    %251 = vector.broadcast %230 : vector<1x128xf32> to vector<16x128xf32>
    %252 = arith.mulf %250, %251 : vector<16x128xf32>
    %253 = vector.broadcast %232 : vector<1x128xf32> to vector<16x128xf32>
    %254 = arith.addf %252, %253 : vector<16x128xf32>
    %c1_162 = arith.constant 1 : index
    %c0_163 = arith.constant 0 : index
    %c0_164 = arith.constant 0 : index
    %255 = vector.load %arg10[%c1_162, %c0_163, %c0_164] : memref<2x1x128xf32, #tpu.memory_space<vmem>>, vector<1x1x128xf32>
    %256 = vector.shape_cast %255 : vector<1x1x128xf32> to vector<1x128xf32>
    %c4 = arith.constant 4 : index
    %c0_165 = arith.constant 0 : index
    %c0_166 = arith.constant 0 : index
    %257 = vector.load %arg3[%c4, %c0_165, %c0_166] : memref<8x128x32xf32, #tpu.memory_space<vmem>>, vector<1x128x32xf32>
    %258 = vector.shape_cast %257 : vector<1x128x32xf32> to vector<128x32xf32>
    %cst_167 = arith.constant dense<0.000000e+00> : vector<16x32xf32>
    %259 = tpu.matmul %254, %258, %cst_167 {dimension_numbers = #tpu.dot_dimension_numbers<[1], [0], [0], [1], [0, 0, 1, 1], [], []>} : vector<16x128xf32>, vector<128x32xf32>, vector<16x32xf32> -> vector<16x32xf32>
    %c4_168 = arith.constant 4 : index
    %c0_169 = arith.constant 0 : index
    %c0_170 = arith.constant 0 : index
    %260 = vector.load %arg6[%c4_168, %c0_169, %c0_170] : memref<8x1x32xf32, #tpu.memory_space<vmem>>, vector<1x1x32xf32>
    %261 = vector.shape_cast %260 : vector<1x1x32xf32> to vector<1x32xf32>
    %262 = vector.broadcast %261 : vector<1x32xf32> to vector<16x32xf32>
    %263 = arith.addf %259, %262 : vector<16x32xf32>
    %c4_171 = arith.constant 4 : index
    %c0_172 = arith.constant 0 : index
    %c0_173 = arith.constant 0 : index
    %264 = vector.load %arg4[%c4_171, %c0_172, %c0_173] : memref<8x128x32xf32, #tpu.memory_space<vmem>>, vector<1x128x32xf32>
    %265 = vector.shape_cast %264 : vector<1x128x32xf32> to vector<128x32xf32>
    %cst_174 = arith.constant dense<0.000000e+00> : vector<16x32xf32>
    %266 = tpu.matmul %254, %265, %cst_174 {dimension_numbers = #tpu.dot_dimension_numbers<[1], [0], [0], [1], [0, 0, 1, 1], [], []>} : vector<16x128xf32>, vector<128x32xf32>, vector<16x32xf32> -> vector<16x32xf32>
    %c4_175 = arith.constant 4 : index
    %c0_176 = arith.constant 0 : index
    %c0_177 = arith.constant 0 : index
    %267 = vector.load %arg7[%c4_175, %c0_176, %c0_177] : memref<8x1x32xf32, #tpu.memory_space<vmem>>, vector<1x1x32xf32>
    %268 = vector.shape_cast %267 : vector<1x1x32xf32> to vector<1x32xf32>
    %269 = vector.broadcast %268 : vector<1x32xf32> to vector<16x32xf32>
    %270 = arith.addf %266, %269 : vector<16x32xf32>
    %c4_178 = arith.constant 4 : index
    %c0_179 = arith.constant 0 : index
    %c0_180 = arith.constant 0 : index
    %271 = vector.load %arg5[%c4_178, %c0_179, %c0_180] : memref<8x128x32xf32, #tpu.memory_space<vmem>>, vector<1x128x32xf32>
    %272 = vector.shape_cast %271 : vector<1x128x32xf32> to vector<128x32xf32>
    %cst_181 = arith.constant dense<0.000000e+00> : vector<16x32xf32>
    %273 = tpu.matmul %254, %272, %cst_181 {dimension_numbers = #tpu.dot_dimension_numbers<[1], [0], [0], [1], [0, 0, 1, 1], [], []>} : vector<16x128xf32>, vector<128x32xf32>, vector<16x32xf32> -> vector<16x32xf32>
    %c4_182 = arith.constant 4 : index
    %c0_183 = arith.constant 0 : index
    %c0_184 = arith.constant 0 : index
    %274 = vector.load %arg8[%c4_182, %c0_183, %c0_184] : memref<8x1x32xf32, #tpu.memory_space<vmem>>, vector<1x1x32xf32>
    %275 = vector.shape_cast %274 : vector<1x1x32xf32> to vector<1x32xf32>
    %276 = vector.broadcast %275 : vector<1x32xf32> to vector<16x32xf32>
    %277 = arith.addf %273, %276 : vector<16x32xf32>
    %278 = vector.shape_cast %263 : vector<16x32xf32> to vector<2x8x32xf32>
    %cst_185 = arith.constant 0.176776692 : f32
    %279 = vector.broadcast %cst_185 : f32 to vector<2x8x32xf32>
    %280 = arith.mulf %278, %279 : vector<2x8x32xf32>
    %281 = vector.shape_cast %270 : vector<16x32xf32> to vector<2x8x32xf32>
    %282 = vector.shape_cast %277 : vector<16x32xf32> to vector<2x8x32xf32>
    "tpu.trace_start"() <{level = 10 : i32, message = "bqd,bkd->bqk"}> : () -> ()
    %cst_186 = arith.constant dense<0.000000e+00> : vector<2x8x8xf32>
    %283 = tpu.matmul %280, %281, %cst_186 {dimension_numbers = #tpu.dot_dimension_numbers<[2], [2], [1], [1], [0, 0, 0, 1, 1, 1], [0], [0]>} : vector<2x8x32xf32>, vector<2x8x32xf32>, vector<2x8x8xf32> -> vector<2x8x8xf32>
    "tpu.trace_stop"() : () -> ()
    %cst_187 = arith.constant dense<0xFF800000> : vector<2x8xf32>
    %284 = vector.multi_reduction <maximumf>, %283, %cst_187 [2] : vector<2x8x8xf32> to vector<2x8xf32>
    %285 = vector.shape_cast %284 : vector<2x8xf32> to vector<2x8x1xf32>
    %286 = vector.broadcast %285 : vector<2x8x1xf32> to vector<2x8x8xf32>
    %287 = arith.subf %283, %286 : vector<2x8x8xf32>
    %288 = math.exp %287 : vector<2x8x8xf32>
    %cst_188 = arith.constant dense<0.000000e+00> : vector<2x8xf32>
    %289 = vector.multi_reduction <add>, %288, %cst_188 [2] : vector<2x8x8xf32> to vector<2x8xf32>
    %290 = vector.shape_cast %289 : vector<2x8xf32> to vector<2x8x1xf32>
    %291 = tpu.reciprocal %290 {approx = true} : vector<2x8x1xf32> -> vector<2x8x1xf32>
    %292 = vector.broadcast %291 : vector<2x8x1xf32> to vector<2x8x8xf32>
    %293 = arith.mulf %288, %292 : vector<2x8x8xf32>
    "tpu.trace_start"() <{level = 10 : i32, message = "bqk,bkd->bqd"}> : () -> ()
    %cst_189 = arith.constant dense<0.000000e+00> : vector<2x8x32xf32>
    %294 = tpu.matmul %293, %282, %cst_189 {dimension_numbers = #tpu.dot_dimension_numbers<[2], [1], [1], [2], [0, 0, 0, 1, 1, 2], [0], [0]>} : vector<2x8x8xf32>, vector<2x8x32xf32>, vector<2x8x32xf32> -> vector<2x8x32xf32>
    "tpu.trace_stop"() : () -> ()
    %295 = vector.shape_cast %294 : vector<2x8x32xf32> to vector<16x32xf32>
    %c4_190 = arith.constant 4 : index
    %c0_191 = arith.constant 0 : index
    %c0_192 = arith.constant 0 : index
    %296 = vector.load %arg9[%c4_190, %c0_191, %c0_192] : memref<8x32x128xf32, #tpu.memory_space<vmem>>, vector<1x32x128xf32>
    %297 = vector.shape_cast %296 : vector<1x32x128xf32> to vector<32x128xf32>
    %cst_193 = arith.constant dense<0.000000e+00> : vector<16x128xf32>
    %298 = tpu.matmul %295, %297, %cst_193 {dimension_numbers = #tpu.dot_dimension_numbers<[1], [0], [0], [1], [0, 0, 1, 1], [], []>} : vector<16x32xf32>, vector<32x128xf32>, vector<16x128xf32> -> vector<16x128xf32>
    %299 = vector.broadcast %256 : vector<1x128xf32> to vector<16x128xf32>
    %300 = arith.addf %299, %298 : vector<16x128xf32>
    %c5 = arith.constant 5 : index
    %c0_194 = arith.constant 0 : index
    %c0_195 = arith.constant 0 : index
    %301 = vector.load %arg3[%c5, %c0_194, %c0_195] : memref<8x128x32xf32, #tpu.memory_space<vmem>>, vector<1x128x32xf32>
    %302 = vector.shape_cast %301 : vector<1x128x32xf32> to vector<128x32xf32>
    %cst_196 = arith.constant dense<0.000000e+00> : vector<16x32xf32>
    %303 = tpu.matmul %254, %302, %cst_196 {dimension_numbers = #tpu.dot_dimension_numbers<[1], [0], [0], [1], [0, 0, 1, 1], [], []>} : vector<16x128xf32>, vector<128x32xf32>, vector<16x32xf32> -> vector<16x32xf32>
    %c5_197 = arith.constant 5 : index
    %c0_198 = arith.constant 0 : index
    %c0_199 = arith.constant 0 : index
    %304 = vector.load %arg6[%c5_197, %c0_198, %c0_199] : memref<8x1x32xf32, #tpu.memory_space<vmem>>, vector<1x1x32xf32>
    %305 = vector.shape_cast %304 : vector<1x1x32xf32> to vector<1x32xf32>
    %306 = vector.broadcast %305 : vector<1x32xf32> to vector<16x32xf32>
    %307 = arith.addf %303, %306 : vector<16x32xf32>
    %c5_200 = arith.constant 5 : index
    %c0_201 = arith.constant 0 : index
    %c0_202 = arith.constant 0 : index
    %308 = vector.load %arg4[%c5_200, %c0_201, %c0_202] : memref<8x128x32xf32, #tpu.memory_space<vmem>>, vector<1x128x32xf32>
    %309 = vector.shape_cast %308 : vector<1x128x32xf32> to vector<128x32xf32>
    %cst_203 = arith.constant dense<0.000000e+00> : vector<16x32xf32>
    %310 = tpu.matmul %254, %309, %cst_203 {dimension_numbers = #tpu.dot_dimension_numbers<[1], [0], [0], [1], [0, 0, 1, 1], [], []>} : vector<16x128xf32>, vector<128x32xf32>, vector<16x32xf32> -> vector<16x32xf32>
    %c5_204 = arith.constant 5 : index
    %c0_205 = arith.constant 0 : index
    %c0_206 = arith.constant 0 : index
    %311 = vector.load %arg7[%c5_204, %c0_205, %c0_206] : memref<8x1x32xf32, #tpu.memory_space<vmem>>, vector<1x1x32xf32>
    %312 = vector.shape_cast %311 : vector<1x1x32xf32> to vector<1x32xf32>
    %313 = vector.broadcast %312 : vector<1x32xf32> to vector<16x32xf32>
    %314 = arith.addf %310, %313 : vector<16x32xf32>
    %c5_207 = arith.constant 5 : index
    %c0_208 = arith.constant 0 : index
    %c0_209 = arith.constant 0 : index
    %315 = vector.load %arg5[%c5_207, %c0_208, %c0_209] : memref<8x128x32xf32, #tpu.memory_space<vmem>>, vector<1x128x32xf32>
    %316 = vector.shape_cast %315 : vector<1x128x32xf32> to vector<128x32xf32>
    %cst_210 = arith.constant dense<0.000000e+00> : vector<16x32xf32>
    %317 = tpu.matmul %254, %316, %cst_210 {dimension_numbers = #tpu.dot_dimension_numbers<[1], [0], [0], [1], [0, 0, 1, 1], [], []>} : vector<16x128xf32>, vector<128x32xf32>, vector<16x32xf32> -> vector<16x32xf32>
    %c5_211 = arith.constant 5 : index
    %c0_212 = arith.constant 0 : index
    %c0_213 = arith.constant 0 : index
    %318 = vector.load %arg8[%c5_211, %c0_212, %c0_213] : memref<8x1x32xf32, #tpu.memory_space<vmem>>, vector<1x1x32xf32>
    %319 = vector.shape_cast %318 : vector<1x1x32xf32> to vector<1x32xf32>
    %320 = vector.broadcast %319 : vector<1x32xf32> to vector<16x32xf32>
    %321 = arith.addf %317, %320 : vector<16x32xf32>
    %322 = vector.shape_cast %307 : vector<16x32xf32> to vector<2x8x32xf32>
    %cst_214 = arith.constant 0.176776692 : f32
    %323 = vector.broadcast %cst_214 : f32 to vector<2x8x32xf32>
    %324 = arith.mulf %322, %323 : vector<2x8x32xf32>
    %325 = vector.shape_cast %314 : vector<16x32xf32> to vector<2x8x32xf32>
    %326 = vector.shape_cast %321 : vector<16x32xf32> to vector<2x8x32xf32>
    "tpu.trace_start"() <{level = 10 : i32, message = "bqd,bkd->bqk"}> : () -> ()
    %cst_215 = arith.constant dense<0.000000e+00> : vector<2x8x8xf32>
    %327 = tpu.matmul %324, %325, %cst_215 {dimension_numbers = #tpu.dot_dimension_numbers<[2], [2], [1], [1], [0, 0, 0, 1, 1, 1], [0], [0]>} : vector<2x8x32xf32>, vector<2x8x32xf32>, vector<2x8x8xf32> -> vector<2x8x8xf32>
    "tpu.trace_stop"() : () -> ()
    %cst_216 = arith.constant dense<0xFF800000> : vector<2x8xf32>
    %328 = vector.multi_reduction <maximumf>, %327, %cst_216 [2] : vector<2x8x8xf32> to vector<2x8xf32>
    %329 = vector.shape_cast %328 : vector<2x8xf32> to vector<2x8x1xf32>
    %330 = vector.broadcast %329 : vector<2x8x1xf32> to vector<2x8x8xf32>
    %331 = arith.subf %327, %330 : vector<2x8x8xf32>
    %332 = math.exp %331 : vector<2x8x8xf32>
    %cst_217 = arith.constant dense<0.000000e+00> : vector<2x8xf32>
    %333 = vector.multi_reduction <add>, %332, %cst_217 [2] : vector<2x8x8xf32> to vector<2x8xf32>
    %334 = vector.shape_cast %333 : vector<2x8xf32> to vector<2x8x1xf32>
    %335 = tpu.reciprocal %334 {approx = true} : vector<2x8x1xf32> -> vector<2x8x1xf32>
    %336 = vector.broadcast %335 : vector<2x8x1xf32> to vector<2x8x8xf32>
    %337 = arith.mulf %332, %336 : vector<2x8x8xf32>
    "tpu.trace_start"() <{level = 10 : i32, message = "bqk,bkd->bqd"}> : () -> ()
    %cst_218 = arith.constant dense<0.000000e+00> : vector<2x8x32xf32>
    %338 = tpu.matmul %337, %326, %cst_218 {dimension_numbers = #tpu.dot_dimension_numbers<[2], [1], [1], [2], [0, 0, 0, 1, 1, 2], [0], [0]>} : vector<2x8x8xf32>, vector<2x8x32xf32>, vector<2x8x32xf32> -> vector<2x8x32xf32>
    "tpu.trace_stop"() : () -> ()
    %339 = vector.shape_cast %338 : vector<2x8x32xf32> to vector<16x32xf32>
    %c5_219 = arith.constant 5 : index
    %c0_220 = arith.constant 0 : index
    %c0_221 = arith.constant 0 : index
    %340 = vector.load %arg9[%c5_219, %c0_220, %c0_221] : memref<8x32x128xf32, #tpu.memory_space<vmem>>, vector<1x32x128xf32>
    %341 = vector.shape_cast %340 : vector<1x32x128xf32> to vector<32x128xf32>
    %cst_222 = arith.constant dense<0.000000e+00> : vector<16x128xf32>
    %342 = tpu.matmul %339, %341, %cst_222 {dimension_numbers = #tpu.dot_dimension_numbers<[1], [0], [0], [1], [0, 0, 1, 1], [], []>} : vector<16x32xf32>, vector<32x128xf32>, vector<16x128xf32> -> vector<16x128xf32>
    %343 = arith.addf %300, %342 : vector<16x128xf32>
    %c6 = arith.constant 6 : index
    %c0_223 = arith.constant 0 : index
    %c0_224 = arith.constant 0 : index
    %344 = vector.load %arg3[%c6, %c0_223, %c0_224] : memref<8x128x32xf32, #tpu.memory_space<vmem>>, vector<1x128x32xf32>
    %345 = vector.shape_cast %344 : vector<1x128x32xf32> to vector<128x32xf32>
    %cst_225 = arith.constant dense<0.000000e+00> : vector<16x32xf32>
    %346 = tpu.matmul %254, %345, %cst_225 {dimension_numbers = #tpu.dot_dimension_numbers<[1], [0], [0], [1], [0, 0, 1, 1], [], []>} : vector<16x128xf32>, vector<128x32xf32>, vector<16x32xf32> -> vector<16x32xf32>
    %c6_226 = arith.constant 6 : index
    %c0_227 = arith.constant 0 : index
    %c0_228 = arith.constant 0 : index
    %347 = vector.load %arg6[%c6_226, %c0_227, %c0_228] : memref<8x1x32xf32, #tpu.memory_space<vmem>>, vector<1x1x32xf32>
    %348 = vector.shape_cast %347 : vector<1x1x32xf32> to vector<1x32xf32>
    %349 = vector.broadcast %348 : vector<1x32xf32> to vector<16x32xf32>
    %350 = arith.addf %346, %349 : vector<16x32xf32>
    %c6_229 = arith.constant 6 : index
    %c0_230 = arith.constant 0 : index
    %c0_231 = arith.constant 0 : index
    %351 = vector.load %arg4[%c6_229, %c0_230, %c0_231] : memref<8x128x32xf32, #tpu.memory_space<vmem>>, vector<1x128x32xf32>
    %352 = vector.shape_cast %351 : vector<1x128x32xf32> to vector<128x32xf32>
    %cst_232 = arith.constant dense<0.000000e+00> : vector<16x32xf32>
    %353 = tpu.matmul %254, %352, %cst_232 {dimension_numbers = #tpu.dot_dimension_numbers<[1], [0], [0], [1], [0, 0, 1, 1], [], []>} : vector<16x128xf32>, vector<128x32xf32>, vector<16x32xf32> -> vector<16x32xf32>
    %c6_233 = arith.constant 6 : index
    %c0_234 = arith.constant 0 : index
    %c0_235 = arith.constant 0 : index
    %354 = vector.load %arg7[%c6_233, %c0_234, %c0_235] : memref<8x1x32xf32, #tpu.memory_space<vmem>>, vector<1x1x32xf32>
    %355 = vector.shape_cast %354 : vector<1x1x32xf32> to vector<1x32xf32>
    %356 = vector.broadcast %355 : vector<1x32xf32> to vector<16x32xf32>
    %357 = arith.addf %353, %356 : vector<16x32xf32>
    %c6_236 = arith.constant 6 : index
    %c0_237 = arith.constant 0 : index
    %c0_238 = arith.constant 0 : index
    %358 = vector.load %arg5[%c6_236, %c0_237, %c0_238] : memref<8x128x32xf32, #tpu.memory_space<vmem>>, vector<1x128x32xf32>
    %359 = vector.shape_cast %358 : vector<1x128x32xf32> to vector<128x32xf32>
    %cst_239 = arith.constant dense<0.000000e+00> : vector<16x32xf32>
    %360 = tpu.matmul %254, %359, %cst_239 {dimension_numbers = #tpu.dot_dimension_numbers<[1], [0], [0], [1], [0, 0, 1, 1], [], []>} : vector<16x128xf32>, vector<128x32xf32>, vector<16x32xf32> -> vector<16x32xf32>
    %c6_240 = arith.constant 6 : index
    %c0_241 = arith.constant 0 : index
    %c0_242 = arith.constant 0 : index
    %361 = vector.load %arg8[%c6_240, %c0_241, %c0_242] : memref<8x1x32xf32, #tpu.memory_space<vmem>>, vector<1x1x32xf32>
    %362 = vector.shape_cast %361 : vector<1x1x32xf32> to vector<1x32xf32>
    %363 = vector.broadcast %362 : vector<1x32xf32> to vector<16x32xf32>
    %364 = arith.addf %360, %363 : vector<16x32xf32>
    %365 = vector.shape_cast %350 : vector<16x32xf32> to vector<2x8x32xf32>
    %cst_243 = arith.constant 0.176776692 : f32
    %366 = vector.broadcast %cst_243 : f32 to vector<2x8x32xf32>
    %367 = arith.mulf %365, %366 : vector<2x8x32xf32>
    %368 = vector.shape_cast %357 : vector<16x32xf32> to vector<2x8x32xf32>
    %369 = vector.shape_cast %364 : vector<16x32xf32> to vector<2x8x32xf32>
    "tpu.trace_start"() <{level = 10 : i32, message = "bqd,bkd->bqk"}> : () -> ()
    %cst_244 = arith.constant dense<0.000000e+00> : vector<2x8x8xf32>
    %370 = tpu.matmul %367, %368, %cst_244 {dimension_numbers = #tpu.dot_dimension_numbers<[2], [2], [1], [1], [0, 0, 0, 1, 1, 1], [0], [0]>} : vector<2x8x32xf32>, vector<2x8x32xf32>, vector<2x8x8xf32> -> vector<2x8x8xf32>
    "tpu.trace_stop"() : () -> ()
    %cst_245 = arith.constant dense<0xFF800000> : vector<2x8xf32>
    %371 = vector.multi_reduction <maximumf>, %370, %cst_245 [2] : vector<2x8x8xf32> to vector<2x8xf32>
    %372 = vector.shape_cast %371 : vector<2x8xf32> to vector<2x8x1xf32>
    %373 = vector.broadcast %372 : vector<2x8x1xf32> to vector<2x8x8xf32>
    %374 = arith.subf %370, %373 : vector<2x8x8xf32>
    %375 = math.exp %374 : vector<2x8x8xf32>
    %cst_246 = arith.constant dense<0.000000e+00> : vector<2x8xf32>
    %376 = vector.multi_reduction <add>, %375, %cst_246 [2] : vector<2x8x8xf32> to vector<2x8xf32>
    %377 = vector.shape_cast %376 : vector<2x8xf32> to vector<2x8x1xf32>
    %378 = tpu.reciprocal %377 {approx = true} : vector<2x8x1xf32> -> vector<2x8x1xf32>
    %379 = vector.broadcast %378 : vector<2x8x1xf32> to vector<2x8x8xf32>
    %380 = arith.mulf %375, %379 : vector<2x8x8xf32>
    "tpu.trace_start"() <{level = 10 : i32, message = "bqk,bkd->bqd"}> : () -> ()
    %cst_247 = arith.constant dense<0.000000e+00> : vector<2x8x32xf32>
    %381 = tpu.matmul %380, %369, %cst_247 {dimension_numbers = #tpu.dot_dimension_numbers<[2], [1], [1], [2], [0, 0, 0, 1, 1, 2], [0], [0]>} : vector<2x8x8xf32>, vector<2x8x32xf32>, vector<2x8x32xf32> -> vector<2x8x32xf32>
    "tpu.trace_stop"() : () -> ()
    %382 = vector.shape_cast %381 : vector<2x8x32xf32> to vector<16x32xf32>
    %c6_248 = arith.constant 6 : index
    %c0_249 = arith.constant 0 : index
    %c0_250 = arith.constant 0 : index
    %383 = vector.load %arg9[%c6_248, %c0_249, %c0_250] : memref<8x32x128xf32, #tpu.memory_space<vmem>>, vector<1x32x128xf32>
    %384 = vector.shape_cast %383 : vector<1x32x128xf32> to vector<32x128xf32>
    %cst_251 = arith.constant dense<0.000000e+00> : vector<16x128xf32>
    %385 = tpu.matmul %382, %384, %cst_251 {dimension_numbers = #tpu.dot_dimension_numbers<[1], [0], [0], [1], [0, 0, 1, 1], [], []>} : vector<16x32xf32>, vector<32x128xf32>, vector<16x128xf32> -> vector<16x128xf32>
    %386 = arith.addf %343, %385 : vector<16x128xf32>
    %c7 = arith.constant 7 : index
    %c0_252 = arith.constant 0 : index
    %c0_253 = arith.constant 0 : index
    %387 = vector.load %arg3[%c7, %c0_252, %c0_253] : memref<8x128x32xf32, #tpu.memory_space<vmem>>, vector<1x128x32xf32>
    %388 = vector.shape_cast %387 : vector<1x128x32xf32> to vector<128x32xf32>
    %cst_254 = arith.constant dense<0.000000e+00> : vector<16x32xf32>
    %389 = tpu.matmul %254, %388, %cst_254 {dimension_numbers = #tpu.dot_dimension_numbers<[1], [0], [0], [1], [0, 0, 1, 1], [], []>} : vector<16x128xf32>, vector<128x32xf32>, vector<16x32xf32> -> vector<16x32xf32>
    %c7_255 = arith.constant 7 : index
    %c0_256 = arith.constant 0 : index
    %c0_257 = arith.constant 0 : index
    %390 = vector.load %arg6[%c7_255, %c0_256, %c0_257] : memref<8x1x32xf32, #tpu.memory_space<vmem>>, vector<1x1x32xf32>
    %391 = vector.shape_cast %390 : vector<1x1x32xf32> to vector<1x32xf32>
    %392 = vector.broadcast %391 : vector<1x32xf32> to vector<16x32xf32>
    %393 = arith.addf %389, %392 : vector<16x32xf32>
    %c7_258 = arith.constant 7 : index
    %c0_259 = arith.constant 0 : index
    %c0_260 = arith.constant 0 : index
    %394 = vector.load %arg4[%c7_258, %c0_259, %c0_260] : memref<8x128x32xf32, #tpu.memory_space<vmem>>, vector<1x128x32xf32>
    %395 = vector.shape_cast %394 : vector<1x128x32xf32> to vector<128x32xf32>
    %cst_261 = arith.constant dense<0.000000e+00> : vector<16x32xf32>
    %396 = tpu.matmul %254, %395, %cst_261 {dimension_numbers = #tpu.dot_dimension_numbers<[1], [0], [0], [1], [0, 0, 1, 1], [], []>} : vector<16x128xf32>, vector<128x32xf32>, vector<16x32xf32> -> vector<16x32xf32>
    %c7_262 = arith.constant 7 : index
    %c0_263 = arith.constant 0 : index
    %c0_264 = arith.constant 0 : index
    %397 = vector.load %arg7[%c7_262, %c0_263, %c0_264] : memref<8x1x32xf32, #tpu.memory_space<vmem>>, vector<1x1x32xf32>
    %398 = vector.shape_cast %397 : vector<1x1x32xf32> to vector<1x32xf32>
    %399 = vector.broadcast %398 : vector<1x32xf32> to vector<16x32xf32>
    %400 = arith.addf %396, %399 : vector<16x32xf32>
    %c7_265 = arith.constant 7 : index
    %c0_266 = arith.constant 0 : index
    %c0_267 = arith.constant 0 : index
    %401 = vector.load %arg5[%c7_265, %c0_266, %c0_267] : memref<8x128x32xf32, #tpu.memory_space<vmem>>, vector<1x128x32xf32>
    %402 = vector.shape_cast %401 : vector<1x128x32xf32> to vector<128x32xf32>
    %cst_268 = arith.constant dense<0.000000e+00> : vector<16x32xf32>
    %403 = tpu.matmul %254, %402, %cst_268 {dimension_numbers = #tpu.dot_dimension_numbers<[1], [0], [0], [1], [0, 0, 1, 1], [], []>} : vector<16x128xf32>, vector<128x32xf32>, vector<16x32xf32> -> vector<16x32xf32>
    %c7_269 = arith.constant 7 : index
    %c0_270 = arith.constant 0 : index
    %c0_271 = arith.constant 0 : index
    %404 = vector.load %arg8[%c7_269, %c0_270, %c0_271] : memref<8x1x32xf32, #tpu.memory_space<vmem>>, vector<1x1x32xf32>
    %405 = vector.shape_cast %404 : vector<1x1x32xf32> to vector<1x32xf32>
    %406 = vector.broadcast %405 : vector<1x32xf32> to vector<16x32xf32>
    %407 = arith.addf %403, %406 : vector<16x32xf32>
    %408 = vector.shape_cast %393 : vector<16x32xf32> to vector<2x8x32xf32>
    %cst_272 = arith.constant 0.176776692 : f32
    %409 = vector.broadcast %cst_272 : f32 to vector<2x8x32xf32>
    %410 = arith.mulf %408, %409 : vector<2x8x32xf32>
    %411 = vector.shape_cast %400 : vector<16x32xf32> to vector<2x8x32xf32>
    %412 = vector.shape_cast %407 : vector<16x32xf32> to vector<2x8x32xf32>
    "tpu.trace_start"() <{level = 10 : i32, message = "bqd,bkd->bqk"}> : () -> ()
    %cst_273 = arith.constant dense<0.000000e+00> : vector<2x8x8xf32>
    %413 = tpu.matmul %410, %411, %cst_273 {dimension_numbers = #tpu.dot_dimension_numbers<[2], [2], [1], [1], [0, 0, 0, 1, 1, 1], [0], [0]>} : vector<2x8x32xf32>, vector<2x8x32xf32>, vector<2x8x8xf32> -> vector<2x8x8xf32>
    "tpu.trace_stop"() : () -> ()
    %cst_274 = arith.constant dense<0xFF800000> : vector<2x8xf32>
    %414 = vector.multi_reduction <maximumf>, %413, %cst_274 [2] : vector<2x8x8xf32> to vector<2x8xf32>
    %415 = vector.shape_cast %414 : vector<2x8xf32> to vector<2x8x1xf32>
    %416 = vector.broadcast %415 : vector<2x8x1xf32> to vector<2x8x8xf32>
    %417 = arith.subf %413, %416 : vector<2x8x8xf32>
    %418 = math.exp %417 : vector<2x8x8xf32>
    %cst_275 = arith.constant dense<0.000000e+00> : vector<2x8xf32>
    %419 = vector.multi_reduction <add>, %418, %cst_275 [2] : vector<2x8x8xf32> to vector<2x8xf32>
    %420 = vector.shape_cast %419 : vector<2x8xf32> to vector<2x8x1xf32>
    %421 = tpu.reciprocal %420 {approx = true} : vector<2x8x1xf32> -> vector<2x8x1xf32>
    %422 = vector.broadcast %421 : vector<2x8x1xf32> to vector<2x8x8xf32>
    %423 = arith.mulf %418, %422 : vector<2x8x8xf32>
    "tpu.trace_start"() <{level = 10 : i32, message = "bqk,bkd->bqd"}> : () -> ()
    %cst_276 = arith.constant dense<0.000000e+00> : vector<2x8x32xf32>
    %424 = tpu.matmul %423, %412, %cst_276 {dimension_numbers = #tpu.dot_dimension_numbers<[2], [1], [1], [2], [0, 0, 0, 1, 1, 2], [0], [0]>} : vector<2x8x8xf32>, vector<2x8x32xf32>, vector<2x8x32xf32> -> vector<2x8x32xf32>
    "tpu.trace_stop"() : () -> ()
    %425 = vector.shape_cast %424 : vector<2x8x32xf32> to vector<16x32xf32>
    %c7_277 = arith.constant 7 : index
    %c0_278 = arith.constant 0 : index
    %c0_279 = arith.constant 0 : index
    %426 = vector.load %arg9[%c7_277, %c0_278, %c0_279] : memref<8x32x128xf32, #tpu.memory_space<vmem>>, vector<1x32x128xf32>
    %427 = vector.shape_cast %426 : vector<1x32x128xf32> to vector<32x128xf32>
    %cst_280 = arith.constant dense<0.000000e+00> : vector<16x128xf32>
    %428 = tpu.matmul %425, %427, %cst_280 {dimension_numbers = #tpu.dot_dimension_numbers<[1], [0], [0], [1], [0, 0, 1, 1], [], []>} : vector<16x32xf32>, vector<32x128xf32>, vector<16x128xf32> -> vector<16x128xf32>
    %429 = arith.addf %386, %428 : vector<16x128xf32>
    %430 = arith.addf %254, %429 : vector<16x128xf32>
    %c1_281 = arith.constant 1 : index
    %c0_282 = arith.constant 0 : index
    %c0_283 = arith.constant 0 : index
    %431 = vector.load %arg11[%c1_281, %c0_282, %c0_283] : memref<2x1x128xf32, #tpu.memory_space<vmem>>, vector<1x1x128xf32>
    %432 = vector.shape_cast %431 : vector<1x1x128xf32> to vector<1x128xf32>
    %c1_284 = arith.constant 1 : index
    %c0_285 = arith.constant 0 : index
    %c0_286 = arith.constant 0 : index
    %433 = vector.load %arg12[%c1_284, %c0_285, %c0_286] : memref<2x1x128xf32, #tpu.memory_space<vmem>>, vector<1x1x128xf32>
    %434 = vector.shape_cast %433 : vector<1x1x128xf32> to vector<1x128xf32>
    %cst_287 = arith.constant dense<0.000000e+00> : vector<16xf32>
    %435 = vector.multi_reduction <add>, %430, %cst_287 [1] : vector<16x128xf32> to vector<16xf32>
    %436 = vector.shape_cast %435 : vector<16xf32> to vector<16x1xf32>
    %cst_288 = arith.constant 1.280000e+02 : f32
    %437 = vector.broadcast %cst_288 : f32 to vector<16x1xf32>
    %438 = arith.divf %436, %437 : vector<16x1xf32>
    %439 = vector.broadcast %438 : vector<16x1xf32> to vector<16x128xf32>
    %440 = arith.subf %430, %439 : vector<16x128xf32>
    %441 = arith.mulf %440, %440 : vector<16x128xf32>
    %cst_289 = arith.constant dense<0.000000e+00> : vector<16xf32>
    %442 = vector.multi_reduction <add>, %441, %cst_289 [1] : vector<16x128xf32> to vector<16xf32>
    %443 = vector.shape_cast %442 : vector<16xf32> to vector<16x1xf32>
    %cst_290 = arith.constant 1.280000e+02 : f32
    %444 = vector.broadcast %cst_290 : f32 to vector<16x1xf32>
    %445 = arith.divf %443, %444 : vector<16x1xf32>
    %446 = vector.broadcast %438 : vector<16x1xf32> to vector<16x128xf32>
    %447 = arith.subf %430, %446 : vector<16x128xf32>
    %cst_291 = arith.constant 9.99999974E-6 : f32
    %448 = vector.broadcast %cst_291 : f32 to vector<16x1xf32>
    %449 = arith.addf %445, %448 : vector<16x1xf32>
    %450 = math.rsqrt %449 : vector<16x1xf32>
    %451 = vector.broadcast %450 : vector<16x1xf32> to vector<16x128xf32>
    %452 = arith.mulf %447, %451 : vector<16x128xf32>
    %453 = vector.broadcast %432 : vector<1x128xf32> to vector<16x128xf32>
    %454 = arith.mulf %452, %453 : vector<16x128xf32>
    %455 = vector.broadcast %434 : vector<1x128xf32> to vector<16x128xf32>
    %456 = arith.addf %454, %455 : vector<16x128xf32>
    %c1_292 = arith.constant 1 : index
    %c0_293 = arith.constant 0 : index
    %c0_294 = arith.constant 0 : index
    %457 = vector.load %arg13[%c1_292, %c0_293, %c0_294] : memref<2x128x512xf32, #tpu.memory_space<vmem>>, vector<1x128x512xf32>
    %458 = vector.shape_cast %457 : vector<1x128x512xf32> to vector<128x512xf32>
    %cst_295 = arith.constant dense<0.000000e+00> : vector<16x512xf32>
    %459 = tpu.matmul %456, %458, %cst_295 {dimension_numbers = #tpu.dot_dimension_numbers<[1], [0], [0], [1], [0, 0, 1, 1], [], []>} : vector<16x128xf32>, vector<128x512xf32>, vector<16x512xf32> -> vector<16x512xf32>
    %c1_296 = arith.constant 1 : index
    %c0_297 = arith.constant 0 : index
    %c0_298 = arith.constant 0 : index
    %460 = vector.load %arg14[%c1_296, %c0_297, %c0_298] : memref<2x1x512xf32, #tpu.memory_space<vmem>>, vector<1x1x512xf32>
    %461 = vector.shape_cast %460 : vector<1x1x512xf32> to vector<1x512xf32>
    %462 = vector.broadcast %461 : vector<1x512xf32> to vector<16x512xf32>
    %463 = arith.addf %459, %462 : vector<16x512xf32>
    %cst_299 = arith.constant 0.000000e+00 : f32
    %464 = vector.broadcast %cst_299 : f32 to vector<16x512xf32>
    %465 = arith.maximumf %463, %464 : vector<16x512xf32>
    %c1_300 = arith.constant 1 : index
    %c0_301 = arith.constant 0 : index
    %c0_302 = arith.constant 0 : index
    %466 = vector.load %arg15[%c1_300, %c0_301, %c0_302] : memref<2x512x128xf32, #tpu.memory_space<vmem>>, vector<1x512x128xf32>
    %467 = vector.shape_cast %466 : vector<1x512x128xf32> to vector<512x128xf32>
    %cst_303 = arith.constant dense<0.000000e+00> : vector<16x128xf32>
    %468 = tpu.matmul %465, %467, %cst_303 {dimension_numbers = #tpu.dot_dimension_numbers<[1], [0], [0], [1], [0, 0, 1, 1], [], []>} : vector<16x512xf32>, vector<512x128xf32>, vector<16x128xf32> -> vector<16x128xf32>
    %c1_304 = arith.constant 1 : index
    %c0_305 = arith.constant 0 : index
    %c0_306 = arith.constant 0 : index
    %469 = vector.load %arg16[%c1_304, %c0_305, %c0_306] : memref<2x1x128xf32, #tpu.memory_space<vmem>>, vector<1x1x128xf32>
    %470 = vector.shape_cast %469 : vector<1x1x128xf32> to vector<1x128xf32>
    %471 = vector.broadcast %470 : vector<1x128xf32> to vector<16x128xf32>
    %472 = arith.addf %468, %471 : vector<16x128xf32>
    %473 = arith.addf %456, %472 : vector<16x128xf32>
    %c1_307 = arith.constant 1 : index
    %c0_308 = arith.constant 0 : index
    %c0_309 = arith.constant 0 : index
    %474 = vector.load %arg17[%c1_307, %c0_308, %c0_309] : memref<2x1x128xf32, #tpu.memory_space<vmem>>, vector<1x1x128xf32>
    %475 = vector.shape_cast %474 : vector<1x1x128xf32> to vector<1x128xf32>
    %c1_310 = arith.constant 1 : index
    %c0_311 = arith.constant 0 : index
    %c0_312 = arith.constant 0 : index
    %476 = vector.load %arg18[%c1_310, %c0_311, %c0_312] : memref<2x1x128xf32, #tpu.memory_space<vmem>>, vector<1x1x128xf32>
    %477 = vector.shape_cast %476 : vector<1x1x128xf32> to vector<1x128xf32>
    %cst_313 = arith.constant dense<0.000000e+00> : vector<16xf32>
    %478 = vector.multi_reduction <add>, %473, %cst_313 [1] : vector<16x128xf32> to vector<16xf32>
    %479 = vector.shape_cast %478 : vector<16xf32> to vector<16x1xf32>
    %cst_314 = arith.constant 1.280000e+02 : f32
    %480 = vector.broadcast %cst_314 : f32 to vector<16x1xf32>
    %481 = arith.divf %479, %480 : vector<16x1xf32>
    %482 = vector.broadcast %481 : vector<16x1xf32> to vector<16x128xf32>
    %483 = arith.subf %473, %482 : vector<16x128xf32>
    %484 = arith.mulf %483, %483 : vector<16x128xf32>
    %cst_315 = arith.constant dense<0.000000e+00> : vector<16xf32>
    %485 = vector.multi_reduction <add>, %484, %cst_315 [1] : vector<16x128xf32> to vector<16xf32>
    %486 = vector.shape_cast %485 : vector<16xf32> to vector<16x1xf32>
    %cst_316 = arith.constant 1.280000e+02 : f32
    %487 = vector.broadcast %cst_316 : f32 to vector<16x1xf32>
    %488 = arith.divf %486, %487 : vector<16x1xf32>
    %489 = vector.broadcast %481 : vector<16x1xf32> to vector<16x128xf32>
    %490 = arith.subf %473, %489 : vector<16x128xf32>
    %cst_317 = arith.constant 9.99999974E-6 : f32
    %491 = vector.broadcast %cst_317 : f32 to vector<16x1xf32>
    %492 = arith.addf %488, %491 : vector<16x1xf32>
    %493 = math.rsqrt %492 : vector<16x1xf32>
    %494 = vector.broadcast %493 : vector<16x1xf32> to vector<16x128xf32>
    %495 = arith.mulf %490, %494 : vector<16x128xf32>
    %496 = vector.broadcast %475 : vector<1x128xf32> to vector<16x128xf32>
    %497 = arith.mulf %495, %496 : vector<16x128xf32>
    %498 = vector.broadcast %477 : vector<1x128xf32> to vector<16x128xf32>
    %499 = arith.addf %497, %498 : vector<16x128xf32>
    %500 = vector.shape_cast %499 : vector<16x128xf32> to vector<2x8x128xf32>
    %501 = vector.extract_strided_slice %500 {offsets = [0, 7, 0], sizes = [2, 1, 128], strides = [1, 1, 1]} : vector<2x8x128xf32> to vector<2x1x128xf32>
    %502 = vector.shape_cast %501 : vector<2x1x128xf32> to vector<2x128xf32>
    %c0_318 = arith.constant 0 : index
    %c0_319 = arith.constant 0 : index
    %503 = vector.load %arg19[%c0_318, %c0_319] : memref<128x16xf32, #tpu.memory_space<vmem>>, vector<128x16xf32>
    %cst_320 = arith.constant dense<0.000000e+00> : vector<2x16xf32>
    %504 = tpu.matmul %502, %503, %cst_320 {dimension_numbers = #tpu.dot_dimension_numbers<[1], [0], [0], [1], [0, 0, 1, 1], [], []>} : vector<2x128xf32>, vector<128x16xf32>, vector<2x16xf32> -> vector<2x16xf32>
    %c0_321 = arith.constant 0 : index
    %c0_322 = arith.constant 0 : index
    %505 = vector.load %arg20[%c0_321, %c0_322] : memref<1x16xf32, #tpu.memory_space<vmem>>, vector<1x16xf32>
    %506 = vector.broadcast %505 : vector<1x16xf32> to vector<2x16xf32>
    %507 = arith.addf %504, %506 : vector<2x16xf32>
    %c0_323 = arith.constant 0 : index
    %c0_324 = arith.constant 0 : index
    %508 = vector.load %arg21[%c0_323, %c0_324] : memref<2x16xf32, #tpu.memory_space<vmem>>, vector<2x16xf32>
    tpu.vector_store %arg21[%c0_323, %c0_324], %507 {strides = array<i32>} : memref<2x16xf32, #tpu.memory_space<vmem>>, vector<2x16xf32>,
    return
  }
}

</mosaic_0001>

<bundles_post_ra>
// kernel: _lambda_.1
= control target key start
LH: loop header
LB: loop body
LE: loop exit
PB: predicated region body
PF: predicated region fallthrough
CT: control target
= control target key end

     0   :  { %s10158_s0 = inlined_call_operand.vmem [shape: s32[16,1], index: 0, kind: input, shape index: {}]   ;;  %s10159_s1 = inlined_call_operand.vmem [shape: f32[16,128], index: 1, kind: input, shape index: {}]   ;;  %s10160_s2 = inlined_call_operand.vmem [shape: f32[16,128], index: 2, kind: input, shape index: {}]   ;;  %s10161_s3 = inlined_call_operand.hbm [shape: f32[8,128,32], index: 3, kind: input, shape index: {}]   ;;  %s10162_s4 = inlined_call_operand.hbm [shape: f32[8,128,32], index: 4, kind: input, shape index: {}]   ;;  %s10163_s5 = inlined_call_operand.hbm [shape: f32[8,128,32], index: 5, kind: input, shape index: {}]   ;;  %s10164_s6 = inlined_call_operand.vmem [shape: f32[8,1,32], index: 6, kind: input, shape index: {}, may-alias: {6,7,8}]   ;;  %s10165_s7 = inlined_call_operand.vmem [shape: f32[8,1,32], index: 7, kind: input, shape index: {}, may-alias: {6,7,8}]   ;;  %s10166_s8 = inlined_call_operand.vmem [shape: f32[8,1,32], index: 8, kind: input, shape index: {}, may-alias: {6,7,8}]   ;;  %s10167_s9 = inlined_call_operand.hbm [shape: f32[8,32,128], index: 9, kind: input, shape index: {}]   ;;  %s10168_s10 = inlined_call_operand.vmem [shape: f32[2,1,128], index: 10, kind: input, shape index: {}, may-alias: {10,12,16,18}]   ;;  %s10169_s11 = inlined_call_operand.vmem [shape: f32[2,1,128], index: 11, kind: input, shape index: {}, may-alias: {11,17}]   ;;  %s10170_s12 = inlined_call_operand.vmem [shape: f32[2,1,128], index: 12, kind: input, shape index: {}, may-alias: {10,12,16,18}]   ;;  %s10171_s13 = inlined_call_operand.hbm [shape: f32[2,128,512], index: 13, kind: input, shape index: {}]   ;;  %s10172_s14 = inlined_call_operand.vmem [shape: f32[2,1,512], index: 14, kind: input, shape index: {}]   ;;  %s10173_s15 = inlined_call_operand.hbm [shape: f32[2,512,128], index: 15, kind: input, shape index: {}]   ;;  %s10174_s16 = inlined_call_operand.vmem [shape: f32[2,1,128], index: 16, kind: input, shape index: {}, may-alias: {10,12,16,18}]   ;;  %s10175_s17 = inlined_call_operand.vmem [shape: f32[2,1,128], index: 17, kind: input, shape index: {}, may-alias: {11,17}]   ;;  %s10176_s18 = inlined_call_operand.vmem [shape: f32[2,1,128], index: 18, kind: input, shape index: {}, may-alias: {10,12,16,18}]   ;;  %s10177_s19 = inlined_call_operand.hbm [shape: f32[128,16], index: 19, kind: input, shape index: {}]   ;;  %s10178_s20 = inlined_call_operand.vmem [shape: f32[1,16], index: 20, kind: input, shape index: {}]   ;;  %s10179_s21 = inlined_call_operand.hbm [shape: f32[2,16], index: 21, kind: output, shape index: {}]  }
   0x1   :  { %10183 = sst [smem:[#allocation20_spill]] %s10158_s0 }
   0x2   :  { %10184 = sst [smem:[#allocation21_spill]] %s10159_s1 }
   0x3   :  { %10185 = sst [smem:[#allocation22_spill]] %s10160_s2 }
   0x4   :  { %10186 = sst [smem:[#allocation23_spill]] %s10161_s3 }
   0x5   :  { %10187 = sst [smem:[#allocation24_spill]] %s10162_s4 }
   0x6   :  { %10188 = sst [smem:[#allocation25_spill]] %s10163_s5 }
   0x7   :  { %26 = vsyncpa [#allocation3], 0 }
   0x8   :  { %27 = vsyncpa [#allocation6], 0 }
   0x9   :  { %28 = vsyncpa [#allocation9], 0 }
   0xa   :  { %29 = vsyncpa [#allocation12], 0 }
   0xb   :  { %30 = vsyncpa [#allocation4], 0  ;;  %s9437_s2 = smov [#allocation5]   ;;  %s9438_s26 = smov [#allocation8]  }
   0xc   :  { %s54_s25 = sshll.u32 %s9437_s2, 4  ;;  %s84_s27 = sshll.u32 %s9438_s26, 4  ;;  %s55_s25 = int_to_ptr.vmem [resolvable:$true] %s54_s25  ;;  %s85_s27 = int_to_ptr.vmem [resolvable:$true] %s84_s27 }
   0xd   :  { %s9275_s3 = scalar_lea.vmem %s55_s25, 16384  ;;  %p9280_p1 = scmp.lt.s32.totalorder %s55_s25, %s55_s25 }
   0xe   :  { %p9276_p0 = scmp.ne.s32.totalorder %s55_s25, %s9275_s3  ;;  %p9281_p2 = scmp.lt.s32.totalorder %s9275_s3, %s9275_s3 }
  0x10   :  { %p9282_p3 = por %p9281_p2, %p9280_p1 }
  0x12   :  { %p9283_p4 = pnand %p9282_p3, %p9276_p0 }
  0x14   :  { %9286 = shalt.err (!%p9283_p4)
}
  0x15   :  { %s9439_s28 = smov 128   ;;  %s9440_s29 = smov 8  }
  0x16   :  { %s10189_s30 = sld [smem:[#allocation24_spill]]  ;;  %s9295_s5 = scalar_lea.vmem %s85_s27, 4096 }
  0x17   :  { %p9296_p5 = scmp.ne.s32.totalorder %s85_s27, %s9295_s5  ;;  %p9300_p6 = scmp.lt.s32.totalorder %s85_s27, %s85_s27 }
  0x18   :  { %p9301_p7 = scmp.lt.s32.totalorder %s9295_s5, %s9295_s5 }
  0x1a   :  { %p9302_p8 = por %p9301_p7, %p9300_p6 }
  0x1c   :  { %60 = dma.hbm_to_vmem [thread:$0]  %s10189_s30, 16384, %s55_s25, [#allocation6], %s9439_s28, %s9439_s28, %s9440_s29  }
  0x1d   :  { %p9303_p9 = pnand %p9302_p8, %p9296_p5 }
  0x1f   :  { %9306 = shalt.err (!%p9303_p9)
}
  0x20   :  { %90 = dma.hbm_to_vmem [thread:$0]  %s10167_s9, 4096, %s85_s27, [#allocation9], %s9439_s28, %s9439_s28, %s9440_s29  }
  0x21   :  { %s9441_s1 = smov [#allocation11]   ;;  %s9442_s2 = smov [#allocation2]  }
  0x22   :  { %s116_s24 = sshll.u32 %s9441_s1, 4  ;;  %s42_s26 = sshll.u32 %s9442_s2, 4  ;;  %s117_s24 = int_to_ptr.vmem [resolvable:$true] %s116_s24  ;;  %s43_s26 = int_to_ptr.vmem [resolvable:$true] %s42_s26 }
  0x23   :  { %s9315_s25 = scalar_lea.vmem %s117_s24, 16384  ;;  %p9320_p11 = scmp.lt.s32.totalorder %s117_s24, %s117_s24 }
  0x24   :  { %p9316_p10 = scmp.ne.s32.totalorder %s117_s24, %s9315_s25  ;;  %p9321_p12 = scmp.lt.s32.totalorder %s9315_s25, %s9315_s25 }
  0x26   :  { %p9322_p13 = por %p9321_p12, %p9320_p11 }
  0x28   :  { %p9323_p0 = pnand %p9322_p13, %p9316_p10 }
  0x2a   :  { %9326 = shalt.err (!%p9323_p0)
}
  0x2b   :  { %122 = dma.hbm_to_vmem [thread:$0]  %s10173_s15, 16384, %s117_s24, [#allocation12], %s9439_s28, %s9439_s28, %s9440_s29  }
  0x2c   :  { %s9335_s9 = scalar_lea.vmem %s43_s26, 16384  ;;  %p9340_p2 = scmp.lt.s32.totalorder %s43_s26, %s43_s26 }
  0x2d   :  { %p9336_p1 = scmp.ne.s32.totalorder %s43_s26, %s9335_s9  ;;  %p9341_p3 = scmp.lt.s32.totalorder %s9335_s9, %s9335_s9 }
  0x2f   :  { %p9342_p4 = por %p9341_p3, %p9340_p2 }
  0x31   :  { %p9343_p5 = pnand %p9342_p4, %p9336_p1 }
  0x33   :  { %9346 = shalt.err (!%p9343_p5)
}
  0x34   :  { %s10190_s30 = sld [smem:[#allocation23_spill]]  ;;  %s9443_s5 = smov [#allocation7]  }
  0x35   :  { %s66_s22 = sshll.u32 %s9443_s5, 4  ;;  %s9444_s23 = smov [#allocation10]   ;;  %s67_s22 = int_to_ptr.vmem [resolvable:$true] %s66_s22 }
  0x36   :  { %s102_s1 = sshll.u32 %s9444_s23, 4  ;;  %s9355_s15 = scalar_lea.vmem %s67_s22, 16384  ;;  %s103_s1 = int_to_ptr.vmem [resolvable:$true] %s102_s1 }
  0x37   :  { %p9356_p6 = scmp.ne.s32.totalorder %s67_s22, %s9355_s15  ;;  %p9360_p7 = scmp.lt.s32.totalorder %s67_s22, %s67_s22 }
  0x38   :  { %p9361_p8 = scmp.lt.s32.totalorder %s9355_s15, %s9355_s15 }
  0x3a   :  { %48 = dma.hbm_to_vmem [thread:$0]  %s10190_s30, 16384, %s43_s26, [#allocation3], %s9439_s28, %s9439_s28, %s9440_s29  }
  0x3b   :  { %p9362_p9 = por %p9361_p8, %p9360_p7 }
  0x3d   :  { %p9363_p10 = pnand %p9362_p9, %p9356_p6 }
  0x3f   :  { %9366 = shalt.err (!%p9363_p10)
}
  0x40   :  { %s10191_s25 = sld [smem:[#allocation25_spill]]  ;;  %s9375_s26 = scalar_lea.vmem %s103_s1, 16384 }
  0x41   :  { %p9376_p11 = scmp.ne.s32.totalorder %s103_s1, %s9375_s26  ;;  %p9380_p12 = scmp.lt.s32.totalorder %s103_s1, %s103_s1 }
  0x42   :  { %p9381_p13 = scmp.lt.s32.totalorder %s9375_s26, %s9375_s26 }
  0x44   :  { %p9382_p0 = por %p9381_p13, %p9380_p12 }
  0x46   :  { %72 = dma.hbm_to_vmem [thread:$0]  %s10191_s25, 16384, %s67_s22, [#allocation6], %s9439_s28, %s9439_s28, %s9440_s29  }
  0x47   :  { %p9383_p1 = pnand %p9382_p0, %p9376_p11 }
  0x49   :  { %9386 = shalt.err (!%p9383_p1)
}
  0x4a   :  { %s9445_s3 = smov 512   ;;  %s9446_s0 = smov 32  }
  0x4b   :  { %108 = dma.hbm_to_vmem [thread:$0]  %s10171_s13, 16384, %s103_s1, [#allocation9], %s9445_s3, %s9445_s3, %s9446_s0  }
  0x4c   :  { %s9447_s4 = smov [#allocation13]  }
  0x4d   :  { %s134_s30 = sshll.u32 %s9447_s4, 4  ;;  %s135_s30 = int_to_ptr.vmem [resolvable:$true] %s134_s30 }
  0x4e   :  { %s9395_s5 = scalar_lea.vmem %s135_s30, 2048  ;;  %p9400_p3 = scmp.lt.s32.totalorder %s135_s30, %s135_s30 }
  0x4f   :  { %p9396_p2 = scmp.ne.s32.totalorder %s135_s30, %s9395_s5  ;;  %p9401_p4 = scmp.lt.s32.totalorder %s9395_s5, %s9395_s5 }
  0x51   :  { %p9402_p5 = por %p9401_p4, %p9400_p3 }
  0x53   :  { %p9403_p6 = pnand %p9402_p5, %p9396_p2 }
  0x55   :  { %9406 = shalt.err (!%p9403_p6)
}
  0x56   :  { %140 = dma.hbm_to_vmem [thread:$0]  %s10177_s19, 2048, %s135_s30, [#allocation12], %s9439_s28, %s9439_s28, %s9440_s29  }
  0x57   :  { %9427 = dma.done.wait [#allocation3], 16384  }
  0x58   :  { %9428 = vsyncadd [#allocation3], 4294950912 }
  0x59   :  { %9429 = dma.done.wait [#allocation6], 32768  }
  0x5a   :  { %9430 = vsyncadd [#allocation6], 4294934528 }
  0x5b   :  { %9431 = dma.done.wait [#allocation9], 20480  }
  0x5c   :  { %9432 = vsyncadd [#allocation9], 4294946816 }
  0x5d   :  { %9433 = dma.done.wait [#allocation12], 18432  }
  0x5e   :  { %9434 = vsyncadd [#allocation12], 4294948864  ;;  %v9448_v0 = vmov 0   ;;  %s10192_s15 = sld [smem:[#allocation20_spill]]  ;;  %v282_v5 = vld [vmem:[#allocation2 + $0x78] sm:$0xff]  ;;  %v281_v7 = vld [vmem:[#allocation2 + $0x70] sm:$0xff]  ;;  %v166_v20 = vlaneseq }
  0x5f   :  { %9186 = vset.pattern.permute.xlu0 %v9448_v0  ;;  %s10193_s25 = sld [smem:[#allocation21_spill]]  ;;  %v380_v6 = vld [vmem:[#allocation5 + $0x78] sm:$0xff]  ;;  %8048 = vmatprep.subr.mxu1 %v282_v5  ;;  %v280_v8 = vld [vmem:[#allocation2 + $0x68] sm:$0xff]  ;;  %v279_v9 = vld [vmem:[#allocation2 + $0x60] sm:$0xff]  ;;  %vm184_vm0 = vcmask 130048   ;;  %v9449_v23 = vmov 0.0  }
  0x60   :  { %8049 = vmatpush3.msra.mxu1 %v282_v5  ;;  %v278_v10 = vld [vmem:[#allocation2 + $0x58] sm:$0xff]  ;;  %v277_v11 = vld [vmem:[#allocation2 + $0x50] sm:$0xff]  ;;  %v276_v12 = vld [vmem:[#allocation2 + $0x48] sm:$0xff]  ;;  %v167_v21 = vand.u32 127, %v166_v20  ;;  %s10194_s9 = sld [smem:[#allocation22_spill]]  ;;  %vm9450_vm3 = vmmov 0  }
  0x61   :  { %8050 = vmatprep.subr.mxu1 %v281_v7  ;;  %v275_v13 = vld [vmem:[#allocation2 + $0x40] sm:$0xff]  ;;  %v274_v14 = vld [vmem:[#allocation2 + $0x38] sm:$0xff]  ;;  %v273_v15 = vld [vmem:[#allocation2 + $0x30] sm:$0xff]  ;;  %vm563_vm4 = vcmask 261120   ;;  %vm716_vm5 = vcmask 64512   ;;  %vm7098_vm6 = vcmask 1041409  }
  0x62   :  { %8051 = vmatpush3.msra.mxu1 %v281_v7  ;;  %v272_v16 = vld [vmem:[#allocation2 + $0x28] sm:$0xff]  ;;  %v271_v17 = vld [vmem:[#allocation2 + $0x20] sm:$0xff]  ;;  %v270_v18 = vld [vmem:[#allocation2 + $0x18] sm:$0xff]  ;;  %s9451_s29 = smov [#allocation14]   ;;  %vm7171_vm7 = vcmask 123904  }
  0x63   :  { %8052 = vmatprep.subr.mxu1 %v280_v8  ;;  %v269_v19 = vld [vmem:[#allocation2 + $0x10] sm:$0xff]  ;;  %v378_v28 = vld [vmem:[#allocation5 + $0x68] sm:$0xff]  ;;  %v377_v29 = vld [vmem:[#allocation5 + $0x60] sm:$0xff]  ;;  %s7179_s26 = sshll.u32 %s9451_s29, 4  ;;  %s7180_s26 = int_to_ptr.vmem [resolvable:$true] %s7179_s26 }
  0x64   :  { %v164_v1 = vld [vmem:[%s10192_s15] sm:$0xff]  ;;  %v165_v4 = vld [vmem:[%s10192_s15 + $0x8] sm:$0xff]  ;;  %8053 = vmatpush3.msra.mxu1 %v280_v8  ;;  %v379_v27 = vld [vmem:[#allocation5 + $0x70] sm:$0xff]  ;;  %p9412_p8 = scmp.lt.s32.totalorder %s7180_s26, %s7180_s26 }
  0x65   :  { %v181_v2 = vld [vmem:[%s10193_s25 + $0x8] sm:$0xff]  ;;  %169 = vperm.xlu0 %9186, %v164_v1   ;;  %v180_v3 = vld [vmem:[%s10193_s25] sm:$0xff]  ;;  %8054 = vmatprep.subr.mxu1 %v279_v9  ;;  %v376_v30 = vld [vmem:[#allocation5 + $0x58] sm:$0xff] }
  0x66   :  { %8041 = vmatprep.subr.mxu0 %v181_v2  ;;  %8055 = vmatpush3.msra.mxu1 %v279_v9  ;;  %v375_v31 = vld [vmem:[#allocation5 + $0x50] sm:$0xff]  ;;  %v374_v32 = vld [vmem:[#allocation5 + $0x48] sm:$0xff]  ;;  %v373_v33 = vld [vmem:[#allocation5 + $0x40] sm:$0xff] }
  0x67   :  { %8042 = vmatpush3.msra.mxu0 %v181_v2  ;;  %8056 = vmatprep.subr.mxu1 %v278_v10  ;;  %v372_v34 = vld [vmem:[#allocation5 + $0x38] sm:$0xff]  ;;  %v371_v35 = vld [vmem:[#allocation5 + $0x30] sm:$0xff]  ;;  %v370_v36 = vld [vmem:[#allocation5 + $0x28] sm:$0xff] }
  0x68   :  { %8043 = vmatprep.subr.mxu0 %v180_v3  ;;  %8057 = vmatpush3.msra.mxu1 %v278_v10  ;;  %v369_v37 = vld [vmem:[#allocation5 + $0x20] sm:$0xff]  ;;  %v368_v38 = vld [vmem:[#allocation5 + $0x18] sm:$0xff]  ;;  %v367_v39 = vld [vmem:[#allocation5 + $0x10] sm:$0xff] }
  0x69   :  { %8044 = vmatpush3.msra.mxu0 %v180_v3  ;;  %172 = vperm.xlu0 %9186, %v165_v4   ;;  %v268_v40 = vld [vmem:[#allocation2 + $0x8] sm:$0xff]  ;;  %v267_v42 = vld [vmem:[#allocation2] sm:$0xff]  ;;  %v478_v44 = vld [vmem:[#allocation7 + $0x78] sm:$0xff] }
  0x6a   :  { %8083 = vmatprep.subr.mxu0 %v380_v6  ;;  %8058 = vmatprep.subr.mxu1 %v277_v11  ;;  %v366_v41 = vld [vmem:[#allocation5 + $0x8] sm:$0xff]  ;;  %v365_v43 = vld [vmem:[#allocation5] sm:$0xff]  ;;  %v477_v51 = vld [vmem:[#allocation7 + $0x70] sm:$0xff] }
  0x6b   :  { %8059 = vmatpush3.msra.mxu1 %v277_v11  ;;  %v182_v46 = vld [vmem:[%s10194_s9] sm:$0xff]  ;;  %v183_v47 = vld [vmem:[%s10194_s9 + $0x8] sm:$0xff]  ;;  %v474_v54 = vld [vmem:[#allocation7 + $0x58] sm:$0xff] }
  0x6c   :  { %8060 = vmatprep.subr.mxu1 %v276_v12  ;;  %v476_v52 = vld [vmem:[#allocation7 + $0x68] sm:$0xff]  ;;  %v475_v53 = vld [vmem:[#allocation7 + $0x60] sm:$0xff]  ;;  %v473_v55 = vld [vmem:[#allocation7 + $0x50] sm:$0xff] }
  0x6d   :  { %8061 = vmatpush3.msra.mxu1 %v276_v12  ;;  %v472_v56 = vld [vmem:[#allocation7 + $0x48] sm:$0xff]  ;;  %v471_v57 = vld [vmem:[#allocation7 + $0x40] sm:$0xff]  ;;  %v470_v58 = vld [vmem:[#allocation7 + $0x38] sm:$0xff] }
  0x6e   :  { %8062 = vmatprep.subr.mxu1 %v275_v13  ;;  %v469_v59 = vld [vmem:[#allocation7 + $0x30] sm:$0xff]  ;;  %v468_v60 = vld [vmem:[#allocation7 + $0x28] sm:$0xff]  ;;  %v467_v61 = vld [vmem:[#allocation7 + $0x20] sm:$0xff] }
  0x6f   :  { %8063 = vmatpush3.msra.mxu1 %v275_v13  ;;  %v466_v62 = vld [vmem:[#allocation7 + $0x18] sm:$0xff]  ;;  %v465_v63 = vld [vmem:[#allocation7 + $0x10] sm:$0xff]  ;;  %v464_v0 = vld [vmem:[#allocation7 + $0x8] sm:$0xff] }
  0x70   :  { %8064 = vmatprep.subr.mxu1 %v274_v14  ;;  %v463_v1 = vld [vmem:[#allocation7] sm:$0xff]  ;;  %v1094_v2 = vld [vmem:[#allocation5 + $0xf8] sm:$0xff]  ;;  %v1093_v3 = vld [vmem:[#allocation5 + $0xf0] sm:$0xff] }
  0x71   :  { %8065 = vmatpush3.msra.mxu1 %v274_v14  ;;  %v1092_v4 = vld [vmem:[#allocation5 + $0xe8] sm:$0xff]  ;;  %v1091_v5 = vld [vmem:[#allocation5 + $0xe0] sm:$0xff]  ;;  %v1089_v7 = vld [vmem:[#allocation5 + $0xd0] sm:$0xff] }
  0x72   :  { %8066 = vmatprep.subr.mxu1 %v273_v15  ;;  %v1088_v8 = vld [vmem:[#allocation5 + $0xc8] sm:$0xff]  ;;  %v1087_v9 = vld [vmem:[#allocation5 + $0xc0] sm:$0xff]  ;;  %v1086_v10 = vld [vmem:[#allocation5 + $0xb8] sm:$0xff] }
  0x73   :  { %8067 = vmatpush3.msra.mxu1 %v273_v15  ;;  %v1085_v11 = vld [vmem:[#allocation5 + $0xb0] sm:$0xff]  ;;  %v1084_v12 = vld [vmem:[#allocation5 + $0xa8] sm:$0xff]  ;;  %v1083_v13 = vld [vmem:[#allocation5 + $0xa0] sm:$0xff] }
  0x74   :  { %8068 = vmatprep.subr.mxu1 %v272_v16  ;;  %v1082_v14 = vld [vmem:[#allocation5 + $0x98] sm:$0xff]  ;;  %v1081_v15 = vld [vmem:[#allocation5 + $0x90] sm:$0xff] }
  0x75   :  { %8069 = vmatpush3.msra.mxu1 %v272_v16  ;;  %v1080_v16 = vld [vmem:[#allocation5 + $0x88] sm:$0xff] }
  0x76   :  { %8070 = vmatprep.subr.mxu1 %v271_v17 }
  0x77   :  { %8071 = vmatpush3.msra.mxu1 %v271_v17  ;;  %v1079_v17 = vld [vmem:[#allocation5 + $0x80] sm:$0xff] }
  0x78   :  { %8072 = vmatprep.subr.mxu1 %v270_v18 }
  0x79   :  { %8073 = vmatpush3.msra.mxu1 %v270_v18 }
  0x7a   :  { %8074 = vmatprep.subr.mxu1 %v269_v19 }
  0x7b   :  { %8075 = vmatpush3.msra.mxu1 %v269_v19 }
  0x7c   :  { %8076 = vmatprep.subr.mxu1 %v268_v40 }
  0x7d   :  { %8077 = vmatpush3.msra.mxu1 %v268_v40 }
  0x7e   :  { %8078 = vmatprep.subr.mxu1 %v267_v42 }
  0x7f   :  { %8079 = vmatpush3.msra.mxu1 %v267_v42 }
  0x80   :  { %8118 = vmatprep.subr.mxu1 %v478_v44 }
  0xe0   :  { %v170_v22 = vpop.permute.xlu0 %169 }
  0xe1   :  { %vm174_vm1 = vcmp.eq.s32.totalorder %v170_v22, %v167_v21  ;;  %v7196_v22 = vld [vmem:[%s10165_s7] ss:$0 sm:$0xff] }
  0xe2   :  { %v7191_v24 = vsel %vm174_vm1, 1.0, %v9449_v23 }
  0xe3   :  { %8045 = vmatprep.mubr.msk.f32.mxu0 %vm184_vm0, %v7191_v24 }
  0xe4   :  { %v173_v25 = vpop.permute.xlu0 %172 }
  0xe5   :  { %vm175_vm2 = vcmp.eq.s32.totalorder %v173_v25, %v167_v21  ;;  %v7195_v21 = vld [vmem:[%s10164_s6] ss:$0 sm:$0xff] }
  0xe6   :  { %v7192_v26 = vsel %vm175_vm2, 1.0, %v9449_v23 }
  0xe7   :  { %8046 = vmatmul.mubr.msk.f32.vlgmr.msra.gmra.mxu0 %vm184_vm0, %v7192_v26 }
  0xe8   :  { %8084 = vmatpush3.msra.mxu0 %v380_v6  ;;  %v1090_v6 = vld [vmem:[#allocation5 + $0xd8] sm:$0xff] }
  0xe9   :  { %8085 = vmatprep.subr.mxu0 %v379_v27 }
  0xea   :  { %8086 = vmatpush3.msra.mxu0 %v379_v27 }
  0xeb   :  { %8087 = vmatprep.subr.mxu0 %v378_v28 }
  0xec   :  { %8088 = vmatpush3.msra.mxu0 %v378_v28 }
  0xed   :  { %8089 = vmatprep.subr.mxu0 %v377_v29 }
  0xee   :  { %8090 = vmatpush3.msra.mxu0 %v377_v29 }
  0xef   :  { %8091 = vmatprep.subr.mxu0 %v376_v30 }
  0xf0   :  { %8092 = vmatpush3.msra.mxu0 %v376_v30 }
  0xf1   :  { %8093 = vmatprep.subr.mxu0 %v375_v31 }
  0xf2   :  { %8094 = vmatpush3.msra.mxu0 %v375_v31 }
  0xf3   :  { %8095 = vmatprep.subr.mxu0 %v374_v32 }
  0xf4   :  { %8096 = vmatpush3.msra.mxu0 %v374_v32  ;;  %v7197_v32 = vld [vmem:[%s10166_s8] ss:$0 sm:$0xff] }
  0xf5   :  { %8097 = vmatprep.subr.mxu0 %v373_v33 }
  0xf6   :  { %8098 = vmatpush3.msra.mxu0 %v373_v33 }
  0xf7   :  { %8099 = vmatprep.subr.mxu0 %v372_v34 }
  0xf8   :  { %8100 = vmatpush3.msra.mxu0 %v372_v34 }
  0xf9   :  { %8101 = vmatprep.subr.mxu0 %v371_v35 }
  0xfa   :  { %8102 = vmatpush3.msra.mxu0 %v371_v35 }
  0xfb   :  { %8103 = vmatprep.subr.mxu0 %v370_v36 }
  0xfc   :  { %8104 = vmatpush3.msra.mxu0 %v370_v36 }
  0xfd   :  { %8105 = vmatprep.subr.mxu0 %v369_v37 }
  0xfe   :  { %8106 = vmatpush3.msra.mxu0 %v369_v37  ;;  %v9663_v37 = vld [vmem:[%s10165_s7 + $0x1] ss:$0 sm:$0xff] }
  0xff   :  { %8107 = vmatprep.subr.mxu0 %v368_v38 }
 0x100   :  { %8108 = vmatpush3.msra.mxu0 %v368_v38 }
 0x101   :  { %8109 = vmatprep.subr.mxu0 %v367_v39 }
 0x102   :  { %8110 = vmatpush3.msra.mxu0 %v367_v39 }
 0x103   :  { %8111 = vmatprep.subr.mxu0 %v366_v41 }
 0x104   :  { %8112 = vmatpush3.msra.mxu0 %v366_v41 }
 0x105   :  { %8113 = vmatprep.subr.mxu0 %v365_v43 }
 0x106   :  { %8114 = vmatpush3.msra.mxu0 %v365_v43 }
 0x107   :  { %8153 = vmatprep.subr.mxu0 %v9449_v23 }
 0x1a7   :  { %v8047_v45 = vpop.f32.mrf.mxu0 }
 0x1a8   :  { %v9625_v50 = vadd.f32 %v8047_v45, %v183_v47 }
 0x1a9   :  { %v257_v48 = vpop.f32.mrf.mxu0 }
 0x1aa   :  { %v9623_v49 = vadd.f32 %v257_v48, %v182_v46 }
 0x1ac   :  { %8080 = vmatprep.mubr.f32.mxu1 %v9623_v49  ;;  %8115 = vmatprep.mubr.f32.mxu0 %v9623_v49 }
 0x1ad   :  { %8081 = vmatmul.mubr.f32.vlgmr.msra.gmra.mxu1 %v9625_v50  ;;  %8116 = vmatmul.mubr.f32.vlgmr.msra.gmra.mxu0 %v9625_v50 }
 0x1ae   :  { %8119 = vmatpush3.msra.mxu1 %v478_v44  ;;  %8150 = vmatprep.mubr.f32.mxu1 %v9623_v49 }
 0x1af   :  { %8120 = vmatprep.subr.mxu1 %v477_v51  ;;  %8155 = vmatprep.mubr.msk.f32.mxu0 %vm9450_vm3, %v9449_v23 }
 0x1b0   :  { %8121 = vmatpush3.msra.mxu1 %v477_v51 }
 0x1b1   :  { %8122 = vmatprep.subr.mxu1 %v476_v52 }
 0x1b2   :  { %8123 = vmatpush3.msra.mxu1 %v476_v52 }
 0x1b3   :  { %8124 = vmatprep.subr.mxu1 %v475_v53 }
 0x1b4   :  { %8125 = vmatpush3.msra.mxu1 %v475_v53 }
 0x1b5   :  { %8126 = vmatprep.subr.mxu1 %v474_v54 }
 0x1b6   :  { %8127 = vmatpush3.msra.mxu1 %v474_v54 }
 0x1b7   :  { %8128 = vmatprep.subr.mxu1 %v473_v55 }
 0x1b8   :  { %8129 = vmatpush3.msra.mxu1 %v473_v55 }
 0x1b9   :  { %8130 = vmatprep.subr.mxu1 %v472_v56 }
 0x1ba   :  { %8131 = vmatpush3.msra.mxu1 %v472_v56 }
 0x1bb   :  { %8132 = vmatprep.subr.mxu1 %v471_v57 }
 0x1bc   :  { %8133 = vmatpush3.msra.mxu1 %v471_v57 }
 0x1bd   :  { %8134 = vmatprep.subr.mxu1 %v470_v58 }
 0x1be   :  { %8135 = vmatpush3.msra.mxu1 %v470_v58 }
 0x1bf   :  { %8136 = vmatprep.subr.mxu1 %v469_v59 }
 0x1c0   :  { %8137 = vmatpush3.msra.mxu1 %v469_v59 }
 0x1c1   :  { %8138 = vmatprep.subr.mxu1 %v468_v60 }
 0x1c2   :  { %8139 = vmatpush3.msra.mxu1 %v468_v60 }
 0x1c3   :  { %8140 = vmatprep.subr.mxu1 %v467_v61 }
 0x1c4   :  { %8141 = vmatpush3.msra.mxu1 %v467_v61 }
 0x1c5   :  { %8142 = vmatprep.subr.mxu1 %v466_v62 }
 0x1c6   :  { %8143 = vmatpush3.msra.mxu1 %v466_v62  ;;  %v888_v62 = vld [vmem:[#allocation8 + $0x18] sm:$0xff] }
 0x1c7   :  { %8144 = vmatprep.subr.mxu1 %v465_v63 }
 0x1c8   :  { %8145 = vmatpush3.msra.mxu1 %v465_v63 }
 0x1c9   :  { %8146 = vmatprep.subr.mxu1 %v464_v0 }
 0x1ca   :  { %8147 = vmatpush3.msra.mxu1 %v464_v0 }
 0x1cb   :  { %8148 = vmatprep.subr.mxu1 %v463_v1 }
 0x1cc   :  { %8149 = vmatpush3.msra.mxu1 %v463_v1  ;;  %v887_v1 = vld [vmem:[#allocation8 + $0x10] sm:$0xff] }
 0x1cd   :  { %8151 = vmatmul.mubr.f32.vlgmr.msra.gmra.mxu1 %v9625_v50  ;;  %8219 = vmatprep.subr.mxu1 %v1094_v2 }
 0x1ce   :  { %8220 = vmatpush3.msra.mxu1 %v1094_v2  ;;  %8251 = vmatprep.mubr.f32.mxu1 %v9623_v49  ;;  %v886_v2 = vld [vmem:[#allocation8 + $0x8] sm:$0xff] }
 0x1cf   :  { %8221 = vmatprep.subr.mxu1 %v1093_v3 }
 0x1d0   :  { %8222 = vmatpush3.msra.mxu1 %v1093_v3  ;;  %v885_v3 = vld [vmem:[#allocation8] sm:$0xff] }
 0x1d1   :  { %8223 = vmatprep.subr.mxu1 %v1092_v4 }
 0x1d2   :  { %8224 = vmatpush3.msra.mxu1 %v1092_v4  ;;  %v994_v4 = vld [vmem:[#allocation2 + $0xf8] sm:$0xff] }
 0x1d3   :  { %8225 = vmatprep.subr.mxu1 %v1091_v5 }
 0x1d4   :  { %8226 = vmatpush3.msra.mxu1 %v1091_v5 }
 0x1d5   :  { %8227 = vmatprep.subr.mxu1 %v1090_v6 }
 0x1d6   :  { %8228 = vmatpush3.msra.mxu1 %v1090_v6 }
 0x1d7   :  { %8229 = vmatprep.subr.mxu1 %v1089_v7 }
 0x1d8   :  { %8230 = vmatpush3.msra.mxu1 %v1089_v7 }
 0x1d9   :  { %8231 = vmatprep.subr.mxu1 %v1088_v8 }
 0x1da   :  { %8232 = vmatpush3.msra.mxu1 %v1088_v8  ;;  %v993_v8 = vld [vmem:[#allocation2 + $0xf0] sm:$0xff] }
 0x1db   :  { %8233 = vmatprep.subr.mxu1 %v1087_v9 }
 0x1dc   :  { %8234 = vmatpush3.msra.mxu1 %v1087_v9 }
 0x1dd   :  { %8235 = vmatprep.subr.mxu1 %v1086_v10 }
 0x1de   :  { %8236 = vmatpush3.msra.mxu1 %v1086_v10  ;;  %v992_v10 = vld [vmem:[#allocation2 + $0xe8] sm:$0xff] }
 0x1df   :  { %8237 = vmatprep.subr.mxu1 %v1085_v11 }
 0x1e0   :  { %8238 = vmatpush3.msra.mxu1 %v1085_v11  ;;  %v991_v11 = vld [vmem:[#allocation2 + $0xe0] sm:$0xff] }
 0x1e1   :  { %8239 = vmatprep.subr.mxu1 %v1084_v12 }
 0x1e2   :  { %8240 = vmatpush3.msra.mxu1 %v1084_v12  ;;  %v990_v12 = vld [vmem:[#allocation2 + $0xd8] sm:$0xff] }
 0x1e3   :  { %8241 = vmatprep.subr.mxu1 %v1083_v13 }
 0x1e4   :  { %8242 = vmatpush3.msra.mxu1 %v1083_v13  ;;  %v989_v13 = vld [vmem:[#allocation2 + $0xd0] sm:$0xff] }
 0x1e5   :  { %8243 = vmatprep.subr.mxu1 %v1082_v14 }
 0x1e6   :  { %8244 = vmatpush3.msra.mxu1 %v1082_v14  ;;  %v988_v14 = vld [vmem:[#allocation2 + $0xc8] sm:$0xff] }
 0x1e7   :  { %8245 = vmatprep.subr.mxu1 %v1081_v15 }
 0x1e8   :  { %8246 = vmatpush3.msra.mxu1 %v1081_v15  ;;  %v987_v15 = vld [vmem:[#allocation2 + $0xc0] sm:$0xff] }
 0x1e9   :  { %8247 = vmatprep.subr.mxu1 %v1080_v16 }
 0x1ea   :  { %8248 = vmatpush3.msra.mxu1 %v1080_v16  ;;  %v986_v16 = vld [vmem:[#allocation2 + $0xb8] sm:$0xff] }
 0x1eb   :  { %8249 = vmatprep.subr.mxu1 %v1079_v17 }
 0x1ec   :  { %8250 = vmatpush3.msra.mxu1 %v1079_v17  ;;  %v985_v17 = vld [vmem:[#allocation2 + $0xb0] sm:$0xff] }
 0x1ed   :  { %8252 = vmatmul.mubr.f32.vlgmr.msra.gmra.mxu1 %v9625_v50  ;;  %8294 = vmatprep.subr.mxu1 %v9449_v23 }
 0x1ee   :  { %8296 = vmatprep.mubr.msk.f32.mxu1 %vm9450_vm3, %v9449_v23 }
 0x26d   :  { %v8082_v18 = vpop.f32.mrf.mxu1  ;;  %v8117_v19 = vpop.f32.mrf.mxu0 }
 0x26e   :  { %v362_v29 = vadd.f32 %v8082_v18, %v7195_v21  ;;  %v460_v30 = vadd.f32 %v8117_v19, %v7196_v22  ;;  %v984_v18 = vld [vmem:[#allocation2 + $0xa8] sm:$0xff]  ;;  %v983_v19 = vld [vmem:[#allocation2 + $0xa0] sm:$0xff] }
 0x26f   :  { %v356_v24 = vpop.f32.mrf.mxu1  ;;  %v454_v25 = vpop.f32.mrf.mxu0 }
 0x270   :  { %v357_v26 = vadd.f32 %v7195_v21, %v356_v24  ;;  %v455_v27 = vadd.f32 %v7196_v22, %v454_v25  ;;  %v562_v31 = vmul.f32 0.17677669, %v362_v29  ;;  %v982_v21 = vld [vmem:[#allocation2 + $0x98] sm:$0xff]  ;;  %v981_v22 = vld [vmem:[#allocation2 + $0x90] sm:$0xff]  ;;  %v980_v24 = vld [vmem:[#allocation2 + $0x88] sm:$0xff] }
 0x271   :  { %v979_v25 = vld [vmem:[#allocation2 + $0x80] sm:$0xff] }
 0x272   :  { %v561_v28 = vmul.f32 0.17677669, %v357_v26  ;;  %8154 = vmatpush3.xpose.msk.msra.mxu0 %vm563_vm4, %v455_v27  ;;  %v1194_v26 = vld [vmem:[#allocation7 + $0xf8] sm:$0xff]  ;;  %v1193_v27 = vld [vmem:[#allocation7 + $0xf0] sm:$0xff]  ;;  %v1191_v29 = vld [vmem:[#allocation7 + $0xe0] sm:$0xff] }
 0x273   :  { %8158 = vmatprep.subr.mxu0 %v9449_v23 }
 0x275   :  { %8156 = vmatmul.mubr.msk.f32.vlgmr.msra.gmra.mxu0 %vm563_vm4, %v561_v28  ;;  %v1192_v28 = vld [vmem:[#allocation7 + $0xe8] sm:$0xff] }
 0x276   :  { %8159 = vmatpush3.xpose.msk.msra.mxu0 %vm563_vm4, %v460_v30  ;;  %8160 = vmatprep.mubr.msk.f32.mxu0 %vm9450_vm3, %v9449_v23  ;;  %v1190_v30 = vld [vmem:[#allocation7 + $0xd8] sm:$0xff] }
 0x277   :  { %8163 = vmatprep.subr.mxu0 %v9449_v23 }
 0x279   :  { %8161 = vmatmul.mubr.msk.f32.vlgmr.msra.gmra.mxu0 %vm563_vm4, %v562_v31  ;;  %v1189_v31 = vld [vmem:[#allocation7 + $0xd0] sm:$0xff] }
 0x27a   :  { %8165 = vmatprep.mubr.msk.f32.mxu0 %vm9450_vm3, %v9449_v23 }
 0x28d   :  { %v8152_v33 = vpop.f32.mrf.mxu1 }
 0x28e   :  { %v558_v34 = vadd.f32 %v8152_v33, %v7197_v32  ;;  %v1187_v33 = vld [vmem:[#allocation7 + $0xc0] sm:$0xff] }
 0x28f   :  { %v552_v35 = vpop.f32.mrf.mxu1 }
 0x290   :  { %v553_v36 = vadd.f32 %v7197_v32, %v552_v35  ;;  %v1188_v32 = vld [vmem:[#allocation7 + $0xc8] sm:$0xff]  ;;  %v1185_v35 = vld [vmem:[#allocation7 + $0xb0] sm:$0xff] }
 0x292   :  { %8164 = vmatpush3.msra.mxu0 %v553_v36  ;;  %v1184_v36 = vld [vmem:[#allocation7 + $0xa8] sm:$0xff] }
 0x293   :  { %8168 = vmatprep.subr.mxu0 %v9449_v23 }
 0x2ad   :  { %v8253_v38 = vpop.f32.mrf.mxu1 }
 0x2ae   :  { %v1175_v39 = vadd.f32 %v8253_v38, %v9663_v37  ;;  %v1183_v38 = vld [vmem:[#allocation7 + $0xa0] sm:$0xff] }
 0x2b0   :  { %8295 = vmatpush3.xpose.msk.msra.mxu1 %vm563_vm4, %v1175_v39  ;;  %v1182_v39 = vld [vmem:[#allocation7 + $0x98] sm:$0xff] }
 0x2b1   :  { %8299 = vmatprep.subr.mxu1 %v9449_v23 }
 0x335   :  { %v636_v40 = vpop.f32.mrf.mxu0 }
 0x336   :  { %v717_v41 = vsel %vm716_vm5, %v636_v40, -inf }
 0x337   :  { %718 = vmax.xlane.f32.xlu1 %v717_v41  ;;  %v8157_v42 = vpop.f32.mrf.mxu0  ;;  %v1180_v41 = vld [vmem:[#allocation7 + $0x88] sm:$0xff] }
 0x338   :  { %v1179_v42 = vld [vmem:[#allocation7 + $0x80] sm:$0xff] }
 0x339   :  { %v712_v43 = vpop.f32.mrf.mxu0 }
 0x33a   :  { %v720_v44 = vsel %vm716_vm5, %v712_v43, -inf }
 0x33b   :  { %721 = vmax.xlane.f32.xlu1 %v720_v44  ;;  %v8162_v45 = vpop.f32.mrf.mxu0 }
 0x3c0   :  { %v719_v46 = vpop.xlane.xlu1 %718 }
 0x3c1   :  { %v723_v47 = vsub.f32 %v636_v40, %v719_v46  ;;  %v1181_v40 = vld [vmem:[#allocation7 + $0x90] sm:$0xff] }
 0x3c3   :  { %v725_v48 = vmul.f32 1.442695, %v723_v47  ;;  %v7208_v47 = vld [vmem:[%s10164_s6 + $0x1] ss:$0 sm:$0xff] }
 0x3c4   :  { %v722_v51 = vpop.xlane.xlu1 %721 }
 0x3c5   :  { %9187 = vpow2.f32 %v725_v48  ;;  %v724_v52 = vsub.f32 %v712_v43, %v722_v51  ;;  %v1169_v43 = vpop.f32.mrf.mxu1 }
 0x3c6   :  { %v1170_v44 = vadd.f32 %v9663_v37, %v1169_v43  ;;  %v1900_v43 = vld [vmem:[#allocation7 + $0x158] sm:$0xff] }
 0x3c7   :  { %v727_v53 = vmul.f32 1.442695, %v724_v52 }
 0x3c9   :  { %9189 = vpow2.f32 %v727_v53 }
 0x3d2   :  { %v9188_v54 = vpop.eup %9187 }
 0x3d3   :  { %v729_v55 = vsel %vm716_vm5, %v9188_v54, 0.0 }
 0x3d4   :  { %730 = vadd.xlane.f32.xlu0 %v729_v55  ;;  %v7212_v55 = vld [vmem:[%s10166_s8 + $0x1] ss:$0 sm:$0xff] }
 0x3d6   :  { %v9190_v56 = vpop.eup %9189 }
 0x3d7   :  { %v732_v57 = vsel %vm716_vm5, %v9190_v56, 0.0 }
 0x3d8   :  { %733 = vadd.xlane.f32.xlu1 %v732_v57 }
 0x45d   :  { %v731_v58 = vpop.xlane.xlu0 %730 }
 0x45e   :  { %9191 = vrcp.f32 %v731_v58 }
 0x461   :  { %v734_v59 = vpop.xlane.xlu1 %733 }
 0x462   :  { %9193 = vrcp.f32 %v734_v59 }
 0x46b   :  { %v9192_v60 = vpop.eup %9191 }
 0x46c   :  { %v737_v61 = vmul.f32 %v9192_v60, %v9188_v54 }
 0x46e   :  { %8166 = vmatmul.mubr.msk.f32.vlgmr.msra.gmra.mxu0 %vm716_vm5, %v737_v61 }
 0x46f   :  { %v9194_v63 = vpop.eup %9193  ;;  %8169 = vmatpush3.msra.mxu0 %v558_v34  ;;  %8170 = vmatprep.mubr.msk.f32.mxu0 %vm9450_vm3, %v9449_v23  ;;  %v1186_v34 = vld [vmem:[#allocation7 + $0xb8] sm:$0xff] }
 0x470   :  { %v738_v0 = vmul.f32 %v9194_v63, %v9190_v56  ;;  %8173 = vmatprep.subr.mxu0 %v888_v62 }
 0x472   :  { %8171 = vmatmul.mubr.msk.f32.vlgmr.msra.gmra.mxu0 %vm716_vm5, %v738_v0 }
 0x473   :  { %8174 = vmatpush3.msra.mxu0 %v888_v62 }
 0x474   :  { %8175 = vmatprep.subr.mxu0 %v887_v1 }
 0x475   :  { %8176 = vmatpush3.msra.mxu0 %v887_v1 }
 0x476   :  { %8177 = vmatprep.subr.mxu0 %v886_v2 }
 0x477   :  { %8178 = vmatpush3.msra.mxu0 %v886_v2 }
 0x478   :  { %8179 = vmatprep.subr.mxu0 %v885_v3 }
 0x479   :  { %8180 = vmatpush3.msra.mxu0 %v885_v3 }
 0x47a   :  { %8184 = vmatprep.subr.mxu0 %v994_v4 }
 0x52e   :  { %v808_v5 = vpop.f32.mrf.mxu0 }
 0x52f   :  { %8181 = vmatprep.mubr.msk.f32.mxu0 %vm563_vm4, %v808_v5 }
 0x530   :  { %v8167_v6 = vpop.f32.mrf.mxu0 }
 0x532   :  { %v881_v7 = vpop.f32.mrf.mxu0 }
 0x533   :  { %8182 = vmatmul.mubr.msk.f32.vlgmr.msra.gmra.mxu0 %vm563_vm4, %v881_v7 }
 0x534   :  { %8185 = vmatpush3.msra.mxu0 %v994_v4  ;;  %v8172_v9 = vpop.f32.mrf.mxu0  ;;  %8216 = vmatprep.mubr.f32.mxu0 %v9623_v49 }
 0x535   :  { %8186 = vmatprep.subr.mxu0 %v993_v8 }
 0x536   :  { %8187 = vmatpush3.msra.mxu0 %v993_v8 }
 0x537   :  { %8188 = vmatprep.subr.mxu0 %v992_v10 }
 0x538   :  { %8189 = vmatpush3.msra.mxu0 %v992_v10 }
 0x539   :  { %8190 = vmatprep.subr.mxu0 %v991_v11 }
 0x53a   :  { %8191 = vmatpush3.msra.mxu0 %v991_v11 }
 0x53b   :  { %8192 = vmatprep.subr.mxu0 %v990_v12 }
 0x53c   :  { %8193 = vmatpush3.msra.mxu0 %v990_v12  ;;  %v1604_v12 = vld [vmem:[#allocation8 + $0x38] sm:$0xff] }
 0x53d   :  { %8194 = vmatprep.subr.mxu0 %v989_v13 }
 0x53e   :  { %8195 = vmatpush3.msra.mxu0 %v989_v13  ;;  %v1603_v13 = vld [vmem:[#allocation8 + $0x30] sm:$0xff] }
 0x53f   :  { %8196 = vmatprep.subr.mxu0 %v988_v14 }
 0x540   :  { %8197 = vmatpush3.msra.mxu0 %v988_v14 }
 0x541   :  { %8198 = vmatprep.subr.mxu0 %v987_v15 }
 0x542   :  { %8199 = vmatpush3.msra.mxu0 %v987_v15 }
 0x543   :  { %8200 = vmatprep.subr.mxu0 %v986_v16 }
 0x544   :  { %8201 = vmatpush3.msra.mxu0 %v986_v16 }
 0x545   :  { %8202 = vmatprep.subr.mxu0 %v985_v17 }
 0x546   :  { %8203 = vmatpush3.msra.mxu0 %v985_v17 }
 0x547   :  { %8204 = vmatprep.subr.mxu0 %v984_v18 }
 0x548   :  { %8205 = vmatpush3.msra.mxu0 %v984_v18  ;;  %v1704_v18 = vld [vmem:[#allocation2 + $0x178] sm:$0xff] }
 0x549   :  { %8206 = vmatprep.subr.mxu0 %v983_v19 }
 0x54a   :  { %8207 = vmatpush3.msra.mxu0 %v983_v19 }
 0x54b   :  { %8208 = vmatprep.subr.mxu0 %v982_v21 }
 0x54c   :  { %8209 = vmatpush3.msra.mxu0 %v982_v21 }
 0x54d   :  { %8210 = vmatprep.subr.mxu0 %v981_v22 }
 0x54e   :  { %8211 = vmatpush3.msra.mxu0 %v981_v22  ;;  %v1703_v22 = vld [vmem:[#allocation2 + $0x170] sm:$0xff] }
 0x54f   :  { %8212 = vmatprep.subr.mxu0 %v980_v24 }
 0x550   :  { %8213 = vmatpush3.msra.mxu0 %v980_v24  ;;  %v1702_v24 = vld [vmem:[#allocation2 + $0x168] sm:$0xff] }
 0x551   :  { %8214 = vmatprep.subr.mxu0 %v979_v25 }
 0x552   :  { %8215 = vmatpush3.msra.mxu0 %v979_v25  ;;  %v1701_v25 = vld [vmem:[#allocation2 + $0x160] sm:$0xff] }
 0x553   :  { %8217 = vmatmul.mubr.f32.vlgmr.msra.gmra.mxu0 %v9625_v50  ;;  %8254 = vmatprep.subr.mxu0 %v1194_v26 }
 0x554   :  { %8255 = vmatpush3.msra.mxu0 %v1194_v26  ;;  %8286 = vmatprep.mubr.f32.mxu0 %v9623_v49  ;;  %v1700_v26 = vld [vmem:[#allocation2 + $0x158] sm:$0xff] }
 0x555   :  { %8256 = vmatprep.subr.mxu0 %v1193_v27 }
 0x556   :  { %8257 = vmatpush3.msra.mxu0 %v1193_v27  ;;  %v1699_v27 = vld [vmem:[#allocation2 + $0x150] sm:$0xff] }
 0x557   :  { %8258 = vmatprep.subr.mxu0 %v1192_v28 }
 0x558   :  { %8259 = vmatpush3.msra.mxu0 %v1192_v28  ;;  %v1698_v28 = vld [vmem:[#allocation2 + $0x148] sm:$0xff] }
 0x559   :  { %8260 = vmatprep.subr.mxu0 %v1191_v29 }
 0x55a   :  { %8261 = vmatpush3.msra.mxu0 %v1191_v29  ;;  %v1697_v29 = vld [vmem:[#allocation2 + $0x140] sm:$0xff] }
 0x55b   :  { %8262 = vmatprep.subr.mxu0 %v1190_v30 }
 0x55c   :  { %8263 = vmatpush3.msra.mxu0 %v1190_v30  ;;  %v1696_v30 = vld [vmem:[#allocation2 + $0x138] sm:$0xff] }
 0x55d   :  { %8264 = vmatprep.subr.mxu0 %v1189_v31 }
 0x55e   :  { %8265 = vmatpush3.msra.mxu0 %v1189_v31  ;;  %v1695_v31 = vld [vmem:[#allocation2 + $0x130] sm:$0xff] }
 0x55f   :  { %8266 = vmatprep.subr.mxu0 %v1188_v32 }
 0x560   :  { %8267 = vmatpush3.msra.mxu0 %v1188_v32  ;;  %v1694_v32 = vld [vmem:[#allocation2 + $0x128] sm:$0xff] }
 0x561   :  { %8268 = vmatprep.subr.mxu0 %v1187_v33 }
 0x562   :  { %8269 = vmatpush3.msra.mxu0 %v1187_v33  ;;  %v1693_v33 = vld [vmem:[#allocation2 + $0x120] sm:$0xff] }
 0x563   :  { %8270 = vmatprep.subr.mxu0 %v1186_v34 }
 0x564   :  { %8271 = vmatpush3.msra.mxu0 %v1186_v34  ;;  %v1692_v34 = vld [vmem:[#allocation2 + $0x118] sm:$0xff] }
 0x565   :  { %8272 = vmatprep.subr.mxu0 %v1185_v35 }
 0x566   :  { %8273 = vmatpush3.msra.mxu0 %v1185_v35  ;;  %v1691_v35 = vld [vmem:[#allocation2 + $0x110] sm:$0xff] }
 0x567   :  { %8274 = vmatprep.subr.mxu0 %v1184_v36 }
 0x568   :  { %8275 = vmatpush3.msra.mxu0 %v1184_v36  ;;  %v1690_v36 = vld [vmem:[#allocation2 + $0x108] sm:$0xff] }
 0x569   :  { %8276 = vmatprep.subr.mxu0 %v1183_v38 }
 0x56a   :  { %8277 = vmatpush3.msra.mxu0 %v1183_v38  ;;  %v1689_v38 = vld [vmem:[#allocation2 + $0x100] sm:$0xff] }
 0x56b   :  { %8278 = vmatprep.subr.mxu0 %v1182_v39 }
 0x56c   :  { %8279 = vmatpush3.msra.mxu0 %v1182_v39  ;;  %v1904_v39 = vld [vmem:[#allocation7 + $0x178] sm:$0xff] }
 0x56d   :  { %8280 = vmatprep.subr.mxu0 %v1181_v40 }
 0x56e   :  { %8281 = vmatpush3.msra.mxu0 %v1181_v40  ;;  %v1903_v40 = vld [vmem:[#allocation7 + $0x170] sm:$0xff] }
 0x56f   :  { %8282 = vmatprep.subr.mxu0 %v1180_v41 }
 0x570   :  { %8283 = vmatpush3.msra.mxu0 %v1180_v41  ;;  %v1902_v41 = vld [vmem:[#allocation7 + $0x168] sm:$0xff] }
 0x571   :  { %8284 = vmatprep.subr.mxu0 %v1179_v42 }
 0x572   :  { %8285 = vmatpush3.msra.mxu0 %v1179_v42  ;;  %v1901_v42 = vld [vmem:[#allocation7 + $0x160] sm:$0xff] }
 0x573   :  { %8287 = vmatmul.mubr.f32.vlgmr.msra.gmra.mxu0 %v9625_v50  ;;  %8289 = vmatprep.subr.mxu0 %v9449_v23 }
 0x574   :  { %8290 = vmatpush3.xpose.msk.msra.mxu0 %vm563_vm4, %v1170_v44  ;;  %8291 = vmatprep.mubr.msk.f32.mxu0 %vm9450_vm3, %v9449_v23  ;;  %v1899_v44 = vld [vmem:[#allocation7 + $0x150] sm:$0xff] }
 0x575   :  { %8309 = vmatprep.subr.mxu0 %v1604_v12 }
 0x5f3   :  { %v9687_v45 = vpop.f32.mrf.mxu0 }
 0x5f5   :  { %v9689_v46 = vpop.f32.mrf.mxu0 }
 0x613   :  { %v8218_v48 = vpop.f32.mrf.mxu0 }
 0x614   :  { %v1075_v37 = vadd.f32 %v8218_v48, %v7208_v47  ;;  %v1897_v48 = vld [vmem:[#allocation7 + $0x140] sm:$0xff] }
 0x615   :  { %v1069_v51 = vpop.f32.mrf.mxu0 }
 0x616   :  { %v1279_v52 = vmul.f32 0.17677669, %v1075_v37  ;;  %v1070_v53 = vadd.f32 %v7208_v47, %v1069_v51  ;;  %v1898_v47 = vld [vmem:[#allocation7 + $0x148] sm:$0xff]  ;;  %v1896_v37 = vld [vmem:[#allocation7 + $0x138] sm:$0xff]  ;;  %v1895_v51 = vld [vmem:[#allocation7 + $0x130] sm:$0xff] }
 0x618   :  { %v1278_v54 = vmul.f32 0.17677669, %v1070_v53  ;;  %8297 = vmatmul.mubr.msk.f32.vlgmr.msra.gmra.mxu1 %vm563_vm4, %v1279_v52  ;;  %v1894_v52 = vld [vmem:[#allocation7 + $0x128] sm:$0xff]  ;;  %v1893_v53 = vld [vmem:[#allocation7 + $0x120] sm:$0xff] }
 0x619   :  { %8301 = vmatprep.mubr.msk.f32.mxu1 %vm9450_vm3, %v9449_v23 }
 0x61a   :  { %8292 = vmatmul.mubr.msk.f32.vlgmr.msra.gmra.mxu0 %vm563_vm4, %v1278_v54  ;;  %v1892_v54 = vld [vmem:[#allocation7 + $0x118] sm:$0xff] }
 0x61b   :  { %8310 = vmatpush3.msra.mxu0 %v1604_v12  ;;  %v2499_v12 = vld [vmem:[#allocation5 + $0x180] sm:$0xff] }
 0x61c   :  { %8311 = vmatprep.subr.mxu0 %v1603_v13 }
 0x61d   :  { %8312 = vmatpush3.msra.mxu0 %v1603_v13 }
 0x633   :  { %v8288_v56 = vpop.f32.mrf.mxu0 }
 0x634   :  { %v1275_v57 = vadd.f32 %v8288_v56, %v7212_v55  ;;  %v1890_v56 = vld [vmem:[#allocation7 + $0x108] sm:$0xff] }
 0x635   :  { %v1269_v58 = vpop.f32.mrf.mxu0 }
 0x636   :  { %v1270_v59 = vadd.f32 %v7212_v55, %v1269_v58  ;;  %v1891_v55 = vld [vmem:[#allocation7 + $0x110] sm:$0xff]  ;;  %v1602_v58 = vld [vmem:[#allocation8 + $0x28] sm:$0xff] }
 0x637   :  { %8313 = vmatprep.subr.mxu0 %v1602_v58 }
 0x638   :  { %8300 = vmatpush3.msra.mxu1 %v1270_v59  ;;  %v2514_v59 = vld [vmem:[#allocation5 + $0x1f8] sm:$0xff]  ;;  %8314 = vmatpush3.msra.mxu0 %v1602_v58 }
 0x639   :  { %8304 = vmatprep.subr.mxu1 %v9449_v23 }
 0x6d8   :  { %v1428_v60 = vpop.f32.mrf.mxu1 }
 0x6d9   :  { %v1435_v1 = vsel %vm716_vm5, %v1428_v60, -inf }
 0x6da   :  { %v1352_v61 = vpop.f32.mrf.mxu0  ;;  %v8298_v62 = vpop.f32.mrf.mxu1 }
 0x6db   :  { %v1432_v63 = vsel %vm716_vm5, %v1352_v61, -inf  ;;  %v1804_v62 = vld [vmem:[#allocation5 + $0x178] sm:$0xff] }
 0x6dc   :  { %1433 = vmax.xlane.f32.xlu1 %v1432_v63  ;;  %v8293_v0 = vpop.f32.mrf.mxu0  ;;  %v2512_v63 = vld [vmem:[#allocation5 + $0x1e8] sm:$0xff] }
 0x6dd   :  { %v2511_v0 = vld [vmem:[#allocation5 + $0x1e0] sm:$0xff] }
 0x6e0   :  { %1436 = vmax.xlane.f32.xlu1 %v1435_v1  ;;  %v2510_v1 = vld [vmem:[#allocation5 + $0x1d8] sm:$0xff] }
 0x765   :  { %v1434_v2 = vpop.xlane.xlu1 %1433 }
 0x766   :  { %v1438_v3 = vsub.f32 %v1352_v61, %v1434_v2  ;;  %v2513_v61 = vld [vmem:[#allocation5 + $0x1f0] sm:$0xff] }
 0x767   :  { %v2509_v2 = vld [vmem:[#allocation5 + $0x1d0] sm:$0xff] }
 0x768   :  { %v1440_v4 = vmul.f32 1.442695, %v1438_v3  ;;  %v2508_v3 = vld [vmem:[#allocation5 + $0x1c8] sm:$0xff] }
 0x769   :  { %v1437_v5 = vpop.xlane.xlu1 %1436 }
 0x76a   :  { %9195 = vpow2.f32 %v1440_v4  ;;  %v1439_v6 = vsub.f32 %v1428_v60, %v1437_v5  ;;  %v1601_v60 = vld [vmem:[#allocation8 + $0x20] sm:$0xff]  ;;  %v2506_v5 = vld [vmem:[#allocation5 + $0x1b8] sm:$0xff] }
 0x76b   :  { %8315 = vmatprep.subr.mxu0 %v1601_v60  ;;  %v2507_v4 = vld [vmem:[#allocation5 + $0x1c0] sm:$0xff] }
 0x76c   :  { %v1442_v7 = vmul.f32 1.442695, %v1439_v6  ;;  %8316 = vmatpush3.msra.mxu0 %v1601_v60  ;;  %v2505_v6 = vld [vmem:[#allocation5 + $0x1b0] sm:$0xff] }
 0x76d   :  { %8355 = vmatprep.subr.mxu0 %v1804_v62 }
 0x76e   :  { %9197 = vpow2.f32 %v1442_v7  ;;  %v2504_v7 = vld [vmem:[#allocation5 + $0x1a8] sm:$0xff] }
 0x777   :  { %v9196_v8 = vpop.eup %9195 }
 0x778   :  { %v1444_v9 = vsel %vm716_vm5, %v9196_v8, 0.0 }
 0x779   :  { %1445 = vadd.xlane.f32.xlu1 %v1444_v9  ;;  %v2502_v9 = vld [vmem:[#allocation5 + $0x198] sm:$0xff] }
 0x77b   :  { %v9198_v10 = vpop.eup %9197 }
 0x77c   :  { %v1447_v11 = vsel %vm716_vm5, %v9198_v10, 0.0 }
 0x77d   :  { %1448 = vadd.xlane.f32.xlu1 %v1447_v11  ;;  %v2500_v11 = vld [vmem:[#allocation5 + $0x188] sm:$0xff] }
 0x802   :  { %v1446_v14 = vpop.xlane.xlu1 %1445 }
 0x803   :  { %9199 = vrcp.f32 %v1446_v14 }
 0x806   :  { %v1449_v15 = vpop.xlane.xlu1 %1448 }
 0x807   :  { %9201 = vrcp.f32 %v1449_v15 }
 0x810   :  { %v9200_v16 = vpop.eup %9199 }
 0x811   :  { %v1452_v17 = vmul.f32 %v9200_v16, %v9196_v8  ;;  %v2503_v8 = vld [vmem:[#allocation5 + $0x1a0] sm:$0xff]  ;;  %v1803_v16 = vld [vmem:[#allocation5 + $0x170] sm:$0xff] }
 0x813   :  { %8302 = vmatmul.mubr.msk.f32.vlgmr.msra.gmra.mxu1 %vm716_vm5, %v1452_v17 }
 0x814   :  { %v9202_v19 = vpop.eup %9201  ;;  %8305 = vmatpush3.msra.mxu1 %v1275_v57  ;;  %8306 = vmatprep.mubr.msk.f32.mxu1 %vm9450_vm3, %v9449_v23  ;;  %v1889_v57 = vld [vmem:[#allocation7 + $0x100] sm:$0xff] }
 0x815   :  { %8320 = vmatprep.subr.mxu1 %v1704_v18  ;;  %v1453_v21 = vmul.f32 %v9202_v19, %v9198_v10  ;;  %v2501_v10 = vld [vmem:[#allocation5 + $0x190] sm:$0xff]  ;;  %v1801_v19 = vld [vmem:[#allocation5 + $0x160] sm:$0xff] }
 0x817   :  { %8307 = vmatmul.mubr.msk.f32.vlgmr.msra.gmra.mxu1 %vm716_vm5, %v1453_v21  ;;  %v1800_v21 = vld [vmem:[#allocation5 + $0x158] sm:$0xff] }
 0x818   :  { %8321 = vmatpush3.msra.mxu1 %v1704_v18  ;;  %8352 = vmatprep.mubr.f32.mxu1 %v9623_v49  ;;  %v1802_v18 = vld [vmem:[#allocation5 + $0x168] sm:$0xff] }
 0x819   :  { %8322 = vmatprep.subr.mxu1 %v1703_v22 }
 0x81a   :  { %8323 = vmatpush3.msra.mxu1 %v1703_v22  ;;  %v1799_v22 = vld [vmem:[#allocation5 + $0x150] sm:$0xff] }
 0x81b   :  { %8324 = vmatprep.subr.mxu1 %v1702_v24 }
 0x81c   :  { %8325 = vmatpush3.msra.mxu1 %v1702_v24  ;;  %v1798_v24 = vld [vmem:[#allocation5 + $0x148] sm:$0xff] }
 0x81d   :  { %8326 = vmatprep.subr.mxu1 %v1701_v25 }
 0x81e   :  { %8327 = vmatpush3.msra.mxu1 %v1701_v25  ;;  %v1797_v25 = vld [vmem:[#allocation5 + $0x140] sm:$0xff] }
 0x81f   :  { %8328 = vmatprep.subr.mxu1 %v1700_v26 }
 0x820   :  { %8329 = vmatpush3.msra.mxu1 %v1700_v26  ;;  %v1796_v26 = vld [vmem:[#allocation5 + $0x138] sm:$0xff] }
 0x821   :  { %8330 = vmatprep.subr.mxu1 %v1699_v27 }
 0x822   :  { %8331 = vmatpush3.msra.mxu1 %v1699_v27  ;;  %v1795_v27 = vld [vmem:[#allocation5 + $0x130] sm:$0xff] }
 0x823   :  { %8332 = vmatprep.subr.mxu1 %v1698_v28 }
 0x824   :  { %8333 = vmatpush3.msra.mxu1 %v1698_v28  ;;  %v1794_v28 = vld [vmem:[#allocation5 + $0x128] sm:$0xff] }
 0x825   :  { %8334 = vmatprep.subr.mxu1 %v1697_v29 }
 0x826   :  { %8335 = vmatpush3.msra.mxu1 %v1697_v29  ;;  %v1793_v29 = vld [vmem:[#allocation5 + $0x120] sm:$0xff] }
 0x827   :  { %8336 = vmatprep.subr.mxu1 %v1696_v30 }
 0x828   :  { %8337 = vmatpush3.msra.mxu1 %v1696_v30  ;;  %v1792_v30 = vld [vmem:[#allocation5 + $0x118] sm:$0xff] }
 0x829   :  { %8338 = vmatprep.subr.mxu1 %v1695_v31 }
 0x82a   :  { %8339 = vmatpush3.msra.mxu1 %v1695_v31  ;;  %v1791_v31 = vld [vmem:[#allocation5 + $0x110] sm:$0xff] }
 0x82b   :  { %8340 = vmatprep.subr.mxu1 %v1694_v32 }
 0x82c   :  { %8341 = vmatpush3.msra.mxu1 %v1694_v32  ;;  %v1790_v32 = vld [vmem:[#allocation5 + $0x108] sm:$0xff] }
 0x82d   :  { %8342 = vmatprep.subr.mxu1 %v1693_v33 }
 0x82e   :  { %8343 = vmatpush3.msra.mxu1 %v1693_v33  ;;  %v1789_v33 = vld [vmem:[#allocation5 + $0x100] sm:$0xff] }
 0x82f   :  { %8344 = vmatprep.subr.mxu1 %v1692_v34 }
 0x830   :  { %8345 = vmatpush3.msra.mxu1 %v1692_v34 }
 0x831   :  { %8346 = vmatprep.subr.mxu1 %v1691_v35 }
 0x832   :  { %8347 = vmatpush3.msra.mxu1 %v1691_v35 }
 0x833   :  { %8348 = vmatprep.subr.mxu1 %v1690_v36 }
 0x834   :  { %8349 = vmatpush3.msra.mxu1 %v1690_v36  ;;  %v7226_v36 = vld [vmem:[%s10166_s8 + $0x2] ss:$0 sm:$0xff] }
 0x835   :  { %8350 = vmatprep.subr.mxu1 %v1689_v38 }
 0x836   :  { %8351 = vmatpush3.msra.mxu1 %v1689_v38 }
 0x837   :  { %8353 = vmatmul.mubr.f32.vlgmr.msra.gmra.mxu1 %v9625_v50  ;;  %8390 = vmatprep.subr.mxu1 %v1904_v39 }
 0x838   :  { %8391 = vmatpush3.msra.mxu1 %v1904_v39  ;;  %8422 = vmatprep.mubr.f32.mxu1 %v9623_v49 }
 0x839   :  { %8392 = vmatprep.subr.mxu1 %v1903_v40 }
 0x83a   :  { %8393 = vmatpush3.msra.mxu1 %v1903_v40 }
 0x83b   :  { %8394 = vmatprep.subr.mxu1 %v1902_v41 }
 0x83c   :  { %8395 = vmatpush3.msra.mxu1 %v1902_v41  ;;  %v7238_v41 = vld [vmem:[%s10165_s7 + $0x3] ss:$0 sm:$0xff] }
 0x83d   :  { %8396 = vmatprep.subr.mxu1 %v1901_v42 }
 0x83e   :  { %8397 = vmatpush3.msra.mxu1 %v1901_v42 }
 0x83f   :  { %8398 = vmatprep.subr.mxu1 %v1900_v43 }
 0x840   :  { %8399 = vmatpush3.msra.mxu1 %v1900_v43 }
 0x841   :  { %8400 = vmatprep.subr.mxu1 %v1899_v44 }
 0x842   :  { %8401 = vmatpush3.msra.mxu1 %v1899_v44 }
 0x843   :  { %8402 = vmatprep.subr.mxu1 %v1898_v47 }
 0x844   :  { %8403 = vmatpush3.msra.mxu1 %v1898_v47 }
 0x845   :  { %8404 = vmatprep.subr.mxu1 %v1897_v48 }
 0x846   :  { %8405 = vmatpush3.msra.mxu1 %v1897_v48  ;;  %v7206_v48 = vld [vmem:[%s10168_s10] ss:$0 sm:$0xff] }
 0x847   :  { %8406 = vmatprep.subr.mxu1 %v1896_v37 }
 0x848   :  { %8407 = vmatpush3.msra.mxu1 %v1896_v37  ;;  %v977_v37 = vadd.f32 %v9687_v45, %v7206_v48 }
 0x849   :  { %8408 = vmatprep.subr.mxu1 %v1895_v51 }
 0x84a   :  { %8409 = vmatpush3.msra.mxu1 %v1895_v51 }
 0x84b   :  { %8410 = vmatprep.subr.mxu1 %v1894_v52 }
 0x84c   :  { %8411 = vmatpush3.msra.mxu1 %v1894_v52  ;;  %v976_v52 = vadd.f32 %v7206_v48, %v9689_v46  ;;  %v2403_v48 = vld [vmem:[#allocation2 + $0x1a0] sm:$0xff] }
 0x84d   :  { %8412 = vmatprep.subr.mxu1 %v1893_v53 }
 0x84e   :  { %8413 = vmatpush3.msra.mxu1 %v1893_v53 }
 0x84f   :  { %8414 = vmatprep.subr.mxu1 %v1892_v54 }
 0x850   :  { %8415 = vmatpush3.msra.mxu1 %v1892_v54 }
 0x851   :  { %8416 = vmatprep.subr.mxu1 %v1891_v55 }
 0x852   :  { %8417 = vmatpush3.msra.mxu1 %v1891_v55 }
 0x853   :  { %8418 = vmatprep.subr.mxu1 %v1890_v56 }
 0x854   :  { %8419 = vmatpush3.msra.mxu1 %v1890_v56 }
 0x855   :  { %8420 = vmatprep.subr.mxu1 %v1889_v57 }
 0x856   :  { %8421 = vmatpush3.msra.mxu1 %v1889_v57  ;;  %v7222_v57 = vld [vmem:[%s10164_s6 + $0x2] ss:$0 sm:$0xff] }
 0x857   :  { %8423 = vmatmul.mubr.f32.vlgmr.msra.gmra.mxu1 %v9625_v50  ;;  %8491 = vmatprep.subr.mxu1 %v2514_v59 }
 0x858   :  { %8492 = vmatpush3.msra.mxu1 %v2514_v59  ;;  %8523 = vmatprep.mubr.f32.mxu1 %v9623_v49  ;;  %v7224_v59 = vld [vmem:[%s10165_s7 + $0x2] ss:$0 sm:$0xff] }
 0x859   :  { %8493 = vmatprep.subr.mxu1 %v2513_v61 }
 0x85a   :  { %8494 = vmatpush3.msra.mxu1 %v2513_v61 }
 0x85b   :  { %8495 = vmatprep.subr.mxu1 %v2512_v63 }
 0x85c   :  { %8496 = vmatpush3.msra.mxu1 %v2512_v63 }
 0x85d   :  { %8497 = vmatprep.subr.mxu1 %v2511_v0 }
 0x85e   :  { %8498 = vmatpush3.msra.mxu1 %v2511_v0 }
 0x85f   :  { %8499 = vmatprep.subr.mxu1 %v2510_v1 }
 0x860   :  { %8500 = vmatpush3.msra.mxu1 %v2510_v1 }
 0x861   :  { %8501 = vmatprep.subr.mxu1 %v2509_v2 }
 0x862   :  { %8502 = vmatpush3.msra.mxu1 %v2509_v2 }
 0x863   :  { %8503 = vmatprep.subr.mxu1 %v2508_v3 }
 0x864   :  { %8504 = vmatpush3.msra.mxu1 %v2508_v3 }
 0x865   :  { %8505 = vmatprep.subr.mxu1 %v2507_v4 }
 0x866   :  { %8506 = vmatpush3.msra.mxu1 %v2507_v4 }
 0x867   :  { %8507 = vmatprep.subr.mxu1 %v2506_v5 }
 0x868   :  { %8508 = vmatpush3.msra.mxu1 %v2506_v5 }
 0x869   :  { %8509 = vmatprep.subr.mxu1 %v2505_v6 }
 0x86a   :  { %8510 = vmatpush3.msra.mxu1 %v2505_v6 }
 0x86b   :  { %8511 = vmatprep.subr.mxu1 %v2504_v7 }
 0x86c   :  { %8512 = vmatpush3.msra.mxu1 %v2504_v7 }
 0x86d   :  { %8513 = vmatprep.subr.mxu1 %v2503_v8 }
 0x86e   :  { %8514 = vmatpush3.msra.mxu1 %v2503_v8 }
 0x86f   :  { %8515 = vmatprep.subr.mxu1 %v2502_v9 }
 0x870   :  { %8516 = vmatpush3.msra.mxu1 %v2502_v9 }
 0x871   :  { %8517 = vmatprep.subr.mxu1 %v2501_v10 }
 0x872   :  { %8518 = vmatpush3.msra.mxu1 %v2501_v10 }
 0x873   :  { %8519 = vmatprep.subr.mxu1 %v2500_v11 }
 0x874   :  { %8520 = vmatpush3.msra.mxu1 %v2500_v11 }
 0x875   :  { %8521 = vmatprep.subr.mxu1 %v2499_v12 }
 0x876   :  { %8522 = vmatpush3.msra.mxu1 %v2499_v12 }
 0x877   :  { %8524 = vmatmul.mubr.f32.vlgmr.msra.gmra.mxu1 %v9625_v50  ;;  %8561 = vmatprep.subr.mxu1 %v9449_v23 }
 0x878   :  { %8563 = vmatprep.mubr.msk.f32.mxu1 %vm9450_vm3, %v9449_v23 }
 0x8d3   :  { %v1523_v13 = vpop.f32.mrf.mxu1 }
 0x8d4   :  { %8317 = vmatprep.mubr.msk.f32.mxu0 %vm563_vm4, %v1523_v13 }
 0x8d5   :  { %v8303_v14 = vpop.f32.mrf.mxu1 }
 0x8d7   :  { %v1596_v15 = vpop.f32.mrf.mxu1 }
 0x8d8   :  { %8318 = vmatmul.mubr.msk.f32.vlgmr.msra.gmra.mxu0 %vm563_vm4, %v1596_v15 }
 0x8d9   :  { %8356 = vmatpush3.msra.mxu0 %v1804_v62  ;;  %v8308_v17 = vpop.f32.mrf.mxu1  ;;  %8387 = vmatprep.mubr.f32.mxu0 %v9623_v49 }
 0x8da   :  { %8357 = vmatprep.subr.mxu0 %v1803_v16 }
 0x8db   :  { %8358 = vmatpush3.msra.mxu0 %v1803_v16 }
 0x8dc   :  { %8359 = vmatprep.subr.mxu0 %v1802_v18 }
 0x8dd   :  { %8360 = vmatpush3.msra.mxu0 %v1802_v18 }
 0x8de   :  { %8361 = vmatprep.subr.mxu0 %v1801_v19 }
 0x8df   :  { %8362 = vmatpush3.msra.mxu0 %v1801_v19 }
 0x8e0   :  { %8363 = vmatprep.subr.mxu0 %v1800_v21 }
 0x8e1   :  { %8364 = vmatpush3.msra.mxu0 %v1800_v21 }
 0x8e2   :  { %8365 = vmatprep.subr.mxu0 %v1799_v22 }
 0x8e3   :  { %8366 = vmatpush3.msra.mxu0 %v1799_v22  ;;  %v2314_v22 = vld [vmem:[#allocation8 + $0x58] sm:$0xff] }
 0x8e4   :  { %8367 = vmatprep.subr.mxu0 %v1798_v24 }
 0x8e5   :  { %8368 = vmatpush3.msra.mxu0 %v1798_v24 }
 0x8e6   :  { %8369 = vmatprep.subr.mxu0 %v1797_v25 }
 0x8e7   :  { %8370 = vmatpush3.msra.mxu0 %v1797_v25 }
 0x8e8   :  { %8371 = vmatprep.subr.mxu0 %v1796_v26 }
 0x8e9   :  { %8372 = vmatpush3.msra.mxu0 %v1796_v26  ;;  %v2313_v26 = vld [vmem:[#allocation8 + $0x50] sm:$0xff] }
 0x8ea   :  { %8373 = vmatprep.subr.mxu0 %v1795_v27 }
 0x8eb   :  { %8374 = vmatpush3.msra.mxu0 %v1795_v27  ;;  %v2312_v27 = vld [vmem:[#allocation8 + $0x48] sm:$0xff] }
 0x8ec   :  { %8375 = vmatprep.subr.mxu0 %v1794_v28 }
 0x8ed   :  { %8376 = vmatpush3.msra.mxu0 %v1794_v28  ;;  %v2311_v28 = vld [vmem:[#allocation8 + $0x40] sm:$0xff] }
 0x8ee   :  { %8377 = vmatprep.subr.mxu0 %v1793_v29 }
 0x8ef   :  { %8378 = vmatpush3.msra.mxu0 %v1793_v29  ;;  %v2414_v29 = vld [vmem:[#allocation2 + $0x1f8] sm:$0xff] }
 0x8f0   :  { %8379 = vmatprep.subr.mxu0 %v1792_v30 }
 0x8f1   :  { %8380 = vmatpush3.msra.mxu0 %v1792_v30 }
 0x8f2   :  { %8381 = vmatprep.subr.mxu0 %v1791_v31 }
 0x8f3   :  { %8382 = vmatpush3.msra.mxu0 %v1791_v31 }
 0x8f4   :  { %8383 = vmatprep.subr.mxu0 %v1790_v32 }
 0x8f5   :  { %8384 = vmatpush3.msra.mxu0 %v1790_v32 }
 0x8f6   :  { %8385 = vmatprep.subr.mxu0 %v1789_v33 }
 0x8f7   :  { %8386 = vmatpush3.msra.mxu0 %v1789_v33  ;;  %v8354_v34 = vpop.f32.mrf.mxu1  ;;  %v2413_v33 = vld [vmem:[#allocation2 + $0x1f0] sm:$0xff] }
 0x8f8   :  { %8388 = vmatmul.mubr.f32.vlgmr.msra.gmra.mxu0 %v9625_v50  ;;  %8425 = vmatprep.subr.mxu0 %v9449_v23  ;;  %v1785_v46 = vadd.f32 %v8354_v34, %v7222_v57 }
 0x8f9   :  { %8427 = vmatprep.mubr.msk.f32.mxu0 %vm9450_vm3, %v9449_v23  ;;  %v1779_v35 = vpop.f32.mrf.mxu1 }
 0x8fa   :  { %v1780_v58 = vadd.f32 %v7222_v57, %v1779_v35  ;;  %v1989_v63 = vmul.f32 0.17677669, %v1785_v46  ;;  %v2412_v35 = vld [vmem:[#allocation2 + $0x1e8] sm:$0xff]  ;;  %v2613_v57 = vld [vmem:[#allocation7 + $0x1f0] sm:$0xff] }
 0x8fb   :  { %v2608_v46 = vld [vmem:[#allocation7 + $0x1c8] sm:$0xff] }
 0x8fc   :  { %v1988_v61 = vmul.f32 0.17677669, %v1780_v58  ;;  %v2612_v58 = vld [vmem:[#allocation7 + $0x1e8] sm:$0xff] }
 0x917   :  { %v8424_v38 = vpop.f32.mrf.mxu1 }
 0x918   :  { %v9729_v39 = vadd.f32 %v8424_v38, %v7226_v36  ;;  %v2410_v38 = vld [vmem:[#allocation2 + $0x1d8] sm:$0xff] }
 0x919   :  { %v1979_v40 = vpop.f32.mrf.mxu1 }
 0x91a   :  { %v1980_v0 = vadd.f32 %v7226_v36, %v1979_v40  ;;  %v2411_v36 = vld [vmem:[#allocation2 + $0x1e0] sm:$0xff]  ;;  %v2408_v40 = vld [vmem:[#allocation2 + $0x1c8] sm:$0xff] }
 0x937   :  { %v8525_v42 = vpop.f32.mrf.mxu1 }
 0x938   :  { %v9734_v43 = vadd.f32 %v8525_v42, %v7238_v41  ;;  %v2406_v42 = vld [vmem:[#allocation2 + $0x1b8] sm:$0xff] }
 0x939   :  { %v2589_v44 = vpop.f32.mrf.mxu1 }
 0x93a   :  { %v2590_v47 = vadd.f32 %v7238_v41, %v2589_v44  ;;  %v2407_v41 = vld [vmem:[#allocation2 + $0x1c0] sm:$0xff]  ;;  %v2405_v44 = vld [vmem:[#allocation2 + $0x1b0] sm:$0xff] }
 0x93c   :  { %8562 = vmatpush3.xpose.msk.msra.mxu1 %vm563_vm4, %v2590_v47  ;;  %v2404_v47 = vld [vmem:[#allocation2 + $0x1a8] sm:$0xff] }
 0x93d   :  { %8566 = vmatprep.subr.mxu1 %v9449_v23 }
 0x998   :  { %v8319_v51 = vpop.f32.mrf.mxu0 }
 0x999   :  { %v9743_v53 = vadd.f32 %v8319_v51, %v977_v37  ;;  %v2402_v37 = vld [vmem:[#allocation2 + $0x198] sm:$0xff]  ;;  %v2401_v51 = vld [vmem:[#allocation2 + $0x190] sm:$0xff] }
 0x99a   :  { %v1677_v54 = vpop.f32.mrf.mxu0 }
 0x99b   :  { %v9745_v55 = vadd.f32 %v1677_v54, %v976_v52  ;;  %v2400_v52 = vld [vmem:[#allocation2 + $0x188] sm:$0xff]  ;;  %v2399_v54 = vld [vmem:[#allocation2 + $0x180] sm:$0xff] }
 0x9b8   :  { %v8389_v56 = vpop.f32.mrf.mxu0 }
 0x9b9   :  { %v1885_v62 = vadd.f32 %v8389_v56, %v7224_v59  ;;  %v2614_v56 = vld [vmem:[#allocation7 + $0x1f8] sm:$0xff] }
 0x9ba   :  { %v1879_v60 = vpop.f32.mrf.mxu0 }
 0x9bb   :  { %v1880_v45 = vadd.f32 %v7224_v59, %v1879_v60  ;;  %v2611_v59 = vld [vmem:[#allocation7 + $0x1e0] sm:$0xff]  ;;  %v2610_v60 = vld [vmem:[#allocation7 + $0x1d8] sm:$0xff] }
 0x9bd   :  { %8426 = vmatpush3.xpose.msk.msra.mxu0 %vm563_vm4, %v1880_v45  ;;  %v2609_v45 = vld [vmem:[#allocation7 + $0x1d0] sm:$0xff] }
 0x9be   :  { %8430 = vmatprep.subr.mxu0 %v9449_v23 }
 0x9c0   :  { %8428 = vmatmul.mubr.msk.f32.vlgmr.msra.gmra.mxu0 %vm563_vm4, %v1988_v61  ;;  %v2607_v61 = vld [vmem:[#allocation7 + $0x1c0] sm:$0xff] }
 0x9c1   :  { %8431 = vmatpush3.xpose.msk.msra.mxu0 %vm563_vm4, %v1885_v62  ;;  %8432 = vmatprep.mubr.msk.f32.mxu0 %vm9450_vm3, %v9449_v23  ;;  %v2606_v62 = vld [vmem:[#allocation7 + $0x1b8] sm:$0xff] }
 0x9c2   :  { %8435 = vmatprep.subr.mxu0 %v9449_v23 }
 0x9c4   :  { %8433 = vmatmul.mubr.msk.f32.vlgmr.msra.gmra.mxu0 %vm563_vm4, %v1989_v63  ;;  %v2605_v63 = vld [vmem:[#allocation7 + $0x1b0] sm:$0xff] }
 0x9c5   :  { %8436 = vmatpush3.msra.mxu0 %v1980_v0  ;;  %8437 = vmatprep.mubr.msk.f32.mxu0 %vm9450_vm3, %v9449_v23  ;;  %v2604_v0 = vld [vmem:[#allocation7 + $0x1a8] sm:$0xff] }
 0x9c6   :  { %8440 = vmatprep.subr.mxu0 %v9449_v23 }
 0xa80   :  { %v2062_v1 = vpop.f32.mrf.mxu0 }
 0xa81   :  { %v2142_v2 = vsel %vm716_vm5, %v2062_v1, -inf }
 0xa82   :  { %2143 = vmax.xlane.f32.xlu1 %v2142_v2  ;;  %v8429_v3 = vpop.f32.mrf.mxu0  ;;  %v2602_v2 = vld [vmem:[#allocation7 + $0x198] sm:$0xff] }
 0xa83   :  { %v2601_v3 = vld [vmem:[#allocation7 + $0x190] sm:$0xff] }
 0xa84   :  { %v2138_v4 = vpop.f32.mrf.mxu0 }
 0xa85   :  { %v2145_v5 = vsel %vm716_vm5, %v2138_v4, -inf }
 0xa86   :  { %2146 = vmax.xlane.f32.xlu1 %v2145_v5  ;;  %v8434_v6 = vpop.f32.mrf.mxu0  ;;  %v2599_v5 = vld [vmem:[#allocation7 + $0x180] sm:$0xff] }
 0xb0b   :  { %v2144_v7 = vpop.xlane.xlu1 %2143 }
 0xb0c   :  { %v2148_v8 = vsub.f32 %v2062_v1, %v2144_v7  ;;  %v2603_v1 = vld [vmem:[#allocation7 + $0x1a0] sm:$0xff] }
 0xb0e   :  { %v2150_v9 = vmul.f32 1.442695, %v2148_v8 }
 0xb0f   :  { %v2147_v10 = vpop.xlane.xlu1 %2146 }
 0xb10   :  { %9203 = vpow2.f32 %v2150_v9  ;;  %v2149_v11 = vsub.f32 %v2138_v4, %v2147_v10  ;;  %v2600_v4 = vld [vmem:[#allocation7 + $0x188] sm:$0xff] }
 0xb12   :  { %v2152_v12 = vmul.f32 1.442695, %v2149_v11  ;;  %v7236_v11 = vld [vmem:[%s10164_s6 + $0x3] ss:$0 sm:$0xff] }
 0xb14   :  { %9205 = vpow2.f32 %v2152_v12 }
 0xb1d   :  { %v9204_v13 = vpop.eup %9203 }
 0xb1e   :  { %v2154_v14 = vsel %vm716_vm5, %v9204_v13, 0.0 }
 0xb1f   :  { %2155 = vadd.xlane.f32.xlu1 %v2154_v14 }
 0xb21   :  { %v9206_v15 = vpop.eup %9205 }
 0xb22   :  { %v2157_v16 = vsel %vm716_vm5, %v9206_v15, 0.0 }
 0xb23   :  { %2158 = vadd.xlane.f32.xlu0 %v2157_v16 }
 0xba8   :  { %v2156_v17 = vpop.xlane.xlu1 %2155 }
 0xba9   :  { %9207 = vrcp.f32 %v2156_v17 }
 0xbac   :  { %v2159_v18 = vpop.xlane.xlu0 %2158 }
 0xbad   :  { %9209 = vrcp.f32 %v2159_v18 }
 0xbb6   :  { %v9208_v19 = vpop.eup %9207 }
 0xbb7   :  { %v2162_v21 = vmul.f32 %v9208_v19, %v9204_v13 }
 0xbb9   :  { %8438 = vmatmul.mubr.msk.f32.vlgmr.msra.gmra.mxu0 %vm716_vm5, %v2162_v21 }
 0xbba   :  { %v9210_v24 = vpop.eup %9209  ;;  %8441 = vmatpush3.msra.mxu0 %v9729_v39  ;;  %8442 = vmatprep.mubr.msk.f32.mxu0 %vm9450_vm3, %v9449_v23  ;;  %v2409_v39 = vld [vmem:[#allocation2 + $0x1d0] sm:$0xff] }
 0xbbb   :  { %v2163_v25 = vmul.f32 %v9210_v24, %v9206_v15  ;;  %8445 = vmatprep.subr.mxu0 %v2314_v22 }
 0xbbd   :  { %8443 = vmatmul.mubr.msk.f32.vlgmr.msra.gmra.mxu0 %vm716_vm5, %v2163_v25 }
 0xbbe   :  { %8446 = vmatpush3.msra.mxu0 %v2314_v22 }
 0xbbf   :  { %8447 = vmatprep.subr.mxu0 %v2313_v26 }
 0xbc0   :  { %8448 = vmatpush3.msra.mxu0 %v2313_v26 }
 0xbc1   :  { %8449 = vmatprep.subr.mxu0 %v2312_v27 }
 0xbc2   :  { %8450 = vmatpush3.msra.mxu0 %v2312_v27 }
 0xbc3   :  { %8451 = vmatprep.subr.mxu0 %v2311_v28 }
 0xbc4   :  { %8452 = vmatpush3.msra.mxu0 %v2311_v28 }
 0xbc5   :  { %8456 = vmatprep.subr.mxu0 %v2414_v29 }
 0xc79   :  { %v2233_v30 = vpop.f32.mrf.mxu0 }
 0xc7a   :  { %8453 = vmatprep.mubr.msk.f32.mxu0 %vm563_vm4, %v2233_v30 }
 0xc7b   :  { %v8439_v31 = vpop.f32.mrf.mxu0 }
 0xc7d   :  { %v2306_v32 = vpop.f32.mrf.mxu0 }
 0xc7e   :  { %8454 = vmatmul.mubr.msk.f32.vlgmr.msra.gmra.mxu0 %vm563_vm4, %v2306_v32 }
 0xc7f   :  { %8457 = vmatpush3.msra.mxu0 %v2414_v29  ;;  %v8444_v34 = vpop.f32.mrf.mxu0  ;;  %8488 = vmatprep.mubr.f32.mxu0 %v9623_v49 }
 0xc80   :  { %8458 = vmatprep.subr.mxu0 %v2413_v33 }
 0xc81   :  { %8459 = vmatpush3.msra.mxu0 %v2413_v33 }
 0xc82   :  { %8460 = vmatprep.subr.mxu0 %v2412_v35 }
 0xc83   :  { %8461 = vmatpush3.msra.mxu0 %v2412_v35 }
 0xc84   :  { %8462 = vmatprep.subr.mxu0 %v2411_v36 }
 0xc85   :  { %8463 = vmatpush3.msra.mxu0 %v2411_v36 }
 0xc86   :  { %8464 = vmatprep.subr.mxu0 %v2410_v38 }
 0xc87   :  { %8465 = vmatpush3.msra.mxu0 %v2410_v38 }
 0xc88   :  { %8466 = vmatprep.subr.mxu0 %v2409_v39 }
 0xc89   :  { %8467 = vmatpush3.msra.mxu0 %v2409_v39 }
 0xc8a   :  { %8468 = vmatprep.subr.mxu0 %v2408_v40 }
 0xc8b   :  { %8469 = vmatpush3.msra.mxu0 %v2408_v40 }
 0xc8c   :  { %8470 = vmatprep.subr.mxu0 %v2407_v41 }
 0xc8d   :  { %8471 = vmatpush3.msra.mxu0 %v2407_v41 }
 0xc8e   :  { %8472 = vmatprep.subr.mxu0 %v2406_v42 }
 0xc8f   :  { %8473 = vmatpush3.msra.mxu0 %v2406_v42  ;;  %v3024_v42 = vld [vmem:[#allocation8 + $0x78] sm:$0xff] }
 0xc90   :  { %8474 = vmatprep.subr.mxu0 %v2405_v44 }
 0xc91   :  { %8475 = vmatpush3.msra.mxu0 %v2405_v44 }
 0xc92   :  { %8476 = vmatprep.subr.mxu0 %v2404_v47 }
 0xc93   :  { %8477 = vmatpush3.msra.mxu0 %v2404_v47 }
 0xc94   :  { %8478 = vmatprep.subr.mxu0 %v2403_v48 }
 0xc95   :  { %8479 = vmatpush3.msra.mxu0 %v2403_v48  ;;  %v3023_v48 = vld [vmem:[#allocation8 + $0x70] sm:$0xff] }
 0xc96   :  { %8480 = vmatprep.subr.mxu0 %v2402_v37 }
 0xc97   :  { %8481 = vmatpush3.msra.mxu0 %v2402_v37  ;;  %v3022_v37 = vld [vmem:[#allocation8 + $0x68] sm:$0xff] }
 0xc98   :  { %8482 = vmatprep.subr.mxu0 %v2401_v51 }
 0xc99   :  { %8483 = vmatpush3.msra.mxu0 %v2401_v51  ;;  %v3021_v51 = vld [vmem:[#allocation8 + $0x60] sm:$0xff] }
 0xc9a   :  { %8484 = vmatprep.subr.mxu0 %v2400_v52 }
 0xc9b   :  { %8485 = vmatpush3.msra.mxu0 %v2400_v52 }
 0xc9c   :  { %8486 = vmatprep.subr.mxu0 %v2399_v54 }
 0xc9d   :  { %8487 = vmatpush3.msra.mxu0 %v2399_v54 }
 0xc9e   :  { %8489 = vmatmul.mubr.f32.vlgmr.msra.gmra.mxu0 %v9625_v50  ;;  %8526 = vmatprep.subr.mxu0 %v2614_v56 }
 0xc9f   :  { %8527 = vmatpush3.msra.mxu0 %v2614_v56  ;;  %8558 = vmatprep.mubr.f32.mxu0 %v9623_v49 }
 0xca0   :  { %8528 = vmatprep.subr.mxu0 %v2613_v57 }
 0xca1   :  { %8529 = vmatpush3.msra.mxu0 %v2613_v57 }
 0xca2   :  { %8530 = vmatprep.subr.mxu0 %v2612_v58 }
 0xca3   :  { %8531 = vmatpush3.msra.mxu0 %v2612_v58 }
 0xca4   :  { %8532 = vmatprep.subr.mxu0 %v2611_v59 }
 0xca5   :  { %8533 = vmatpush3.msra.mxu0 %v2611_v59 }
 0xca6   :  { %8534 = vmatprep.subr.mxu0 %v2610_v60 }
 0xca7   :  { %8535 = vmatpush3.msra.mxu0 %v2610_v60 }
 0xca8   :  { %8536 = vmatprep.subr.mxu0 %v2609_v45 }
 0xca9   :  { %8537 = vmatpush3.msra.mxu0 %v2609_v45 }
 0xcaa   :  { %8538 = vmatprep.subr.mxu0 %v2608_v46 }
 0xcab   :  { %8539 = vmatpush3.msra.mxu0 %v2608_v46 }
 0xcac   :  { %8540 = vmatprep.subr.mxu0 %v2607_v61 }
 0xcad   :  { %8541 = vmatpush3.msra.mxu0 %v2607_v61 }
 0xcae   :  { %8542 = vmatprep.subr.mxu0 %v2606_v62 }
 0xcaf   :  { %8543 = vmatpush3.msra.mxu0 %v2606_v62  ;;  %v3212_v62 = vld [vmem:[#allocation10 + $0x1e8] sm:$0xff] }
 0xcb0   :  { %8544 = vmatprep.subr.mxu0 %v2605_v63 }
 0xcb1   :  { %8545 = vmatpush3.msra.mxu0 %v2605_v63  ;;  %v3214_v63 = vld [vmem:[#allocation10 + $0x1f8] sm:$0xff] }
 0xcb2   :  { %8546 = vmatprep.subr.mxu0 %v2604_v0 }
 0xcb3   :  { %8547 = vmatpush3.msra.mxu0 %v2604_v0  ;;  %v3211_v0 = vld [vmem:[#allocation10 + $0x1e0] sm:$0xff] }
 0xcb4   :  { %8548 = vmatprep.subr.mxu0 %v2603_v1 }
 0xcb5   :  { %8549 = vmatpush3.msra.mxu0 %v2603_v1  ;;  %v3213_v1 = vld [vmem:[#allocation10 + $0x1f0] sm:$0xff] }
 0xcb6   :  { %8550 = vmatprep.subr.mxu0 %v2602_v2 }
 0xcb7   :  { %8551 = vmatpush3.msra.mxu0 %v2602_v2  ;;  %v3208_v2 = vld [vmem:[#allocation10 + $0x1c8] sm:$0xff] }
 0xcb8   :  { %8552 = vmatprep.subr.mxu0 %v2601_v3 }
 0xcb9   :  { %8553 = vmatpush3.msra.mxu0 %v2601_v3  ;;  %v3210_v3 = vld [vmem:[#allocation10 + $0x1d8] sm:$0xff] }
 0xcba   :  { %8554 = vmatprep.subr.mxu0 %v2600_v4 }
 0xcbb   :  { %8555 = vmatpush3.msra.mxu0 %v2600_v4  ;;  %v3207_v4 = vld [vmem:[#allocation10 + $0x1c0] sm:$0xff] }
 0xcbc   :  { %8556 = vmatprep.subr.mxu0 %v2599_v5 }
 0xcbd   :  { %8557 = vmatpush3.msra.mxu0 %v2599_v5  ;;  %v3209_v5 = vld [vmem:[#allocation10 + $0x1d0] sm:$0xff] }
 0xcbe   :  { %8559 = vmatmul.mubr.f32.vlgmr.msra.gmra.mxu0 %v9625_v50  ;;  %3314 = vmatprep.subr.mxu0 %v3214_v63  ;;  %v3161_v63 = vld [vmem:[#allocation10 + $0x50] sm:$0xff] }
 0xcbf   :  { %3378 = vmatprep.mubr.f32.mxu0 %v9449_v23  ;;  %3315 = vmatpush1.msra.mxu0 %v3213_v1  ;;  %v3158_v1 = vld [vmem:[#allocation10 + $0x38] sm:$0xff] }
 0xcc0   :  { %3316 = vmatprep.subr.mxu0 %v3210_v3  ;;  %v3157_v3 = vld [vmem:[#allocation10 + $0x30] sm:$0xff] }
 0xcc1   :  { %3317 = vmatpush1.msra.mxu0 %v3209_v5  ;;  %v3154_v5 = vld [vmem:[#allocation10 + $0x18] sm:$0xff] }
 0xd3e   :  { %v8455_v6 = vpop.f32.mrf.mxu0 }
 0xd3f   :  { %v9781_v7 = vadd.f32 %v8455_v6, %v9743_v53  ;;  %v3204_v6 = vld [vmem:[#allocation10 + $0x1a8] sm:$0xff] }
 0xd40   :  { %v2387_v8 = vpop.f32.mrf.mxu0 }
 0xd41   :  { %v9784_v9 = vadd.f32 %v2387_v8, %v9745_v55  ;;  %v7240_v55 = vld [vmem:[%s10166_s8 + $0x3] ss:$0 sm:$0xff]  ;;  %v3205_v8 = vld [vmem:[#allocation10 + $0x1b0] sm:$0xff] }
 0xd5e   :  { %v8490_v10 = vpop.f32.mrf.mxu0 }
 0xd5f   :  { %v2495_v14 = vadd.f32 %v8490_v10, %v7236_v11 }
 0xd60   :  { %v2489_v12 = vpop.f32.mrf.mxu0 }
 0xd61   :  { %v2490_v13 = vadd.f32 %v7236_v11, %v2489_v12  ;;  %v2699_v53 = vmul.f32 0.17677669, %v2495_v14 }
 0xd63   :  { %v2698_v15 = vmul.f32 0.17677669, %v2490_v13 }
 0xd65   :  { %8564 = vmatmul.mubr.msk.f32.vlgmr.msra.gmra.mxu1 %vm563_vm4, %v2698_v15 }
 0xd66   :  { %8567 = vmatpush3.xpose.msk.msra.mxu1 %vm563_vm4, %v9734_v43  ;;  %8568 = vmatprep.mubr.msk.f32.mxu1 %vm9450_vm3, %v9449_v23 }
 0xd67   :  { %8571 = vmatprep.subr.mxu1 %v9449_v23 }
 0xd69   :  { %8569 = vmatmul.mubr.msk.f32.vlgmr.msra.gmra.mxu1 %vm563_vm4, %v2699_v53  ;;  %v3200_v53 = vld [vmem:[#allocation10 + $0x188] sm:$0xff] }
 0xd6a   :  { %8573 = vmatprep.mubr.msk.f32.mxu1 %vm9450_vm3, %v9449_v23 }
 0xd7e   :  { %v8560_v16 = vpop.f32.mrf.mxu0 }
 0xd7f   :  { %v2695_v17 = vadd.f32 %v8560_v16, %v7240_v55  ;;  %v3199_v16 = vld [vmem:[#allocation10 + $0x180] sm:$0xff] }
 0xd80   :  { %v2689_v18 = vpop.f32.mrf.mxu0 }
 0xd81   :  { %v2690_v19 = vadd.f32 %v7240_v55, %v2689_v18  ;;  %v3202_v55 = vld [vmem:[#allocation10 + $0x198] sm:$0xff]  ;;  %v3196_v18 = vld [vmem:[#allocation10 + $0x168] sm:$0xff] }
 0xd83   :  { %8572 = vmatpush3.msra.mxu1 %v2690_v19  ;;  %v3198_v19 = vld [vmem:[#allocation10 + $0x178] sm:$0xff] }
 0xd84   :  { %8576 = vmatprep.subr.mxu1 %v9449_v23 }
 0xe25   :  { %v2772_v43 = vpop.f32.mrf.mxu1 }
 0xe26   :  { %v2852_v21 = vsel %vm716_vm5, %v2772_v43, -inf }
 0xe27   :  { %2853 = vmax.xlane.f32.xlu1 %v2852_v21  ;;  %v8565_v22 = vpop.f32.mrf.mxu1  ;;  %v3197_v21 = vld [vmem:[#allocation10 + $0x170] sm:$0xff] }
 0xe28   :  { %v3192_v22 = vld [vmem:[#allocation10 + $0x148] sm:$0xff] }
 0xe29   :  { %v2848_v24 = vpop.f32.mrf.mxu1 }
 0xe2a   :  { %v2855_v25 = vsel %vm716_vm5, %v2848_v24, -inf }
 0xe2b   :  { %2856 = vmax.xlane.f32.xlu0 %v2855_v25  ;;  %v8570_v26 = vpop.f32.mrf.mxu1  ;;  %v3191_v25 = vld [vmem:[#allocation10 + $0x140] sm:$0xff] }
 0xe2c   :  { %v3193_v26 = vld [vmem:[#allocation10 + $0x150] sm:$0xff] }
 0xeb0   :  { %v2854_v27 = vpop.xlane.xlu1 %2853 }
 0xeb1   :  { %v2858_v28 = vsub.f32 %v2772_v43, %v2854_v27  ;;  %v3195_v43 = vld [vmem:[#allocation10 + $0x160] sm:$0xff]  ;;  %v3188_v27 = vld [vmem:[#allocation10 + $0x128] sm:$0xff] }
 0xeb3   :  { %v2860_v29 = vmul.f32 1.442695, %v2858_v28  ;;  %v3190_v28 = vld [vmem:[#allocation10 + $0x138] sm:$0xff] }
 0xeb4   :  { %v2857_v30 = vpop.xlane.xlu0 %2856 }
 0xeb5   :  { %9211 = vpow2.f32 %v2860_v29  ;;  %v2859_v31 = vsub.f32 %v2848_v24, %v2857_v30  ;;  %v3194_v24 = vld [vmem:[#allocation10 + $0x158] sm:$0xff]  ;;  %v3187_v29 = vld [vmem:[#allocation10 + $0x120] sm:$0xff]  ;;  %v3189_v30 = vld [vmem:[#allocation10 + $0x130] sm:$0xff] }
 0xeb7   :  { %v2862_v32 = vmul.f32 1.442695, %v2859_v31  ;;  %v3184_v31 = vld [vmem:[#allocation10 + $0x108] sm:$0xff] }
 0xeb9   :  { %9213 = vpow2.f32 %v2862_v32  ;;  %v3186_v32 = vld [vmem:[#allocation10 + $0x118] sm:$0xff] }
 0xec2   :  { %v9212_v33 = vpop.eup %9211 }
 0xec3   :  { %v2864_v34 = vsel %vm716_vm5, %v9212_v33, 0.0 }
 0xec4   :  { %2865 = vadd.xlane.f32.xlu1 %v2864_v34  ;;  %v3185_v34 = vld [vmem:[#allocation10 + $0x110] sm:$0xff] }
 0xec6   :  { %v9214_v35 = vpop.eup %9213 }
 0xec7   :  { %v2867_v36 = vsel %vm716_vm5, %v9214_v35, 0.0 }
 0xec8   :  { %2868 = vadd.xlane.f32.xlu0 %v2867_v36  ;;  %v3182_v36 = vld [vmem:[#allocation10 + $0xf8] sm:$0xff] }
 0xf4d   :  { %v2866_v38 = vpop.xlane.xlu1 %2865 }
 0xf4e   :  { %9215 = vrcp.f32 %v2866_v38  ;;  %v3179_v38 = vld [vmem:[#allocation10 + $0xe0] sm:$0xff] }
 0xf51   :  { %v2869_v39 = vpop.xlane.xlu0 %2868 }
 0xf52   :  { %9217 = vrcp.f32 %v2869_v39  ;;  %v3181_v39 = vld [vmem:[#allocation10 + $0xf0] sm:$0xff] }
 0xf5b   :  { %v9216_v40 = vpop.eup %9215 }
 0xf5c   :  { %v2872_v41 = vmul.f32 %v9216_v40, %v9212_v33  ;;  %v3183_v33 = vld [vmem:[#allocation10 + $0x100] sm:$0xff]  ;;  %v3176_v40 = vld [vmem:[#allocation10 + $0xc8] sm:$0xff] }
 0xf5e   :  { %8574 = vmatmul.mubr.msk.f32.vlgmr.msra.gmra.mxu1 %vm716_vm5, %v2872_v41  ;;  %v3178_v41 = vld [vmem:[#allocation10 + $0xd8] sm:$0xff] }
 0xf5f   :  { %v9218_v44 = vpop.eup %9217  ;;  %8577 = vmatpush3.msra.mxu1 %v2695_v17  ;;  %8578 = vmatprep.mubr.msk.f32.mxu1 %vm9450_vm3, %v9449_v23  ;;  %v3201_v17 = vld [vmem:[#allocation10 + $0x190] sm:$0xff] }
 0xf60   :  { %v2873_v47 = vmul.f32 %v9218_v44, %v9214_v35  ;;  %8581 = vmatprep.subr.mxu1 %v3024_v42  ;;  %v3180_v35 = vld [vmem:[#allocation10 + $0xe8] sm:$0xff]  ;;  %v3177_v44 = vld [vmem:[#allocation10 + $0xd0] sm:$0xff] }
 0xf62   :  { %8579 = vmatmul.mubr.msk.f32.vlgmr.msra.gmra.mxu1 %vm716_vm5, %v2873_v47  ;;  %v3172_v47 = vld [vmem:[#allocation10 + $0xa8] sm:$0xff] }
 0xf63   :  { %8582 = vmatpush3.msra.mxu1 %v3024_v42  ;;  %v3175_v42 = vld [vmem:[#allocation10 + $0xc0] sm:$0xff] }
 0xf64   :  { %8583 = vmatprep.subr.mxu1 %v3023_v48 }
 0xf65   :  { %8584 = vmatpush3.msra.mxu1 %v3023_v48  ;;  %v3174_v48 = vld [vmem:[#allocation10 + $0xb8] sm:$0xff] }
 0xf66   :  { %8585 = vmatprep.subr.mxu1 %v3022_v37 }
 0xf67   :  { %8586 = vmatpush3.msra.mxu1 %v3022_v37  ;;  %v3171_v37 = vld [vmem:[#allocation10 + $0xa0] sm:$0xff] }
 0xf68   :  { %8587 = vmatprep.subr.mxu1 %v3021_v51 }
 0xf69   :  { %8588 = vmatpush3.msra.mxu1 %v3021_v51  ;;  %v3173_v51 = vld [vmem:[#allocation10 + $0xb0] sm:$0xff] }
 0xf6a   :  { %3237 = vmatprep.subr.mxu1 %v3212_v62  ;;  %v3159_v62 = vld [vmem:[#allocation10 + $0x40] sm:$0xff] }
0x101e   :  { %v2943_v52 = vpop.f32.mrf.mxu1 }
0x101f   :  { %8589 = vmatprep.mubr.msk.f32.mxu1 %vm563_vm4, %v2943_v52  ;;  %v3168_v52 = vld [vmem:[#allocation10 + $0x88] sm:$0xff] }
0x1020   :  { %v8575_v54 = vpop.f32.mrf.mxu1 }
0x1021   :  { %v3170_v54 = vld [vmem:[#allocation10 + $0x98] sm:$0xff] }
0x1022   :  { %v3016_v56 = vpop.f32.mrf.mxu1 }
0x1023   :  { %8590 = vmatmul.mubr.msk.f32.vlgmr.msra.gmra.mxu1 %vm563_vm4, %v3016_v56  ;;  %v3167_v56 = vld [vmem:[#allocation10 + $0x80] sm:$0xff] }
0x1024   :  { %v8580_v57 = vpop.f32.mrf.mxu1  ;;  %3301 = vmatprep.mubr.f32.mxu1 %v9449_v23  ;;  %3238 = vmatpush1.msra.mxu1 %v3211_v0  ;;  %v3156_v0 = vld [vmem:[#allocation10 + $0x28] sm:$0xff] }
0x1025   :  { %3239 = vmatprep.subr.mxu1 %v3208_v2  ;;  %v3169_v57 = vld [vmem:[#allocation10 + $0x90] sm:$0xff]  ;;  %v3155_v2 = vld [vmem:[#allocation10 + $0x20] sm:$0xff] }
0x1026   :  { %3240 = vmatpush1.msra.mxu1 %v3207_v4  ;;  %v3152_v4 = vld [vmem:[#allocation10 + $0x8] sm:$0xff] }
0x1027   :  { %3241 = vmatprep.subr.mxu1 %v3204_v6  ;;  %v3151_v6 = vld [vmem:[#allocation10] sm:$0xff] }
0x10e3   :  { %v8591_v58 = vpop.f32.mrf.mxu1 }
0x10e4   :  { %v3107_v59 = vadd.f32 %v8591_v58, %v9781_v7  ;;  %v3203_v7 = vld [vmem:[#allocation10 + $0x1a0] sm:$0xff]  ;;  %v3164_v58 = vld [vmem:[#allocation10 + $0x68] sm:$0xff] }
0x10e5   :  { %v3097_v60 = vpop.f32.mrf.mxu1  ;;  %3242 = vmatpush1.msra.mxu1 %v3203_v7  ;;  %v3430_v7 = vld [vmem:[#allocation11 + $0xf8] sm:$0xff] }
0x10e6   :  { %v3106_v45 = vadd.f32 %v3097_v60, %v9784_v9  ;;  %v3109_v46 = vadd.f32 %v3107_v59, %v9625_v50  ;;  %v3206_v50 = vld [vmem:[#allocation10 + $0x1b8] sm:$0xff]  ;;  %3243 = vmatprep.subr.mxu1 %v3200_v53  ;;  %v3163_v60 = vld [vmem:[#allocation10 + $0x60] sm:$0xff] }
0x10e7   :  { %3318 = vmatprep.subr.mxu0 %v3206_v50  ;;  %3244 = vmatpush1.msra.mxu1 %v3199_v16  ;;  %v3166_v59 = vld [vmem:[#allocation10 + $0x78] sm:$0xff]  ;;  %v3153_v50 = vld [vmem:[#allocation10 + $0x10] sm:$0xff] }
0x10e8   :  { %3114 = vadd.xlane.f32.xlu0 %v3109_v46  ;;  %v3108_v61 = vadd.f32 %v3106_v45, %v9623_v49  ;;  %3319 = vmatpush1.msra.mxu0 %v3205_v8  ;;  %v3165_v45 = vld [vmem:[#allocation10 + $0x70] sm:$0xff]  ;;  %v3462_v8 = vld [vmem:[#allocation11 + $0x1f8] sm:$0xff] }
0x10e9   :  { %3320 = vmatprep.subr.mxu0 %v3202_v55  ;;  %3245 = vmatprep.subr.mxu1 %v3196_v18  ;;  %v7249_v18 = vld [vmem:[%s10169_s11] ss:$0 sm:$0xff] }
0x10ea   :  { %3112 = vadd.xlane.f32.xlu1 %v3108_v61  ;;  %3321 = vmatpush1.msra.mxu0 %v3201_v17 }
0x10eb   :  { %3322 = vmatprep.subr.mxu0 %v3198_v19  ;;  %3246 = vmatpush1.msra.mxu1 %v3195_v43  ;;  %v7250_v43 = vld [vmem:[%s10170_s12] ss:$0 sm:$0xff] }
0x10ec   :  { %3323 = vmatpush1.msra.mxu0 %v3197_v21  ;;  %3247 = vmatprep.subr.mxu1 %v3192_v22 }
0x10ed   :  { %3324 = vmatprep.subr.mxu0 %v3194_v24  ;;  %3248 = vmatpush1.msra.mxu1 %v3191_v25  ;;  %v3414_v24 = vld [vmem:[#allocation11 + $0x78] sm:$0xff] }
0x10ee   :  { %3325 = vmatpush1.msra.mxu0 %v3193_v26  ;;  %3249 = vmatprep.subr.mxu1 %v3188_v27  ;;  %v3446_v25 = vld [vmem:[#allocation11 + $0x178] sm:$0xff]  ;;  %v3413_v27 = vld [vmem:[#allocation11 + $0x70] sm:$0xff] }
0x10ef   :  { %3326 = vmatprep.subr.mxu0 %v3190_v28  ;;  %3250 = vmatpush1.msra.mxu1 %v3187_v29  ;;  %v3445_v28 = vld [vmem:[#allocation11 + $0x170] sm:$0xff]  ;;  %v3428_v29 = vld [vmem:[#allocation11 + $0xe8] sm:$0xff] }
0x10f0   :  { %3327 = vmatpush1.msra.mxu0 %v3189_v30  ;;  %3251 = vmatprep.subr.mxu1 %v3184_v31  ;;  %v3460_v30 = vld [vmem:[#allocation11 + $0x1e8] sm:$0xff] }
0x10f1   :  { %3328 = vmatprep.subr.mxu0 %v3186_v32  ;;  %3252 = vmatpush1.msra.mxu1 %v3183_v33  ;;  %v3412_v31 = vld [vmem:[#allocation11 + $0x68] sm:$0xff]  ;;  %v3427_v33 = vld [vmem:[#allocation11 + $0xe0] sm:$0xff] }
0x10f2   :  { %3329 = vmatpush1.msra.mxu0 %v3185_v34  ;;  %3253 = vmatprep.subr.mxu1 %v3180_v35  ;;  %v3444_v32 = vld [vmem:[#allocation11 + $0x168] sm:$0xff]  ;;  %v3459_v34 = vld [vmem:[#allocation11 + $0x1e0] sm:$0xff] }
0x10f3   :  { %3330 = vmatprep.subr.mxu0 %v3182_v36  ;;  %3254 = vmatpush1.msra.mxu1 %v3179_v38  ;;  %v3411_v35 = vld [vmem:[#allocation11 + $0x60] sm:$0xff]  ;;  %v3426_v38 = vld [vmem:[#allocation11 + $0xd8] sm:$0xff] }
0x10f4   :  { %3331 = vmatpush1.msra.mxu0 %v3181_v39  ;;  %3255 = vmatprep.subr.mxu1 %v3176_v40  ;;  %v3443_v36 = vld [vmem:[#allocation11 + $0x160] sm:$0xff]  ;;  %v3458_v39 = vld [vmem:[#allocation11 + $0x1d8] sm:$0xff] }
0x10f5   :  { %3332 = vmatprep.subr.mxu0 %v3178_v41  ;;  %3256 = vmatpush1.msra.mxu1 %v3175_v42  ;;  %v3410_v40 = vld [vmem:[#allocation11 + $0x58] sm:$0xff]  ;;  %v3425_v42 = vld [vmem:[#allocation11 + $0xd0] sm:$0xff] }
0x10f6   :  { %3333 = vmatpush1.msra.mxu0 %v3177_v44  ;;  %3257 = vmatprep.subr.mxu1 %v3172_v47  ;;  %v3442_v41 = vld [vmem:[#allocation11 + $0x158] sm:$0xff]  ;;  %v3457_v44 = vld [vmem:[#allocation11 + $0x1d0] sm:$0xff] }
0x10f7   :  { %3334 = vmatprep.subr.mxu0 %v3174_v48  ;;  %3258 = vmatpush1.msra.mxu1 %v3171_v37  ;;  %v3409_v47 = vld [vmem:[#allocation11 + $0x50] sm:$0xff]  ;;  %v3424_v37 = vld [vmem:[#allocation11 + $0xc8] sm:$0xff] }
0x10f8   :  { %3335 = vmatpush1.msra.mxu0 %v3173_v51  ;;  %3259 = vmatprep.subr.mxu1 %v3168_v52  ;;  %v3441_v48 = vld [vmem:[#allocation11 + $0x150] sm:$0xff]  ;;  %v3456_v51 = vld [vmem:[#allocation11 + $0x1c8] sm:$0xff] }
0x10f9   :  { %3336 = vmatprep.subr.mxu0 %v3170_v54  ;;  %3260 = vmatpush1.msra.mxu1 %v3167_v56  ;;  %v3408_v52 = vld [vmem:[#allocation11 + $0x48] sm:$0xff]  ;;  %v3423_v56 = vld [vmem:[#allocation11 + $0xc0] sm:$0xff] }
0x10fa   :  { %3337 = vmatpush1.msra.mxu0 %v3169_v57  ;;  %3261 = vmatprep.subr.mxu1 %v3164_v58  ;;  %v3440_v54 = vld [vmem:[#allocation11 + $0x148] sm:$0xff]  ;;  %v3455_v57 = vld [vmem:[#allocation11 + $0x1c0] sm:$0xff] }
0x10fb   :  { %3338 = vmatprep.subr.mxu0 %v3166_v59  ;;  %3262 = vmatpush1.msra.mxu1 %v3163_v60  ;;  %v3407_v58 = vld [vmem:[#allocation11 + $0x40] sm:$0xff]  ;;  %v3422_v60 = vld [vmem:[#allocation11 + $0xb8] sm:$0xff] }
0x10fc   :  { %3339 = vmatpush1.msra.mxu0 %v3165_v45  ;;  %v3439_v59 = vld [vmem:[#allocation11 + $0x140] sm:$0xff]  ;;  %v3454_v45 = vld [vmem:[#allocation11 + $0x1b8] sm:$0xff] }
0x1171   :  { %v3115_v49 = vpop.xlane.xlu0 %3114 }
0x1172   :  { %v3118_v9 = vmul.f32 0.0078125, %v3115_v49 }
0x1173   :  { %v3113_v10 = vpop.xlane.xlu1 %3112 }
0x1174   :  { %v9817_v11 = vsub.f32 %v3109_v46, %v3118_v9  ;;  %v3117_v12 = vmul.f32 0.0078125, %v3113_v10  ;;  %v3160_v46 = vld [vmem:[#allocation10 + $0x48] sm:$0xff] }
0x1175   :  { %3263 = vmatprep.subr.mxu1 %v3160_v46  ;;  %v3406_v46 = vld [vmem:[#allocation11 + $0x38] sm:$0xff] }
0x1176   :  { %v9819_v13 = vsub.f32 %v3108_v61, %v3117_v12  ;;  %v3122_v14 = vmul.f32 %v9817_v11, %v9817_v11  ;;  %v3162_v61 = vld [vmem:[#allocation10 + $0x58] sm:$0xff]  ;;  %3264 = vmatpush1.msra.mxu1 %v3159_v62  ;;  %v3421_v62 = vld [vmem:[#allocation11 + $0xb0] sm:$0xff] }
0x1177   :  { %3340 = vmatprep.subr.mxu0 %v3162_v61  ;;  %3265 = vmatprep.subr.mxu1 %v3156_v0  ;;  %v3438_v61 = vld [vmem:[#allocation11 + $0x138] sm:$0xff]  ;;  %v3405_v0 = vld [vmem:[#allocation11 + $0x30] sm:$0xff] }
0x1178   :  { %3125 = vadd.xlane.f32.xlu0 %v3122_v14  ;;  %v3121_v15 = vmul.f32 %v9819_v13, %v9819_v13  ;;  %3341 = vmatpush1.msra.mxu0 %v3161_v63  ;;  %v3453_v63 = vld [vmem:[#allocation11 + $0x1b0] sm:$0xff] }
0x1179   :  { %3342 = vmatprep.subr.mxu0 %v3158_v1  ;;  %3266 = vmatpush1.msra.mxu1 %v3155_v2  ;;  %v3437_v1 = vld [vmem:[#allocation11 + $0x130] sm:$0xff]  ;;  %v3420_v2 = vld [vmem:[#allocation11 + $0xa8] sm:$0xff] }
0x117a   :  { %3123 = vadd.xlane.f32.xlu1 %v3121_v15  ;;  %3343 = vmatpush1.msra.mxu0 %v3157_v3  ;;  %v3452_v3 = vld [vmem:[#allocation11 + $0x1a8] sm:$0xff] }
0x117b   :  { %3267 = vmatprep.subr.mxu1 %v3152_v4  ;;  %3344 = vmatprep.subr.mxu0 %v3154_v5  ;;  %v3404_v4 = vld [vmem:[#allocation11 + $0x28] sm:$0xff] }
0x117c   :  { %3268 = vmatpush1.msra.mxu1 %v3151_v6  ;;  %3345 = vmatpush1.msra.mxu0 %v3153_v50  ;;  %v3436_v5 = vld [vmem:[#allocation11 + $0x128] sm:$0xff]  ;;  %v3419_v6 = vld [vmem:[#allocation11 + $0xa0] sm:$0xff] }
0x117d   :  { %7600 = vmatprep.subr.mxu1 %v3430_v7  ;;  %7638 = vmatprep.subr.mxu0 %v3462_v8  ;;  %v3451_v50 = vld [vmem:[#allocation11 + $0x1a0] sm:$0xff] }
0x117e   :  { %v3403_v7 = vld [vmem:[#allocation11 + $0x20] sm:$0xff] }
0x117f   :  { %v3435_v8 = vld [vmem:[#allocation11 + $0x120] sm:$0xff] }
0x1201   :  { %v3126_v49 = vpop.xlane.xlu0 %3125 }
0x1202   :  { %v3128_v9 = vmul.f32 0.0078125, %v3126_v49  ;;  %v3418_v49 = vld [vmem:[#allocation11 + $0x98] sm:$0xff] }
0x1203   :  { %v3124_v10 = vpop.xlane.xlu1 %3123 }
0x1204   :  { %v3130_v12 = vadd.f32 1e-05, %v3128_v9  ;;  %v3127_v14 = vmul.f32 0.0078125, %v3124_v10  ;;  %v3450_v9 = vld [vmem:[#allocation11 + $0x198] sm:$0xff] }
0x1205   :  { %v3402_v10 = vld [vmem:[#allocation11 + $0x18] sm:$0xff] }
0x1206   :  { %9219 = vrsqrt.f32 %v3130_v12  ;;  %v3129_v15 = vadd.f32 1e-05, %v3127_v14  ;;  %v3434_v12 = vld [vmem:[#allocation11 + $0x118] sm:$0xff]  ;;  %v3417_v14 = vld [vmem:[#allocation11 + $0x90] sm:$0xff] }
0x1208   :  { %9221 = vrsqrt.f32 %v3129_v15  ;;  %v3449_v15 = vld [vmem:[#allocation11 + $0x190] sm:$0xff] }
0x1213   :  { %v9220_v53 = vpop.eup %9219 }
0x1214   :  { %v3134_v17 = vmul.f32 %v9220_v53, %v9817_v11  ;;  %v3461_v11 = vld [vmem:[#allocation11 + $0x1f0] sm:$0xff] }
0x1215   :  { %v9222_v55 = vpop.eup %9221  ;;  %v3401_v53 = vld [vmem:[#allocation11 + $0x10] sm:$0xff] }
0x1216   :  { %v3133_v16 = vmul.f32 %v9222_v55, %v9819_v13  ;;  %v3142_v22 = vmul.f32 %v7249_v18, %v3134_v17  ;;  %v3429_v13 = vld [vmem:[#allocation11 + $0xf0] sm:$0xff]  ;;  %v3448_v17 = vld [vmem:[#allocation11 + $0x188] sm:$0xff] }
0x1217   :  { %v3433_v55 = vld [vmem:[#allocation11 + $0x110] sm:$0xff] }
0x1218   :  { %v3141_v19 = vmul.f32 %v7249_v18, %v3133_v16  ;;  %v9839_v26 = vadd.f32 %v7250_v43, %v3142_v22  ;;  %v3416_v16 = vld [vmem:[#allocation11 + $0x88] sm:$0xff]  ;;  %v3447_v22 = vld [vmem:[#allocation11 + $0x180] sm:$0xff] }
0x1219   :  { %v3400_v18 = vld [vmem:[#allocation11 + $0x8] sm:$0xff] }
0x121a   :  { %v9833_v21 = vadd.f32 %v7250_v43, %v3141_v19  ;;  %v3432_v19 = vld [vmem:[#allocation11 + $0x108] sm:$0xff]  ;;  %v3415_v43 = vld [vmem:[#allocation11 + $0x80] sm:$0xff] }
0x121c   :  { %3302 = vmatmul.mubr.f32.vlgmr.msra.gmra.mxu1 %v9833_v21  ;;  %3379 = vmatmul.mubr.f32.vlgmr.msra.gmra.mxu0 %v9833_v21 }
0x121d   :  { %3307 = vmatprep.mubr.f32.mxu1 %v9449_v23  ;;  %3384 = vmatprep.mubr.f32.mxu0 %v9449_v23 }
0x121e   :  { %7601 = vmatpush3.msra.mxu1 %v3414_v24  ;;  %7639 = vmatpush3.msra.mxu0 %v3446_v25  ;;  %v3399_v24 = vld [vmem:[#allocation11] sm:$0xff] }
0x121f   :  { %7602 = vmatprep.subr.mxu1 %v3429_v13  ;;  %7640 = vmatprep.subr.mxu0 %v3461_v11  ;;  %v3431_v25 = vld [vmem:[#allocation11 + $0x100] sm:$0xff]  ;;  %v9844_v13 = vshrl.u32 %v166_v20, 7 }
0x1220   :  { %3308 = vmatmul.mubr.f32.gmra.mxu1 %v9839_v26  ;;  %3385 = vmatmul.mubr.f32.gmra.mxu0 %v9839_v26 }
0x1221   :  { %7603 = vmatpush3.msra.mxu1 %v3413_v27  ;;  %7641 = vmatpush3.msra.mxu0 %v3445_v28  ;;  %v3219_v11 = vsub.s32 0, %v9844_v13  ;;  %v3227_v27 = vsub.s32 2, %v9844_v13  ;;  %v3215_v28 = vld [vmem:[%s10172_s14] sm:$0xf] }
0x1222   :  { %7604 = vmatprep.subr.mxu1 %v3428_v29  ;;  %7642 = vmatprep.subr.mxu0 %v3460_v30  ;;  %v3223_v29 = vsub.s32 1, %v9844_v13  ;;  %v3231_v30 = vsub.s32 3, %v9844_v13 }
0x1223   :  { %7605 = vmatpush3.msra.mxu1 %v3412_v31  ;;  %7643 = vmatpush3.msra.mxu0 %v3444_v32  ;;  %v3220_v31 = vrot.slane %v3215_v28, %v3219_v11  ;;  %v3228_v32 = vrot.slane %v3215_v28, %v3227_v27 }
0x1224   :  { %7606 = vmatprep.subr.mxu1 %v3427_v33  ;;  %7644 = vmatprep.subr.mxu0 %v3459_v34  ;;  %v3224_v20 = vrot.slane %v3215_v28, %v3223_v29  ;;  %v3232_v33 = vrot.slane %v3215_v28, %v3231_v30 }
0x1225   :  { %7607 = vmatpush3.msra.mxu1 %v3411_v35  ;;  %7645 = vmatpush3.msra.mxu0 %v3443_v36 }
0x1226   :  { %7608 = vmatprep.subr.mxu1 %v3426_v38  ;;  %7646 = vmatprep.subr.mxu0 %v3458_v39 }
0x1227   :  { %7609 = vmatpush3.msra.mxu1 %v3410_v40  ;;  %7647 = vmatpush3.msra.mxu0 %v3442_v41 }
0x1228   :  { %7610 = vmatprep.subr.mxu1 %v3425_v42  ;;  %7648 = vmatprep.subr.mxu0 %v3457_v44 }
0x1229   :  { %7611 = vmatpush3.msra.mxu1 %v3409_v47  ;;  %7649 = vmatpush3.msra.mxu0 %v3441_v48 }
0x122a   :  { %7612 = vmatprep.subr.mxu1 %v3424_v37  ;;  %7650 = vmatprep.subr.mxu0 %v3456_v51 }
0x122b   :  { %7613 = vmatpush3.msra.mxu1 %v3408_v52  ;;  %7651 = vmatpush3.msra.mxu0 %v3440_v54 }
0x122c   :  { %7614 = vmatprep.subr.mxu1 %v3423_v56  ;;  %7652 = vmatprep.subr.mxu0 %v3455_v57 }
0x122d   :  { %7615 = vmatpush3.msra.mxu1 %v3407_v58  ;;  %7653 = vmatpush3.msra.mxu0 %v3439_v59 }
0x122e   :  { %7616 = vmatprep.subr.mxu1 %v3422_v60  ;;  %7654 = vmatprep.subr.mxu0 %v3454_v45 }
0x122f   :  { %7617 = vmatpush3.msra.mxu1 %v3406_v46  ;;  %7655 = vmatpush3.msra.mxu0 %v3438_v61 }
0x1230   :  { %7618 = vmatprep.subr.mxu1 %v3421_v62  ;;  %7656 = vmatprep.subr.mxu0 %v3453_v63 }
0x1231   :  { %7619 = vmatpush3.msra.mxu1 %v3405_v0  ;;  %7657 = vmatpush3.msra.mxu0 %v3437_v1  ;;  %v7251_v1 = vld [vmem:[%s10174_s16] ss:$0 sm:$0xff] }
0x1232   :  { %7620 = vmatprep.subr.mxu1 %v3420_v2  ;;  %7658 = vmatprep.subr.mxu0 %v3452_v3 }
0x1233   :  { %7621 = vmatpush3.msra.mxu1 %v3404_v4  ;;  %7659 = vmatpush3.msra.mxu0 %v3436_v5 }
0x1234   :  { %7622 = vmatprep.subr.mxu1 %v3419_v6  ;;  %7660 = vmatprep.subr.mxu0 %v3451_v50 }
0x1235   :  { %7623 = vmatpush3.msra.mxu1 %v3403_v7  ;;  %7661 = vmatpush3.msra.mxu0 %v3435_v8 }
0x1236   :  { %7624 = vmatprep.subr.mxu1 %v3418_v49  ;;  %7662 = vmatprep.subr.mxu0 %v3450_v9 }
0x1237   :  { %7625 = vmatpush3.msra.mxu1 %v3402_v10  ;;  %7663 = vmatpush3.msra.mxu0 %v3434_v12 }
0x1238   :  { %7626 = vmatprep.subr.mxu1 %v3417_v14  ;;  %7664 = vmatprep.subr.mxu0 %v3449_v15 }
0x1239   :  { %7627 = vmatpush3.msra.mxu1 %v3401_v53  ;;  %7665 = vmatpush3.msra.mxu0 %v3433_v55 }
0x123a   :  { %7628 = vmatprep.subr.mxu1 %v3416_v16  ;;  %7666 = vmatprep.subr.mxu0 %v3448_v17  ;;  %v3680_v16 = vld [vmem:[#allocation2 + $0x278] sm:$0xff] }
0x123b   :  { %7629 = vmatpush3.msra.mxu1 %v3400_v18  ;;  %7667 = vmatpush3.msra.mxu0 %v3432_v19  ;;  %v3780_v17 = vld [vmem:[#allocation5 + $0x278] sm:$0xff]  ;;  %v3679_v18 = vld [vmem:[#allocation2 + $0x270] sm:$0xff] }
0x123c   :  { %7630 = vmatprep.subr.mxu1 %v3415_v43  ;;  %7668 = vmatprep.subr.mxu0 %v3447_v22  ;;  %v3779_v19 = vld [vmem:[#allocation5 + $0x270] sm:$0xff]  ;;  %v3678_v43 = vld [vmem:[#allocation2 + $0x268] sm:$0xff] }
0x123d   :  { %7631 = vmatpush3.msra.mxu1 %v3399_v24  ;;  %7669 = vmatpush3.msra.mxu0 %v3431_v25 }
0x123e   :  { %8592 = vmatprep.subr.mxu1 %v3680_v16  ;;  %8627 = vmatprep.subr.mxu0 %v3780_v17 }
0x12dc   :  { %v3303_v34 = vpop.f32.mrf.mxu1  ;;  %v3380_v35 = vpop.f32.mrf.mxu0 }
0x12dd   :  { %v3304_v36 = vadd.f32 %v3303_v34, %v3220_v31  ;;  %v3381_v38 = vadd.f32 %v3380_v35, %v3228_v32  ;;  %v3777_v34 = vld [vmem:[#allocation5 + $0x260] sm:$0xff]  ;;  %v3676_v35 = vld [vmem:[#allocation2 + $0x258] sm:$0xff] }
0x12de   :  { %v3305_v39 = vpop.f32.mrf.mxu1  ;;  %v3382_v40 = vpop.f32.mrf.mxu0 }
0x12df   :  { %v3306_v41 = vadd.f32 %v3305_v39, %v3224_v20  ;;  %v3383_v42 = vadd.f32 %v3382_v40, %v3232_v33  ;;  %v3391_v51 = vmax.f32 %v3304_v36, 0.0  ;;  %v3393_v52 = vmax.f32 %v3381_v38, 0.0  ;;  %v3776_v36 = vld [vmem:[#allocation5 + $0x258] sm:$0xff]  ;;  %v3675_v38 = vld [vmem:[#allocation2 + $0x250] sm:$0xff]  ;;  %v3674_v40 = vld [vmem:[#allocation2 + $0x248] sm:$0xff] }
0x12e0   :  { %v3309_v44 = vpop.f32.mrf.mxu1  ;;  %v3386_v47 = vpop.f32.mrf.mxu0  ;;  %v3775_v39 = vld [vmem:[#allocation5 + $0x250] sm:$0xff] }
0x12e1   :  { %v3392_v48 = vmax.f32 %v3306_v41, 0.0  ;;  %v3394_v37 = vmax.f32 %v3383_v42, 0.0  ;;  %v3310_v54 = vadd.f32 %v3309_v44, %v3220_v31  ;;  %v3387_v56 = vadd.f32 %v3386_v47, %v3228_v32  ;;  %v3774_v41 = vld [vmem:[#allocation5 + $0x248] sm:$0xff]  ;;  %v3673_v42 = vld [vmem:[#allocation2 + $0x240] sm:$0xff]  ;;  %v3672_v47 = vld [vmem:[#allocation2 + $0x238] sm:$0xff] }
0x12e2   :  { %v3311_v57 = vpop.f32.mrf.mxu1  ;;  %v3388_v58 = vpop.f32.mrf.mxu0  ;;  %v3773_v44 = vld [vmem:[#allocation5 + $0x240] sm:$0xff] }
0x12e3   :  { %v3312_v59 = vadd.f32 %v3311_v57, %v3224_v20  ;;  %v3389_v60 = vadd.f32 %v3388_v58, %v3232_v33  ;;  %3534 = vmatprep.mubr.f32.mxu1 %v3392_v48  ;;  %3609 = vmatprep.mubr.f32.mxu0 %v3394_v37  ;;  %v3395_v61 = vmax.f32 %v3310_v54, 0.0  ;;  %v3397_v62 = vmax.f32 %v3387_v56, 0.0  ;;  %v3778_v20 = vld [vmem:[#allocation5 + $0x268] sm:$0xff]  ;;  %v3677_v33 = vld [vmem:[#allocation2 + $0x260] sm:$0xff]  ;;  %v3772_v48 = vld [vmem:[#allocation5 + $0x238] sm:$0xff] }
0x12e4   :  { %3535 = vmatmul.mubr.f32.vlgmr.msra.gmra.mxu1 %v3391_v51  ;;  %3610 = vmatmul.mubr.f32.vlgmr.msra.gmra.mxu0 %v3393_v52  ;;  %v3671_v37 = vld [vmem:[#allocation2 + $0x230] sm:$0xff]  ;;  %v3670_v52 = vld [vmem:[#allocation2 + $0x228] sm:$0xff]  ;;  %v3669_v56 = vld [vmem:[#allocation2 + $0x220] sm:$0xff] }
0x12e5   :  { %v3396_v45 = vmax.f32 %v3312_v59, 0.0  ;;  %v3398_v46 = vmax.f32 %v3389_v60, 0.0  ;;  %8593 = vmatpush3.msra.mxu1 %v3680_v16  ;;  %8628 = vmatpush3.msra.mxu0 %v3780_v17  ;;  %v3771_v51 = vld [vmem:[#allocation5 + $0x230] sm:$0xff]  ;;  %v3770_v54 = vld [vmem:[#allocation5 + $0x228] sm:$0xff]  ;;  %v3769_v57 = vld [vmem:[#allocation5 + $0x220] sm:$0xff] }
0x12e6   :  { %8594 = vmatprep.subr.mxu1 %v3679_v18  ;;  %8629 = vmatprep.subr.mxu0 %v3779_v19  ;;  %v3668_v58 = vld [vmem:[#allocation2 + $0x218] sm:$0xff]  ;;  %v3667_v60 = vld [vmem:[#allocation2 + $0x210] sm:$0xff]  ;;  %v3878_v16 = vld [vmem:[#allocation7 + $0x268] sm:$0xff] }
0x12e7   :  { %3539 = vmatprep.mubr.f32.mxu1 %v3396_v45  ;;  %3614 = vmatprep.mubr.f32.mxu0 %v3398_v46  ;;  %v3768_v59 = vld [vmem:[#allocation5 + $0x218] sm:$0xff]  ;;  %v3767_v45 = vld [vmem:[#allocation5 + $0x210] sm:$0xff]  ;;  %v3666_v46 = vld [vmem:[#allocation2 + $0x208] sm:$0xff] }
0x12e8   :  { %3540 = vmatmul.mubr.f32.gmra.mxu1 %v3395_v61  ;;  %3615 = vmatmul.mubr.f32.gmra.mxu0 %v3397_v62  ;;  %v3766_v61 = vld [vmem:[#allocation5 + $0x208] sm:$0xff]  ;;  %v3665_v62 = vld [vmem:[#allocation2 + $0x200] sm:$0xff] }
0x12e9   :  { %8595 = vmatpush3.msra.mxu1 %v3679_v18  ;;  %8630 = vmatpush3.msra.mxu0 %v3779_v19  ;;  %v3877_v17 = vld [vmem:[#allocation7 + $0x260] sm:$0xff]  ;;  %v3876_v18 = vld [vmem:[#allocation7 + $0x258] sm:$0xff]  ;;  %v3875_v19 = vld [vmem:[#allocation7 + $0x250] sm:$0xff] }
0x12ea   :  { %8596 = vmatprep.subr.mxu1 %v3678_v43  ;;  %8631 = vmatprep.subr.mxu0 %v3778_v20 }
0x12eb   :  { %8597 = vmatpush3.msra.mxu1 %v3678_v43  ;;  %8632 = vmatpush3.msra.mxu0 %v3778_v20  ;;  %v3874_v43 = vld [vmem:[#allocation7 + $0x248] sm:$0xff]  ;;  %v3865_v20 = vld [vmem:[#allocation7 + $0x200] sm:$0xff] }
0x12ec   :  { %8598 = vmatprep.subr.mxu1 %v3677_v33  ;;  %8633 = vmatprep.subr.mxu0 %v3777_v34 }
0x12ed   :  { %8599 = vmatpush3.msra.mxu1 %v3677_v33  ;;  %8634 = vmatpush3.msra.mxu0 %v3777_v34  ;;  %v4496_v33 = vld [vmem:[#allocation5 + $0x2f8] sm:$0xff]  ;;  %v4495_v34 = vld [vmem:[#allocation5 + $0x2f0] sm:$0xff] }
0x12ee   :  { %8600 = vmatprep.subr.mxu1 %v3676_v35  ;;  %8635 = vmatprep.subr.mxu0 %v3776_v36 }
0x12ef   :  { %8601 = vmatpush3.msra.mxu1 %v3676_v35  ;;  %8636 = vmatpush3.msra.mxu0 %v3776_v36  ;;  %v4494_v35 = vld [vmem:[#allocation5 + $0x2e8] sm:$0xff]  ;;  %v4493_v36 = vld [vmem:[#allocation5 + $0x2e0] sm:$0xff] }
0x12f0   :  { %8602 = vmatprep.subr.mxu1 %v3675_v38  ;;  %8637 = vmatprep.subr.mxu0 %v3775_v39 }
0x12f1   :  { %8603 = vmatpush3.msra.mxu1 %v3675_v38  ;;  %8638 = vmatpush3.msra.mxu0 %v3775_v39  ;;  %v4492_v38 = vld [vmem:[#allocation5 + $0x2d8] sm:$0xff]  ;;  %v4491_v39 = vld [vmem:[#allocation5 + $0x2d0] sm:$0xff] }
0x12f2   :  { %8604 = vmatprep.subr.mxu1 %v3674_v40  ;;  %8639 = vmatprep.subr.mxu0 %v3774_v41 }
0x12f3   :  { %8605 = vmatpush3.msra.mxu1 %v3674_v40  ;;  %8640 = vmatpush3.msra.mxu0 %v3774_v41  ;;  %v4490_v40 = vld [vmem:[#allocation5 + $0x2c8] sm:$0xff]  ;;  %v4489_v41 = vld [vmem:[#allocation5 + $0x2c0] sm:$0xff] }
0x12f4   :  { %8606 = vmatprep.subr.mxu1 %v3673_v42  ;;  %8641 = vmatprep.subr.mxu0 %v3773_v44 }
0x12f5   :  { %8607 = vmatpush3.msra.mxu1 %v3673_v42  ;;  %8642 = vmatpush3.msra.mxu0 %v3773_v44  ;;  %v4488_v42 = vld [vmem:[#allocation5 + $0x2b8] sm:$0xff]  ;;  %v4487_v44 = vld [vmem:[#allocation5 + $0x2b0] sm:$0xff] }
0x12f6   :  { %8608 = vmatprep.subr.mxu1 %v3672_v47  ;;  %8643 = vmatprep.subr.mxu0 %v3772_v48 }
0x12f7   :  { %8609 = vmatpush3.msra.mxu1 %v3672_v47  ;;  %8644 = vmatpush3.msra.mxu0 %v3772_v48  ;;  %v4486_v47 = vld [vmem:[#allocation5 + $0x2a8] sm:$0xff]  ;;  %v4485_v48 = vld [vmem:[#allocation5 + $0x2a0] sm:$0xff] }
0x12f8   :  { %8610 = vmatprep.subr.mxu1 %v3671_v37  ;;  %8645 = vmatprep.subr.mxu0 %v3771_v51 }
0x12f9   :  { %8611 = vmatpush3.msra.mxu1 %v3671_v37  ;;  %8646 = vmatpush3.msra.mxu0 %v3771_v51  ;;  %v4484_v37 = vld [vmem:[#allocation5 + $0x298] sm:$0xff]  ;;  %v4483_v51 = vld [vmem:[#allocation5 + $0x290] sm:$0xff] }
0x12fa   :  { %8612 = vmatprep.subr.mxu1 %v3670_v52  ;;  %8647 = vmatprep.subr.mxu0 %v3770_v54 }
0x12fb   :  { %8613 = vmatpush3.msra.mxu1 %v3670_v52  ;;  %8648 = vmatpush3.msra.mxu0 %v3770_v54  ;;  %v4482_v52 = vld [vmem:[#allocation5 + $0x288] sm:$0xff]  ;;  %v4481_v54 = vld [vmem:[#allocation5 + $0x280] sm:$0xff] }
0x12fc   :  { %8614 = vmatprep.subr.mxu1 %v3669_v56  ;;  %8649 = vmatprep.subr.mxu0 %v3769_v57 }
0x12fd   :  { %8615 = vmatpush3.msra.mxu1 %v3669_v56  ;;  %8650 = vmatpush3.msra.mxu0 %v3769_v57 }
0x12fe   :  { %8616 = vmatprep.subr.mxu1 %v3668_v58  ;;  %8651 = vmatprep.subr.mxu0 %v3768_v59 }
0x12ff   :  { %8617 = vmatpush3.msra.mxu1 %v3668_v58  ;;  %8652 = vmatpush3.msra.mxu0 %v3768_v59  ;;  %v7256_v58 = vld [vmem:[%s10164_s6 + $0x4] ss:$0 sm:$0xff] }
0x1300   :  { %8618 = vmatprep.subr.mxu1 %v3667_v60  ;;  %8653 = vmatprep.subr.mxu0 %v3767_v45  ;;  %v7258_v59 = vld [vmem:[%s10165_s7 + $0x4] ss:$0 sm:$0xff] }
0x1301   :  { %8619 = vmatpush3.msra.mxu1 %v3667_v60  ;;  %8654 = vmatpush3.msra.mxu0 %v3767_v45 }
0x1302   :  { %8620 = vmatprep.subr.mxu1 %v3666_v46  ;;  %8655 = vmatprep.subr.mxu0 %v3766_v61 }
0x1303   :  { %8621 = vmatpush3.msra.mxu1 %v3666_v46  ;;  %8656 = vmatpush3.msra.mxu0 %v3766_v61 }
0x1304   :  { %8622 = vmatprep.subr.mxu1 %v3665_v62 }
0x1305   :  { %8623 = vmatpush3.msra.mxu1 %v3665_v62 }
0x13a4   :  { %v7632_v63 = vpop.f32.mrf.mxu1  ;;  %v7670_v0 = vpop.f32.mrf.mxu0 }
0x13a6   :  { %v7633_v2 = vpop.f32.mrf.mxu1  ;;  %v7671_v3 = vpop.f32.mrf.mxu0 }
0x13a7   :  { %v7634_v4 = vadd.f32 %v7633_v2, %v7632_v63  ;;  %v7672_v7 = vadd.f32 %v7671_v3, %v7670_v0  ;;  %v3765_v63 = vld [vmem:[#allocation5 + $0x200] sm:$0xff]  ;;  %v3880_v0 = vld [vmem:[#allocation7 + $0x278] sm:$0xff] }
0x13a8   :  { %v7635_v5 = vpop.f32.mrf.mxu1  ;;  %v7673_v6 = vpop.f32.mrf.mxu0  ;;  %8657 = vmatprep.subr.mxu0 %v3765_v63  ;;  %8662 = vmatprep.subr.mxu1 %v3880_v0 }
0x13a9   :  { %v3537_v50 = vadd.f32 %v7634_v4, %v7251_v1  ;;  %8658 = vmatpush3.msra.mxu0 %v3765_v63 }
0x13aa   :  { %v7636_v8 = vpop.f32.mrf.mxu1  ;;  %v7674_v49 = vpop.f32.mrf.mxu0  ;;  %8697 = vmatprep.subr.mxu0 %v9449_v23 }
0x13ab   :  { %v3612_v9 = vadd.f32 %v7672_v7, %v3537_v50  ;;  %v7637_v10 = vadd.f32 %v7636_v8, %v7635_v5  ;;  %v7675_v14 = vadd.f32 %v7674_v49, %v7673_v6  ;;  %v7252_v7 = vld [vmem:[%s10175_s17] ss:$0 sm:$0xff] }
0x13ac   :  { %v7253_v49 = vld [vmem:[%s10176_s18] ss:$0 sm:$0xff] }
0x13ad   :  { %v3542_v12 = vadd.f32 %v7637_v10, %v7251_v1  ;;  %v3620_v15 = vadd.f32 %v3612_v9, %v9833_v21 }
0x13af   :  { %v3617_v53 = vadd.f32 %v7675_v14, %v3542_v12  ;;  %3624 = vadd.xlane.f32.xlu1 %v3620_v15 }
0x13b1   :  { %v3621_v55 = vadd.f32 %v3617_v53, %v9839_v26 }
0x13b3   :  { %3626 = vadd.xlane.f32.xlu0 %v3621_v55 }
0x1438   :  { %v3625_v21 = vpop.xlane.xlu1 %3624 }
0x1439   :  { %v3628_v22 = vmul.f32 0.0078125, %v3625_v21  ;;  %v3873_v21 = vld [vmem:[#allocation7 + $0x240] sm:$0xff] }
0x143b   :  { %v9866_v24 = vsub.f32 %v3620_v15, %v3628_v22  ;;  %v3872_v22 = vld [vmem:[#allocation7 + $0x238] sm:$0xff] }
0x143c   :  { %v3627_v26 = vpop.xlane.xlu0 %3626 }
0x143d   :  { %v3629_v25 = vmul.f32 0.0078125, %v3627_v26  ;;  %v3632_v28 = vmul.f32 %v9866_v24, %v9866_v24  ;;  %v3870_v26 = vld [vmem:[#allocation7 + $0x228] sm:$0xff] }
0x143f   :  { %v9870_v31 = vsub.f32 %v3621_v55, %v3629_v25  ;;  %3634 = vadd.xlane.f32.xlu1 %v3632_v28  ;;  %v3879_v55 = vld [vmem:[#allocation7 + $0x270] sm:$0xff]  ;;  %v3869_v25 = vld [vmem:[#allocation7 + $0x220] sm:$0xff]  ;;  %v3868_v28 = vld [vmem:[#allocation7 + $0x218] sm:$0xff] }
0x1441   :  { %v3633_v32 = vmul.f32 %v9870_v31, %v9870_v31 }
0x1443   :  { %3636 = vadd.xlane.f32.xlu0 %v3633_v32  ;;  %v3866_v32 = vld [vmem:[#allocation7 + $0x208] sm:$0xff] }
0x14c8   :  { %v3635_v1 = vpop.xlane.xlu1 %3634 }
0x14c9   :  { %v3638_v2 = vmul.f32 0.0078125, %v3635_v1 }
0x14cb   :  { %v3640_v3 = vadd.f32 1e-05, %v3638_v2  ;;  %v7260_v2 = vld [vmem:[%s10166_s8 + $0x4] ss:$0 sm:$0xff] }
0x14cc   :  { %v3637_v4 = vpop.xlane.xlu0 %3636 }
0x14cd   :  { %9223 = vrsqrt.f32 %v3640_v3  ;;  %v3639_v5 = vmul.f32 0.0078125, %v3637_v4 }
0x14cf   :  { %v3641_v6 = vadd.f32 1e-05, %v3639_v5 }
0x14d1   :  { %9225 = vrsqrt.f32 %v3641_v6 }
0x14da   :  { %v9224_v50 = vpop.eup %9223 }
0x14db   :  { %v3644_v8 = vmul.f32 %v9224_v50, %v9866_v24  ;;  %v3871_v24 = vld [vmem:[#allocation7 + $0x230] sm:$0xff]  ;;  %v7273_v50 = vld [vmem:[%s10165_s7 + $0x5] ss:$0 sm:$0xff] }
0x14dd   :  { %v3652_v9 = vmul.f32 %v7252_v7, %v3644_v8 }
0x14de   :  { %v9226_v10 = vpop.eup %9225 }
0x14df   :  { %v9882_v12 = vadd.f32 %v7253_v49, %v3652_v9  ;;  %v3645_v14 = vmul.f32 %v9226_v10, %v9870_v31  ;;  %v3867_v31 = vld [vmem:[#allocation7 + $0x210] sm:$0xff] }
0x14e1   :  { %v3653_v15 = vmul.f32 %v7252_v7, %v3645_v14  ;;  %8624 = vmatprep.mubr.f32.mxu1 %v9882_v12  ;;  %8659 = vmatprep.mubr.f32.mxu0 %v9882_v12 }
0x14e3   :  { %v9887_v53 = vadd.f32 %v7253_v49, %v3653_v15 }
0x14e5   :  { %8625 = vmatmul.mubr.f32.vlgmr.msra.gmra.mxu1 %v9887_v53  ;;  %8660 = vmatmul.mubr.f32.vlgmr.msra.gmra.mxu0 %v9887_v53 }
0x14e6   :  { %8663 = vmatpush3.msra.mxu1 %v3880_v0  ;;  %8694 = vmatprep.mubr.f32.mxu1 %v9882_v12 }
0x14e7   :  { %8664 = vmatprep.subr.mxu1 %v3879_v55  ;;  %8699 = vmatprep.mubr.msk.f32.mxu0 %vm9450_vm3, %v9449_v23 }
0x14e8   :  { %8665 = vmatpush3.msra.mxu1 %v3879_v55 }
0x14e9   :  { %8666 = vmatprep.subr.mxu1 %v3878_v16 }
0x14ea   :  { %8667 = vmatpush3.msra.mxu1 %v3878_v16 }
0x14eb   :  { %8668 = vmatprep.subr.mxu1 %v3877_v17 }
0x14ec   :  { %8669 = vmatpush3.msra.mxu1 %v3877_v17 }
0x14ed   :  { %8670 = vmatprep.subr.mxu1 %v3876_v18 }
0x14ee   :  { %8671 = vmatpush3.msra.mxu1 %v3876_v18 }
0x14ef   :  { %8672 = vmatprep.subr.mxu1 %v3875_v19 }
0x14f0   :  { %8673 = vmatpush3.msra.mxu1 %v3875_v19 }
0x14f1   :  { %8674 = vmatprep.subr.mxu1 %v3874_v43 }
0x14f2   :  { %8675 = vmatpush3.msra.mxu1 %v3874_v43 }
0x14f3   :  { %8676 = vmatprep.subr.mxu1 %v3873_v21 }
0x14f4   :  { %8677 = vmatpush3.msra.mxu1 %v3873_v21 }
0x14f5   :  { %8678 = vmatprep.subr.mxu1 %v3872_v22 }
0x14f6   :  { %8679 = vmatpush3.msra.mxu1 %v3872_v22 }
0x14f7   :  { %8680 = vmatprep.subr.mxu1 %v3871_v24 }
0x14f8   :  { %8681 = vmatpush3.msra.mxu1 %v3871_v24 }
0x14f9   :  { %8682 = vmatprep.subr.mxu1 %v3870_v26 }
0x14fa   :  { %8683 = vmatpush3.msra.mxu1 %v3870_v26 }
0x14fb   :  { %8684 = vmatprep.subr.mxu1 %v3869_v25 }
0x14fc   :  { %8685 = vmatpush3.msra.mxu1 %v3869_v25 }
0x14fd   :  { %8686 = vmatprep.subr.mxu1 %v3868_v28 }
0x14fe   :  { %8687 = vmatpush3.msra.mxu1 %v3868_v28 }
0x14ff   :  { %8688 = vmatprep.subr.mxu1 %v3867_v31 }
0x1500   :  { %8689 = vmatpush3.msra.mxu1 %v3867_v31 }
0x1501   :  { %8690 = vmatprep.subr.mxu1 %v3866_v32 }
0x1502   :  { %8691 = vmatpush3.msra.mxu1 %v3866_v32 }
0x1503   :  { %8692 = vmatprep.subr.mxu1 %v3865_v20 }
0x1504   :  { %8693 = vmatpush3.msra.mxu1 %v3865_v20 }
0x1505   :  { %8695 = vmatmul.mubr.f32.vlgmr.msra.gmra.mxu1 %v9887_v53  ;;  %8763 = vmatprep.subr.mxu1 %v4496_v33 }
0x1506   :  { %8764 = vmatpush3.msra.mxu1 %v4496_v33  ;;  %8795 = vmatprep.mubr.f32.mxu1 %v9882_v12 }
0x1507   :  { %8765 = vmatprep.subr.mxu1 %v4495_v34 }
0x1508   :  { %8766 = vmatpush3.msra.mxu1 %v4495_v34 }
0x1509   :  { %8767 = vmatprep.subr.mxu1 %v4494_v35 }
0x150a   :  { %8768 = vmatpush3.msra.mxu1 %v4494_v35  ;;  %v4290_v35 = vld [vmem:[#allocation8 + $0x98] sm:$0xff] }
0x150b   :  { %8769 = vmatprep.subr.mxu1 %v4493_v36 }
0x150c   :  { %8770 = vmatpush3.msra.mxu1 %v4493_v36 }
0x150d   :  { %8771 = vmatprep.subr.mxu1 %v4492_v38 }
0x150e   :  { %8772 = vmatpush3.msra.mxu1 %v4492_v38 }
0x150f   :  { %8773 = vmatprep.subr.mxu1 %v4491_v39 }
0x1510   :  { %8774 = vmatpush3.msra.mxu1 %v4491_v39  ;;  %v4289_v39 = vld [vmem:[#allocation8 + $0x90] sm:$0xff] }
0x1511   :  { %8775 = vmatprep.subr.mxu1 %v4490_v40 }
0x1512   :  { %8776 = vmatpush3.msra.mxu1 %v4490_v40  ;;  %v4288_v40 = vld [vmem:[#allocation8 + $0x88] sm:$0xff] }
0x1513   :  { %8777 = vmatprep.subr.mxu1 %v4489_v41 }
0x1514   :  { %8778 = vmatpush3.msra.mxu1 %v4489_v41  ;;  %v4287_v41 = vld [vmem:[#allocation8 + $0x80] sm:$0xff] }
0x1515   :  { %8779 = vmatprep.subr.mxu1 %v4488_v42 }
0x1516   :  { %8780 = vmatpush3.msra.mxu1 %v4488_v42  ;;  %v4396_v42 = vld [vmem:[#allocation2 + $0x2f8] sm:$0xff] }
0x1517   :  { %8781 = vmatprep.subr.mxu1 %v4487_v44 }
0x1518   :  { %8782 = vmatpush3.msra.mxu1 %v4487_v44 }
0x1519   :  { %8783 = vmatprep.subr.mxu1 %v4486_v47 }
0x151a   :  { %8784 = vmatpush3.msra.mxu1 %v4486_v47 }
0x151b   :  { %8785 = vmatprep.subr.mxu1 %v4485_v48 }
0x151c   :  { %8786 = vmatpush3.msra.mxu1 %v4485_v48 }
0x151d   :  { %8787 = vmatprep.subr.mxu1 %v4484_v37 }
0x151e   :  { %8788 = vmatpush3.msra.mxu1 %v4484_v37  ;;  %v4395_v37 = vld [vmem:[#allocation2 + $0x2f0] sm:$0xff] }
0x151f   :  { %8789 = vmatprep.subr.mxu1 %v4483_v51 }
0x1520   :  { %8790 = vmatpush3.msra.mxu1 %v4483_v51 }
0x1521   :  { %8791 = vmatprep.subr.mxu1 %v4482_v52 }
0x1522   :  { %8792 = vmatpush3.msra.mxu1 %v4482_v52  ;;  %v4394_v52 = vld [vmem:[#allocation2 + $0x2e8] sm:$0xff] }
0x1523   :  { %8793 = vmatprep.subr.mxu1 %v4481_v54 }
0x1524   :  { %8794 = vmatpush3.msra.mxu1 %v4481_v54  ;;  %v4393_v54 = vld [vmem:[#allocation2 + $0x2e0] sm:$0xff] }
0x1525   :  { %8796 = vmatmul.mubr.f32.vlgmr.msra.gmra.mxu1 %v9887_v53  ;;  %8833 = vmatprep.subr.mxu1 %v9449_v23 }
0x1526   :  { %8835 = vmatprep.mubr.msk.f32.mxu1 %vm9450_vm3, %v9449_v23 }
0x15a5   :  { %v8626_v56 = vpop.f32.mrf.mxu1  ;;  %v8661_v57 = vpop.f32.mrf.mxu0 }
0x15a6   :  { %v3761_v63 = vadd.f32 %v8626_v56, %v7256_v58  ;;  %v3861_v0 = vadd.f32 %v8661_v57, %v7258_v59  ;;  %v4392_v56 = vld [vmem:[#allocation2 + $0x2d8] sm:$0xff]  ;;  %v4391_v57 = vld [vmem:[#allocation2 + $0x2d0] sm:$0xff] }
0x15a7   :  { %v3755_v60 = vpop.f32.mrf.mxu1  ;;  %v3855_v45 = vpop.f32.mrf.mxu0 }
0x15a8   :  { %v3756_v46 = vadd.f32 %v7256_v58, %v3755_v60  ;;  %v3856_v61 = vadd.f32 %v7258_v59, %v3855_v45  ;;  %v3965_v1 = vmul.f32 0.17677669, %v3761_v63  ;;  %v4390_v58 = vld [vmem:[#allocation2 + $0x2c8] sm:$0xff]  ;;  %v4389_v59 = vld [vmem:[#allocation2 + $0x2c0] sm:$0xff]  ;;  %v4388_v60 = vld [vmem:[#allocation2 + $0x2b8] sm:$0xff] }
0x15a9   :  { %v4387_v45 = vld [vmem:[#allocation2 + $0x2b0] sm:$0xff] }
0x15aa   :  { %v3964_v62 = vmul.f32 0.17677669, %v3756_v46  ;;  %8698 = vmatpush3.xpose.msk.msra.mxu0 %vm563_vm4, %v3856_v61  ;;  %v4386_v46 = vld [vmem:[#allocation2 + $0x2a8] sm:$0xff]  ;;  %v4385_v61 = vld [vmem:[#allocation2 + $0x2a0] sm:$0xff]  ;;  %v4383_v63 = vld [vmem:[#allocation2 + $0x290] sm:$0xff] }
0x15ab   :  { %8702 = vmatprep.subr.mxu0 %v9449_v23 }
0x15ad   :  { %8700 = vmatmul.mubr.msk.f32.vlgmr.msra.gmra.mxu0 %vm563_vm4, %v3964_v62  ;;  %v4384_v62 = vld [vmem:[#allocation2 + $0x298] sm:$0xff] }
0x15ae   :  { %8703 = vmatpush3.xpose.msk.msra.mxu0 %vm563_vm4, %v3861_v0  ;;  %8704 = vmatprep.mubr.msk.f32.mxu0 %vm9450_vm3, %v9449_v23  ;;  %v4382_v0 = vld [vmem:[#allocation2 + $0x288] sm:$0xff] }
0x15af   :  { %8707 = vmatprep.subr.mxu0 %v9449_v23 }
0x15b1   :  { %8705 = vmatmul.mubr.msk.f32.vlgmr.msra.gmra.mxu0 %vm563_vm4, %v3965_v1  ;;  %v4381_v1 = vld [vmem:[#allocation2 + $0x280] sm:$0xff] }
0x15b2   :  { %8709 = vmatprep.mubr.msk.f32.mxu0 %vm9450_vm3, %v9449_v23 }
0x15c5   :  { %v8696_v3 = vpop.f32.mrf.mxu1 }
0x15c6   :  { %v3961_v4 = vadd.f32 %v8696_v3, %v7260_v2  ;;  %v4595_v3 = vld [vmem:[#allocation7 + $0x2f0] sm:$0xff] }
0x15c7   :  { %v3955_v5 = vpop.f32.mrf.mxu1 }
0x15c8   :  { %v3956_v6 = vadd.f32 %v7260_v2, %v3955_v5  ;;  %v4596_v2 = vld [vmem:[#allocation7 + $0x2f8] sm:$0xff]  ;;  %v4593_v5 = vld [vmem:[#allocation7 + $0x2e0] sm:$0xff] }
0x15ca   :  { %8708 = vmatpush3.msra.mxu0 %v3956_v6  ;;  %v4592_v6 = vld [vmem:[#allocation7 + $0x2d8] sm:$0xff] }
0x15cb   :  { %8712 = vmatprep.subr.mxu0 %v9449_v23 }
0x15e5   :  { %v8797_v7 = vpop.f32.mrf.mxu1 }
0x15e6   :  { %v9923_v8 = vadd.f32 %v8797_v7, %v7273_v50  ;;  %v4590_v7 = vld [vmem:[#allocation7 + $0x2c8] sm:$0xff] }
0x15e7   :  { %v4571_v49 = vpop.f32.mrf.mxu1 }
0x15e8   :  { %v4572_v9 = vadd.f32 %v7273_v50, %v4571_v49  ;;  %v4591_v50 = vld [vmem:[#allocation7 + $0x2d0] sm:$0xff]  ;;  %v4589_v49 = vld [vmem:[#allocation7 + $0x2c0] sm:$0xff] }
0x15ea   :  { %8834 = vmatpush3.xpose.msk.msra.mxu1 %vm563_vm4, %v4572_v9  ;;  %v4588_v9 = vld [vmem:[#allocation7 + $0x2b8] sm:$0xff] }
0x15eb   :  { %8838 = vmatprep.subr.mxu1 %v9449_v23 }
0x166d   :  { %v4038_v10 = vpop.f32.mrf.mxu0 }
0x166e   :  { %v4118_v14 = vsel %vm716_vm5, %v4038_v10, -inf }
0x166f   :  { %4119 = vmax.xlane.f32.xlu1 %v4118_v14  ;;  %v8701_v15 = vpop.f32.mrf.mxu0  ;;  %v4586_v14 = vld [vmem:[#allocation7 + $0x2a8] sm:$0xff] }
0x1670   :  { %v4585_v15 = vld [vmem:[#allocation7 + $0x2a0] sm:$0xff] }
0x1671   :  { %v4114_v55 = vpop.f32.mrf.mxu0 }
0x1672   :  { %v4121_v16 = vsel %vm716_vm5, %v4114_v55, -inf }
0x1673   :  { %4122 = vmax.xlane.f32.xlu0 %v4121_v16  ;;  %v8706_v17 = vpop.f32.mrf.mxu0  ;;  %v4583_v16 = vld [vmem:[#allocation7 + $0x290] sm:$0xff] }
0x1674   :  { %v4582_v17 = vld [vmem:[#allocation7 + $0x288] sm:$0xff] }
0x16f8   :  { %v4120_v18 = vpop.xlane.xlu1 %4119 }
0x16f9   :  { %v4124_v19 = vsub.f32 %v4038_v10, %v4120_v18  ;;  %v4587_v10 = vld [vmem:[#allocation7 + $0x2b0] sm:$0xff]  ;;  %v4581_v18 = vld [vmem:[#allocation7 + $0x280] sm:$0xff] }
0x16fb   :  { %v4126_v43 = vmul.f32 1.442695, %v4124_v19  ;;  %v5206_v19 = vld [vmem:[#allocation5 + $0x378] sm:$0xff] }
0x16fc   :  { %v4123_v21 = vpop.xlane.xlu0 %4122 }
0x16fd   :  { %9227 = vpow2.f32 %v4126_v43  ;;  %v4125_v22 = vsub.f32 %v4114_v55, %v4123_v21  ;;  %v4584_v55 = vld [vmem:[#allocation7 + $0x298] sm:$0xff]  ;;  %v5205_v43 = vld [vmem:[#allocation5 + $0x370] sm:$0xff]  ;;  %v5204_v21 = vld [vmem:[#allocation5 + $0x368] sm:$0xff] }
0x16ff   :  { %v4128_v24 = vmul.f32 1.442695, %v4125_v22  ;;  %v5203_v22 = vld [vmem:[#allocation5 + $0x360] sm:$0xff] }
0x1701   :  { %9229 = vpow2.f32 %v4128_v24  ;;  %v5202_v24 = vld [vmem:[#allocation5 + $0x358] sm:$0xff] }
0x170a   :  { %v9228_v26 = vpop.eup %9227 }
0x170b   :  { %v4130_v25 = vsel %vm716_vm5, %v9228_v26, 0.0 }
0x170c   :  { %4131 = vadd.xlane.f32.xlu1 %v4130_v25  ;;  %v5200_v25 = vld [vmem:[#allocation5 + $0x348] sm:$0xff] }
0x170e   :  { %v9230_v28 = vpop.eup %9229 }
0x170f   :  { %v4133_v31 = vsel %vm716_vm5, %v9230_v28, 0.0 }
0x1710   :  { %4134 = vadd.xlane.f32.xlu0 %v4133_v31  ;;  %v5198_v31 = vld [vmem:[#allocation5 + $0x338] sm:$0xff] }
0x1795   :  { %v4132_v32 = vpop.xlane.xlu1 %4131 }
0x1796   :  { %9231 = vrcp.f32 %v4132_v32  ;;  %v5197_v32 = vld [vmem:[#allocation5 + $0x330] sm:$0xff] }
0x1799   :  { %v4135_v20 = vpop.xlane.xlu0 %4134 }
0x179a   :  { %9233 = vrcp.f32 %v4135_v20  ;;  %v5196_v20 = vld [vmem:[#allocation5 + $0x328] sm:$0xff] }
0x17a3   :  { %v9232_v33 = vpop.eup %9231 }
0x17a4   :  { %v4138_v34 = vmul.f32 %v9232_v33, %v9228_v26  ;;  %v5201_v26 = vld [vmem:[#allocation5 + $0x350] sm:$0xff]  ;;  %v5195_v33 = vld [vmem:[#allocation5 + $0x320] sm:$0xff] }
0x17a6   :  { %8710 = vmatmul.mubr.msk.f32.vlgmr.msra.gmra.mxu0 %vm716_vm5, %v4138_v34  ;;  %v5194_v34 = vld [vmem:[#allocation5 + $0x318] sm:$0xff] }
0x17a7   :  { %v9234_v36 = vpop.eup %9233  ;;  %8713 = vmatpush3.msra.mxu0 %v3961_v4  ;;  %8714 = vmatprep.mubr.msk.f32.mxu0 %vm9450_vm3, %v9449_v23  ;;  %v4594_v4 = vld [vmem:[#allocation7 + $0x2e8] sm:$0xff] }
0x17a8   :  { %v4139_v38 = vmul.f32 %v9234_v36, %v9230_v28  ;;  %8717 = vmatprep.subr.mxu0 %v4290_v35  ;;  %v5199_v28 = vld [vmem:[#allocation5 + $0x340] sm:$0xff]  ;;  %v5192_v36 = vld [vmem:[#allocation5 + $0x308] sm:$0xff] }
0x17aa   :  { %8715 = vmatmul.mubr.msk.f32.vlgmr.msra.gmra.mxu0 %vm716_vm5, %v4139_v38  ;;  %v5191_v38 = vld [vmem:[#allocation5 + $0x300] sm:$0xff] }
0x17ab   :  { %8718 = vmatpush3.msra.mxu0 %v4290_v35  ;;  %v5193_v35 = vld [vmem:[#allocation5 + $0x310] sm:$0xff] }
0x17ac   :  { %8719 = vmatprep.subr.mxu0 %v4289_v39 }
0x17ad   :  { %8720 = vmatpush3.msra.mxu0 %v4289_v39 }
0x17ae   :  { %8721 = vmatprep.subr.mxu0 %v4288_v40 }
0x17af   :  { %8722 = vmatpush3.msra.mxu0 %v4288_v40 }
0x17b0   :  { %8723 = vmatprep.subr.mxu0 %v4287_v41 }
0x17b1   :  { %8724 = vmatpush3.msra.mxu0 %v4287_v41 }
0x17b2   :  { %8728 = vmatprep.subr.mxu0 %v4396_v42 }
0x1866   :  { %v4209_v44 = vpop.f32.mrf.mxu0 }
0x1867   :  { %8725 = vmatprep.mubr.msk.f32.mxu0 %vm563_vm4, %v4209_v44 }
0x1868   :  { %v8711_v47 = vpop.f32.mrf.mxu0 }
0x186a   :  { %v4282_v48 = vpop.f32.mrf.mxu0 }
0x186b   :  { %8726 = vmatmul.mubr.msk.f32.vlgmr.msra.gmra.mxu0 %vm563_vm4, %v4282_v48 }
0x186c   :  { %8729 = vmatpush3.msra.mxu0 %v4396_v42  ;;  %v8716_v51 = vpop.f32.mrf.mxu0  ;;  %8760 = vmatprep.mubr.f32.mxu0 %v9882_v12  ;;  %v7271_v42 = vld [vmem:[%s10164_s6 + $0x5] ss:$0 sm:$0xff] }
0x186d   :  { %8730 = vmatprep.subr.mxu0 %v4395_v37 }
0x186e   :  { %8731 = vmatpush3.msra.mxu0 %v4395_v37 }
0x186f   :  { %8732 = vmatprep.subr.mxu0 %v4394_v52 }
0x1870   :  { %8733 = vmatpush3.msra.mxu0 %v4394_v52  ;;  %v7275_v52 = vld [vmem:[%s10166_s8 + $0x5] ss:$0 sm:$0xff] }
0x1871   :  { %8734 = vmatprep.subr.mxu0 %v4393_v54 }
0x1872   :  { %8735 = vmatpush3.msra.mxu0 %v4393_v54 }
0x1873   :  { %8736 = vmatprep.subr.mxu0 %v4392_v56 }
0x1874   :  { %8737 = vmatpush3.msra.mxu0 %v4392_v56 }
0x1875   :  { %8738 = vmatprep.subr.mxu0 %v4391_v57 }
0x1876   :  { %8739 = vmatpush3.msra.mxu0 %v4391_v57 }
0x1877   :  { %8740 = vmatprep.subr.mxu0 %v4390_v58 }
0x1878   :  { %8741 = vmatpush3.msra.mxu0 %v4390_v58 }
0x1879   :  { %8742 = vmatprep.subr.mxu0 %v4389_v59 }
0x187a   :  { %8743 = vmatpush3.msra.mxu0 %v4389_v59 }
0x187b   :  { %8744 = vmatprep.subr.mxu0 %v4388_v60 }
0x187c   :  { %8745 = vmatpush3.msra.mxu0 %v4388_v60 }
0x187d   :  { %8746 = vmatprep.subr.mxu0 %v4387_v45 }
0x187e   :  { %8747 = vmatpush3.msra.mxu0 %v4387_v45 }
0x187f   :  { %8748 = vmatprep.subr.mxu0 %v4386_v46 }
0x1880   :  { %8749 = vmatpush3.msra.mxu0 %v4386_v46 }
0x1881   :  { %8750 = vmatprep.subr.mxu0 %v4385_v61 }
0x1882   :  { %8751 = vmatpush3.msra.mxu0 %v4385_v61 }
0x1883   :  { %8752 = vmatprep.subr.mxu0 %v4384_v62 }
0x1884   :  { %8753 = vmatpush3.msra.mxu0 %v4384_v62 }
0x1885   :  { %8754 = vmatprep.subr.mxu0 %v4383_v63 }
0x1886   :  { %8755 = vmatpush3.msra.mxu0 %v4383_v63 }
0x1887   :  { %8756 = vmatprep.subr.mxu0 %v4382_v0 }
0x1888   :  { %8757 = vmatpush3.msra.mxu0 %v4382_v0 }
0x1889   :  { %8758 = vmatprep.subr.mxu0 %v4381_v1 }
0x188a   :  { %8759 = vmatpush3.msra.mxu0 %v4381_v1 }
0x188b   :  { %8761 = vmatmul.mubr.f32.vlgmr.msra.gmra.mxu0 %v9887_v53  ;;  %8798 = vmatprep.subr.mxu0 %v4596_v2 }
0x188c   :  { %8799 = vmatpush3.msra.mxu0 %v4596_v2  ;;  %8830 = vmatprep.mubr.f32.mxu0 %v9882_v12 }
0x188d   :  { %8800 = vmatprep.subr.mxu0 %v4595_v3 }
0x188e   :  { %8801 = vmatpush3.msra.mxu0 %v4595_v3 }
0x188f   :  { %8802 = vmatprep.subr.mxu0 %v4594_v4 }
0x1890   :  { %8803 = vmatpush3.msra.mxu0 %v4594_v4 }
0x1891   :  { %8804 = vmatprep.subr.mxu0 %v4593_v5 }
0x1892   :  { %8805 = vmatpush3.msra.mxu0 %v4593_v5 }
0x1893   :  { %8806 = vmatprep.subr.mxu0 %v4592_v6 }
0x1894   :  { %8807 = vmatpush3.msra.mxu0 %v4592_v6 }
0x1895   :  { %8808 = vmatprep.subr.mxu0 %v4591_v50 }
0x1896   :  { %8809 = vmatpush3.msra.mxu0 %v4591_v50 }
0x1897   :  { %8810 = vmatprep.subr.mxu0 %v4590_v7 }
0x1898   :  { %8811 = vmatpush3.msra.mxu0 %v4590_v7 }
0x1899   :  { %8812 = vmatprep.subr.mxu0 %v4589_v49 }
0x189a   :  { %8813 = vmatpush3.msra.mxu0 %v4589_v49 }
0x189b   :  { %8814 = vmatprep.subr.mxu0 %v4588_v9 }
0x189c   :  { %8815 = vmatpush3.msra.mxu0 %v4588_v9 }
0x189d   :  { %8816 = vmatprep.subr.mxu0 %v4587_v10 }
0x189e   :  { %8817 = vmatpush3.msra.mxu0 %v4587_v10 }
0x189f   :  { %8818 = vmatprep.subr.mxu0 %v4586_v14 }
0x18a0   :  { %8819 = vmatpush3.msra.mxu0 %v4586_v14 }
0x18a1   :  { %8820 = vmatprep.subr.mxu0 %v4585_v15 }
0x18a2   :  { %8821 = vmatpush3.msra.mxu0 %v4585_v15 }
0x18a3   :  { %8822 = vmatprep.subr.mxu0 %v4584_v55 }
0x18a4   :  { %8823 = vmatpush3.msra.mxu0 %v4584_v55 }
0x18a5   :  { %8824 = vmatprep.subr.mxu0 %v4583_v16 }
0x18a6   :  { %8825 = vmatpush3.msra.mxu0 %v4583_v16 }
0x18a7   :  { %8826 = vmatprep.subr.mxu0 %v4582_v17 }
0x18a8   :  { %8827 = vmatpush3.msra.mxu0 %v4582_v17 }
0x18a9   :  { %8828 = vmatprep.subr.mxu0 %v4581_v18 }
0x18aa   :  { %8829 = vmatpush3.msra.mxu0 %v4581_v18  ;;  %v5006_v18 = vld [vmem:[#allocation8 + $0xb8] sm:$0xff] }
0x18ab   :  { %8831 = vmatmul.mubr.f32.vlgmr.msra.gmra.mxu0 %v9887_v53  ;;  %8899 = vmatprep.subr.mxu0 %v5206_v19 }
0x18ac   :  { %8900 = vmatpush3.msra.mxu0 %v5206_v19  ;;  %8931 = vmatprep.mubr.f32.mxu0 %v9882_v12 }
0x18ad   :  { %8901 = vmatprep.subr.mxu0 %v5205_v43 }
0x18ae   :  { %8902 = vmatpush3.msra.mxu0 %v5205_v43 }
0x18af   :  { %8903 = vmatprep.subr.mxu0 %v5204_v21 }
0x18b0   :  { %8904 = vmatpush3.msra.mxu0 %v5204_v21  ;;  %v5005_v21 = vld [vmem:[#allocation8 + $0xb0] sm:$0xff] }
0x18b1   :  { %8905 = vmatprep.subr.mxu0 %v5203_v22 }
0x18b2   :  { %8906 = vmatpush3.msra.mxu0 %v5203_v22  ;;  %v5004_v22 = vld [vmem:[#allocation8 + $0xa8] sm:$0xff] }
0x18b3   :  { %8907 = vmatprep.subr.mxu0 %v5202_v24 }
0x18b4   :  { %8908 = vmatpush3.msra.mxu0 %v5202_v24  ;;  %v5003_v24 = vld [vmem:[#allocation8 + $0xa0] sm:$0xff] }
0x18b5   :  { %8909 = vmatprep.subr.mxu0 %v5201_v26 }
0x18b6   :  { %8910 = vmatpush3.msra.mxu0 %v5201_v26  ;;  %v5106_v26 = vld [vmem:[#allocation2 + $0x378] sm:$0xff] }
0x18b7   :  { %8911 = vmatprep.subr.mxu0 %v5200_v25 }
0x18b8   :  { %8912 = vmatpush3.msra.mxu0 %v5200_v25 }
0x18b9   :  { %8913 = vmatprep.subr.mxu0 %v5199_v28 }
0x18ba   :  { %8914 = vmatpush3.msra.mxu0 %v5199_v28 }
0x18bb   :  { %8915 = vmatprep.subr.mxu0 %v5198_v31 }
0x18bc   :  { %8916 = vmatpush3.msra.mxu0 %v5198_v31 }
0x18bd   :  { %8917 = vmatprep.subr.mxu0 %v5197_v32 }
0x18be   :  { %8918 = vmatpush3.msra.mxu0 %v5197_v32  ;;  %v5105_v32 = vld [vmem:[#allocation2 + $0x370] sm:$0xff] }
0x18bf   :  { %8919 = vmatprep.subr.mxu0 %v5196_v20 }
0x18c0   :  { %8920 = vmatpush3.msra.mxu0 %v5196_v20 }
0x18c1   :  { %8921 = vmatprep.subr.mxu0 %v5195_v33 }
0x18c2   :  { %8922 = vmatpush3.msra.mxu0 %v5195_v33  ;;  %v5104_v33 = vld [vmem:[#allocation2 + $0x368] sm:$0xff] }
0x18c3   :  { %8923 = vmatprep.subr.mxu0 %v5194_v34 }
0x18c4   :  { %8924 = vmatpush3.msra.mxu0 %v5194_v34  ;;  %v5103_v34 = vld [vmem:[#allocation2 + $0x360] sm:$0xff] }
0x18c5   :  { %8925 = vmatprep.subr.mxu0 %v5193_v35 }
0x18c6   :  { %8926 = vmatpush3.msra.mxu0 %v5193_v35  ;;  %v5102_v35 = vld [vmem:[#allocation2 + $0x358] sm:$0xff] }
0x18c7   :  { %8927 = vmatprep.subr.mxu0 %v5192_v36 }
0x18c8   :  { %8928 = vmatpush3.msra.mxu0 %v5192_v36  ;;  %v5101_v36 = vld [vmem:[#allocation2 + $0x350] sm:$0xff] }
0x18c9   :  { %8929 = vmatprep.subr.mxu0 %v5191_v38 }
0x18ca   :  { %8930 = vmatpush3.msra.mxu0 %v5191_v38  ;;  %v5100_v38 = vld [vmem:[#allocation2 + $0x348] sm:$0xff] }
0x18cb   :  { %8932 = vmatmul.mubr.f32.vlgmr.msra.gmra.mxu0 %v9887_v53  ;;  %8969 = vmatprep.subr.mxu0 %v9449_v23 }
0x18cc   :  { %8971 = vmatprep.mubr.msk.f32.mxu0 %vm9450_vm3, %v9449_v23 }
0x192b   :  { %v9946_v39 = vpop.f32.mrf.mxu0 }
0x192d   :  { %v9948_v40 = vpop.f32.mrf.mxu0 }
0x194b   :  { %v8762_v41 = vpop.f32.mrf.mxu0 }
0x194c   :  { %v4477_v48 = vadd.f32 %v8762_v41, %v7271_v42  ;;  %v5099_v41 = vld [vmem:[#allocation2 + $0x340] sm:$0xff] }
0x194d   :  { %v4471_v44 = vpop.f32.mrf.mxu0 }
0x194e   :  { %v4472_v47 = vadd.f32 %v7271_v42, %v4471_v44  ;;  %v4681_v51 = vmul.f32 0.17677669, %v4477_v48  ;;  %v5098_v42 = vld [vmem:[#allocation2 + $0x338] sm:$0xff]  ;;  %v5097_v44 = vld [vmem:[#allocation2 + $0x330] sm:$0xff]  ;;  %v5095_v48 = vld [vmem:[#allocation2 + $0x320] sm:$0xff] }
0x1950   :  { %v4680_v37 = vmul.f32 0.17677669, %v4472_v47  ;;  %v5096_v47 = vld [vmem:[#allocation2 + $0x328] sm:$0xff] }
0x1952   :  { %8836 = vmatmul.mubr.msk.f32.vlgmr.msra.gmra.mxu1 %vm563_vm4, %v4680_v37  ;;  %v5094_v37 = vld [vmem:[#allocation2 + $0x318] sm:$0xff] }
0x1953   :  { %8839 = vmatpush3.xpose.msk.msra.mxu1 %vm563_vm4, %v9923_v8  ;;  %8840 = vmatprep.mubr.msk.f32.mxu1 %vm9450_vm3, %v9449_v23  ;;  %v7287_v8 = vld [vmem:[%s10165_s7 + $0x6] ss:$0 sm:$0xff] }
0x1954   :  { %8843 = vmatprep.subr.mxu1 %v9449_v23 }
0x1956   :  { %8841 = vmatmul.mubr.msk.f32.vlgmr.msra.gmra.mxu1 %vm563_vm4, %v4681_v51  ;;  %v5093_v51 = vld [vmem:[#allocation2 + $0x310] sm:$0xff] }
0x1957   :  { %8845 = vmatprep.mubr.msk.f32.mxu1 %vm9450_vm3, %v9449_v23 }
0x196b   :  { %v8832_v54 = vpop.f32.mrf.mxu0 }
0x196c   :  { %v4677_v56 = vadd.f32 %v8832_v54, %v7275_v52  ;;  %v5091_v54 = vld [vmem:[#allocation2 + $0x300] sm:$0xff] }
0x196d   :  { %v4671_v57 = vpop.f32.mrf.mxu0 }
0x196e   :  { %v4672_v58 = vadd.f32 %v7275_v52, %v4671_v57  ;;  %v5092_v52 = vld [vmem:[#allocation2 + $0x308] sm:$0xff]  ;;  %v5305_v57 = vld [vmem:[#allocation7 + $0x370] sm:$0xff] }
0x1970   :  { %8844 = vmatpush3.msra.mxu1 %v4672_v58  ;;  %v5304_v58 = vld [vmem:[#allocation7 + $0x368] sm:$0xff] }
0x1971   :  { %8848 = vmatprep.subr.mxu1 %v9449_v23 }
0x198b   :  { %v8933_v59 = vpop.f32.mrf.mxu0 }
0x198c   :  { %v9969_v60 = vadd.f32 %v8933_v59, %v7287_v8  ;;  %v5302_v59 = vld [vmem:[#allocation7 + $0x358] sm:$0xff] }
0x198d   :  { %v5281_v45 = vpop.f32.mrf.mxu0 }
0x198e   :  { %v5282_v46 = vadd.f32 %v7287_v8, %v5281_v45  ;;  %v5303_v8 = vld [vmem:[#allocation7 + $0x360] sm:$0xff]  ;;  %v5301_v45 = vld [vmem:[#allocation7 + $0x350] sm:$0xff] }
0x1990   :  { %8970 = vmatpush3.xpose.msk.msra.mxu0 %vm563_vm4, %v5282_v46  ;;  %v5300_v46 = vld [vmem:[#allocation7 + $0x348] sm:$0xff] }
0x1991   :  { %8974 = vmatprep.subr.mxu0 %v9449_v23 }
0x1a12   :  { %v4754_v61 = vpop.f32.mrf.mxu1 }
0x1a13   :  { %v4834_v62 = vsel %vm716_vm5, %v4754_v61, -inf }
0x1a14   :  { %4835 = vmax.xlane.f32.xlu1 %v4834_v62  ;;  %v8837_v63 = vpop.f32.mrf.mxu1  ;;  %v5298_v62 = vld [vmem:[#allocation7 + $0x338] sm:$0xff] }
0x1a15   :  { %v5297_v63 = vld [vmem:[#allocation7 + $0x330] sm:$0xff] }
0x1a16   :  { %v4830_v0 = vpop.f32.mrf.mxu1 }
0x1a17   :  { %v4837_v1 = vsel %vm716_vm5, %v4830_v0, -inf }
0x1a18   :  { %4838 = vmax.xlane.f32.xlu0 %v4837_v1  ;;  %v8842_v2 = vpop.f32.mrf.mxu1  ;;  %v5295_v1 = vld [vmem:[#allocation7 + $0x320] sm:$0xff] }
0x1a19   :  { %v5294_v2 = vld [vmem:[#allocation7 + $0x318] sm:$0xff] }
0x1a9d   :  { %v4836_v3 = vpop.xlane.xlu1 %4835 }
0x1a9e   :  { %v4840_v4 = vsub.f32 %v4754_v61, %v4836_v3  ;;  %v5299_v61 = vld [vmem:[#allocation7 + $0x340] sm:$0xff]  ;;  %v5293_v3 = vld [vmem:[#allocation7 + $0x310] sm:$0xff] }
0x1aa0   :  { %v4842_v5 = vmul.f32 1.442695, %v4840_v4  ;;  %v5292_v4 = vld [vmem:[#allocation7 + $0x308] sm:$0xff] }
0x1aa1   :  { %v4839_v6 = vpop.xlane.xlu0 %4838 }
0x1aa2   :  { %9235 = vpow2.f32 %v4842_v5  ;;  %v4841_v50 = vsub.f32 %v4830_v0, %v4839_v6  ;;  %v5296_v0 = vld [vmem:[#allocation7 + $0x328] sm:$0xff]  ;;  %v5291_v5 = vld [vmem:[#allocation7 + $0x300] sm:$0xff]  ;;  %v5916_v6 = vld [vmem:[#allocation5 + $0x3f8] sm:$0xff] }
0x1aa4   :  { %v4844_v7 = vmul.f32 1.442695, %v4841_v50  ;;  %v5915_v50 = vld [vmem:[#allocation5 + $0x3f0] sm:$0xff] }
0x1aa6   :  { %9237 = vpow2.f32 %v4844_v7  ;;  %v5914_v7 = vld [vmem:[#allocation5 + $0x3e8] sm:$0xff] }
0x1aaf   :  { %v9236_v49 = vpop.eup %9235 }
0x1ab0   :  { %v4846_v9 = vsel %vm716_vm5, %v9236_v49, 0.0 }
0x1ab1   :  { %4847 = vadd.xlane.f32.xlu1 %v4846_v9  ;;  %v5912_v9 = vld [vmem:[#allocation5 + $0x3d8] sm:$0xff] }
0x1ab3   :  { %v9238_v10 = vpop.eup %9237 }
0x1ab4   :  { %v4849_v14 = vsel %vm716_vm5, %v9238_v10, 0.0 }
0x1ab5   :  { %4850 = vadd.xlane.f32.xlu0 %v4849_v14  ;;  %v5910_v14 = vld [vmem:[#allocation5 + $0x3c8] sm:$0xff] }
0x1b3a   :  { %v4848_v15 = vpop.xlane.xlu1 %4847 }
0x1b3b   :  { %9239 = vrcp.f32 %v4848_v15  ;;  %v5909_v15 = vld [vmem:[#allocation5 + $0x3c0] sm:$0xff] }
0x1b3e   :  { %v4851_v55 = vpop.xlane.xlu0 %4850 }
0x1b3f   :  { %9241 = vrcp.f32 %v4851_v55  ;;  %v5908_v55 = vld [vmem:[#allocation5 + $0x3b8] sm:$0xff] }
0x1b48   :  { %v9240_v16 = vpop.eup %9239 }
0x1b49   :  { %v4854_v17 = vmul.f32 %v9240_v16, %v9236_v49  ;;  %v5913_v49 = vld [vmem:[#allocation5 + $0x3e0] sm:$0xff]  ;;  %v5907_v16 = vld [vmem:[#allocation5 + $0x3b0] sm:$0xff] }
0x1b4b   :  { %8846 = vmatmul.mubr.msk.f32.vlgmr.msra.gmra.mxu1 %vm716_vm5, %v4854_v17  ;;  %v5906_v17 = vld [vmem:[#allocation5 + $0x3a8] sm:$0xff] }
0x1b4c   :  { %v9242_v19 = vpop.eup %9241  ;;  %8849 = vmatpush3.msra.mxu1 %v4677_v56  ;;  %8850 = vmatprep.mubr.msk.f32.mxu1 %vm9450_vm3, %v9449_v23  ;;  %v5306_v56 = vld [vmem:[#allocation7 + $0x378] sm:$0xff] }
0x1b4d   :  { %v4855_v43 = vmul.f32 %v9242_v19, %v9238_v10  ;;  %8853 = vmatprep.subr.mxu1 %v5006_v18  ;;  %v5911_v10 = vld [vmem:[#allocation5 + $0x3d0] sm:$0xff]  ;;  %v5904_v19 = vld [vmem:[#allocation5 + $0x398] sm:$0xff] }
0x1b4f   :  { %8851 = vmatmul.mubr.msk.f32.vlgmr.msra.gmra.mxu1 %vm716_vm5, %v4855_v43  ;;  %v5903_v43 = vld [vmem:[#allocation5 + $0x390] sm:$0xff] }
0x1b50   :  { %8854 = vmatpush3.msra.mxu1 %v5006_v18  ;;  %v5905_v18 = vld [vmem:[#allocation5 + $0x3a0] sm:$0xff] }
0x1b51   :  { %8855 = vmatprep.subr.mxu1 %v5005_v21 }
0x1b52   :  { %8856 = vmatpush3.msra.mxu1 %v5005_v21  ;;  %v5902_v21 = vld [vmem:[#allocation5 + $0x388] sm:$0xff] }
0x1b53   :  { %8857 = vmatprep.subr.mxu1 %v5004_v22 }
0x1b54   :  { %8858 = vmatpush3.msra.mxu1 %v5004_v22  ;;  %v5901_v22 = vld [vmem:[#allocation5 + $0x380] sm:$0xff] }
0x1b55   :  { %8859 = vmatprep.subr.mxu1 %v5003_v24 }
0x1b56   :  { %8860 = vmatpush3.msra.mxu1 %v5003_v24  ;;  %v7269_v24 = vld [vmem:[%s10168_s10 + $0x1] ss:$0 sm:$0xff] }
0x1b57   :  { %8864 = vmatprep.subr.mxu1 %v5106_v26 }
0x1c0b   :  { %v4925_v25 = vpop.f32.mrf.mxu1 }
0x1c0c   :  { %8861 = vmatprep.mubr.msk.f32.mxu1 %vm563_vm4, %v4925_v25 }
0x1c0d   :  { %v8847_v28 = vpop.f32.mrf.mxu1 }
0x1c0e   :  { %v4378_v28 = vadd.f32 %v7269_v24, %v9948_v40  ;;  %v7289_v40 = vld [vmem:[%s10166_s8 + $0x6] ss:$0 sm:$0xff] }
0x1c0f   :  { %v4998_v31 = vpop.f32.mrf.mxu1 }
0x1c10   :  { %8862 = vmatmul.mubr.msk.f32.vlgmr.msra.gmra.mxu1 %vm563_vm4, %v4998_v31 }
0x1c11   :  { %8865 = vmatpush3.msra.mxu1 %v5106_v26  ;;  %v8852_v20 = vpop.f32.mrf.mxu1  ;;  %8896 = vmatprep.mubr.f32.mxu1 %v9882_v12  ;;  %v4379_v26 = vadd.f32 %v9946_v39, %v7269_v24  ;;  %v5814_v24 = vld [vmem:[#allocation2 + $0x3e8] sm:$0xff] }
0x1c12   :  { %8866 = vmatprep.subr.mxu1 %v5105_v32 }
0x1c13   :  { %8867 = vmatpush3.msra.mxu1 %v5105_v32 }
0x1c14   :  { %8868 = vmatprep.subr.mxu1 %v5104_v33 }
0x1c15   :  { %8869 = vmatpush3.msra.mxu1 %v5104_v33 }
0x1c16   :  { %8870 = vmatprep.subr.mxu1 %v5103_v34 }
0x1c17   :  { %8871 = vmatpush3.msra.mxu1 %v5103_v34  ;;  %v7285_v34 = vld [vmem:[%s10164_s6 + $0x6] ss:$0 sm:$0xff] }
0x1c18   :  { %8872 = vmatprep.subr.mxu1 %v5102_v35 }
0x1c19   :  { %8873 = vmatpush3.msra.mxu1 %v5102_v35 }
0x1c1a   :  { %8874 = vmatprep.subr.mxu1 %v5101_v36 }
0x1c1b   :  { %8875 = vmatpush3.msra.mxu1 %v5101_v36 }
0x1c1c   :  { %8876 = vmatprep.subr.mxu1 %v5100_v38 }
0x1c1d   :  { %8877 = vmatpush3.msra.mxu1 %v5100_v38 }
0x1c1e   :  { %8878 = vmatprep.subr.mxu1 %v5099_v41 }
0x1c1f   :  { %8879 = vmatpush3.msra.mxu1 %v5099_v41 }
0x1c20   :  { %8880 = vmatprep.subr.mxu1 %v5098_v42 }
0x1c21   :  { %8881 = vmatpush3.msra.mxu1 %v5098_v42 }
0x1c22   :  { %8882 = vmatprep.subr.mxu1 %v5097_v44 }
0x1c23   :  { %8883 = vmatpush3.msra.mxu1 %v5097_v44 }
0x1c24   :  { %8884 = vmatprep.subr.mxu1 %v5096_v47 }
0x1c25   :  { %8885 = vmatpush3.msra.mxu1 %v5096_v47 }
0x1c26   :  { %8886 = vmatprep.subr.mxu1 %v5095_v48 }
0x1c27   :  { %8887 = vmatpush3.msra.mxu1 %v5095_v48 }
0x1c28   :  { %8888 = vmatprep.subr.mxu1 %v5094_v37 }
0x1c29   :  { %8889 = vmatpush3.msra.mxu1 %v5094_v37 }
0x1c2a   :  { %8890 = vmatprep.subr.mxu1 %v5093_v51 }
0x1c2b   :  { %8891 = vmatpush3.msra.mxu1 %v5093_v51 }
0x1c2c   :  { %8892 = vmatprep.subr.mxu1 %v5092_v52 }
0x1c2d   :  { %8893 = vmatpush3.msra.mxu1 %v5092_v52 }
0x1c2e   :  { %8894 = vmatprep.subr.mxu1 %v5091_v54 }
0x1c2f   :  { %8895 = vmatpush3.msra.mxu1 %v5091_v54 }
0x1c30   :  { %8897 = vmatmul.mubr.f32.vlgmr.msra.gmra.mxu1 %v9887_v53  ;;  %8934 = vmatprep.subr.mxu1 %v5306_v56 }
0x1c31   :  { %8935 = vmatpush3.msra.mxu1 %v5306_v56  ;;  %8966 = vmatprep.mubr.f32.mxu1 %v9882_v12 }
0x1c32   :  { %8936 = vmatprep.subr.mxu1 %v5305_v57 }
0x1c33   :  { %8937 = vmatpush3.msra.mxu1 %v5305_v57 }
0x1c34   :  { %8938 = vmatprep.subr.mxu1 %v5304_v58 }
0x1c35   :  { %8939 = vmatpush3.msra.mxu1 %v5304_v58 }
0x1c36   :  { %8940 = vmatprep.subr.mxu1 %v5303_v8 }
0x1c37   :  { %8941 = vmatpush3.msra.mxu1 %v5303_v8 }
0x1c38   :  { %8942 = vmatprep.subr.mxu1 %v5302_v59 }
0x1c39   :  { %8943 = vmatpush3.msra.mxu1 %v5302_v59 }
0x1c3a   :  { %8944 = vmatprep.subr.mxu1 %v5301_v45 }
0x1c3b   :  { %8945 = vmatpush3.msra.mxu1 %v5301_v45 }
0x1c3c   :  { %8946 = vmatprep.subr.mxu1 %v5300_v46 }
0x1c3d   :  { %8947 = vmatpush3.msra.mxu1 %v5300_v46 }
0x1c3e   :  { %8948 = vmatprep.subr.mxu1 %v5299_v61 }
0x1c3f   :  { %8949 = vmatpush3.msra.mxu1 %v5299_v61 }
0x1c40   :  { %8950 = vmatprep.subr.mxu1 %v5298_v62 }
0x1c41   :  { %8951 = vmatpush3.msra.mxu1 %v5298_v62 }
0x1c42   :  { %8952 = vmatprep.subr.mxu1 %v5297_v63 }
0x1c43   :  { %8953 = vmatpush3.msra.mxu1 %v5297_v63 }
0x1c44   :  { %8954 = vmatprep.subr.mxu1 %v5296_v0 }
0x1c45   :  { %8955 = vmatpush3.msra.mxu1 %v5296_v0 }
0x1c46   :  { %8956 = vmatprep.subr.mxu1 %v5295_v1 }
0x1c47   :  { %8957 = vmatpush3.msra.mxu1 %v5295_v1 }
0x1c48   :  { %8958 = vmatprep.subr.mxu1 %v5294_v2 }
0x1c49   :  { %8959 = vmatpush3.msra.mxu1 %v5294_v2 }
0x1c4a   :  { %8960 = vmatprep.subr.mxu1 %v5293_v3 }
0x1c4b   :  { %8961 = vmatpush3.msra.mxu1 %v5293_v3 }
0x1c4c   :  { %8962 = vmatprep.subr.mxu1 %v5292_v4 }
0x1c4d   :  { %8963 = vmatpush3.msra.mxu1 %v5292_v4 }
0x1c4e   :  { %8964 = vmatprep.subr.mxu1 %v5291_v5 }
0x1c4f   :  { %8965 = vmatpush3.msra.mxu1 %v5291_v5 }
0x1c50   :  { %8967 = vmatmul.mubr.f32.vlgmr.msra.gmra.mxu1 %v9887_v53  ;;  %9035 = vmatprep.subr.mxu1 %v5916_v6 }
0x1c51   :  { %9036 = vmatpush3.msra.mxu1 %v5916_v6  ;;  %9067 = vmatprep.mubr.f32.mxu1 %v9882_v12 }
0x1c52   :  { %9037 = vmatprep.subr.mxu1 %v5915_v50 }
0x1c53   :  { %9038 = vmatpush3.msra.mxu1 %v5915_v50 }
0x1c54   :  { %9039 = vmatprep.subr.mxu1 %v5914_v7 }
0x1c55   :  { %9040 = vmatpush3.msra.mxu1 %v5914_v7 }
0x1c56   :  { %9041 = vmatprep.subr.mxu1 %v5913_v49 }
0x1c57   :  { %9042 = vmatpush3.msra.mxu1 %v5913_v49 }
0x1c58   :  { %9043 = vmatprep.subr.mxu1 %v5912_v9 }
0x1c59   :  { %9044 = vmatpush3.msra.mxu1 %v5912_v9  ;;  %v5716_v9 = vld [vmem:[#allocation8 + $0xd8] sm:$0xff] }
0x1c5a   :  { %9045 = vmatprep.subr.mxu1 %v5911_v10 }
0x1c5b   :  { %9046 = vmatpush3.msra.mxu1 %v5911_v10 }
0x1c5c   :  { %9047 = vmatprep.subr.mxu1 %v5910_v14 }
0x1c5d   :  { %9048 = vmatpush3.msra.mxu1 %v5910_v14 }
0x1c5e   :  { %9049 = vmatprep.subr.mxu1 %v5909_v15 }
0x1c5f   :  { %9050 = vmatpush3.msra.mxu1 %v5909_v15  ;;  %v5715_v15 = vld [vmem:[#allocation8 + $0xd0] sm:$0xff] }
0x1c60   :  { %9051 = vmatprep.subr.mxu1 %v5908_v55 }
0x1c61   :  { %9052 = vmatpush3.msra.mxu1 %v5908_v55  ;;  %v5714_v55 = vld [vmem:[#allocation8 + $0xc8] sm:$0xff] }
0x1c62   :  { %9053 = vmatprep.subr.mxu1 %v5907_v16 }
0x1c63   :  { %9054 = vmatpush3.msra.mxu1 %v5907_v16  ;;  %v5713_v16 = vld [vmem:[#allocation8 + $0xc0] sm:$0xff] }
0x1c64   :  { %9055 = vmatprep.subr.mxu1 %v5906_v17 }
0x1c65   :  { %9056 = vmatpush3.msra.mxu1 %v5906_v17  ;;  %v5816_v17 = vld [vmem:[#allocation2 + $0x3f8] sm:$0xff] }
0x1c66   :  { %9057 = vmatprep.subr.mxu1 %v5905_v18 }
0x1c67   :  { %9058 = vmatpush3.msra.mxu1 %v5905_v18 }
0x1c68   :  { %9059 = vmatprep.subr.mxu1 %v5904_v19 }
0x1c69   :  { %9060 = vmatpush3.msra.mxu1 %v5904_v19 }
0x1c6a   :  { %9061 = vmatprep.subr.mxu1 %v5903_v43 }
0x1c6b   :  { %9062 = vmatpush3.msra.mxu1 %v5903_v43 }
0x1c6c   :  { %9063 = vmatprep.subr.mxu1 %v5902_v21 }
0x1c6d   :  { %9064 = vmatpush3.msra.mxu1 %v5902_v21  ;;  %v5815_v21 = vld [vmem:[#allocation2 + $0x3f0] sm:$0xff] }
0x1c6e   :  { %9065 = vmatprep.subr.mxu1 %v5901_v22 }
0x1c6f   :  { %9066 = vmatpush3.msra.mxu1 %v5901_v22 }
0x1c70   :  { %9068 = vmatmul.mubr.f32.vlgmr.msra.gmra.mxu1 %v9887_v53  ;;  %9105 = vmatprep.subr.mxu1 %v9449_v23 }
0x1c71   :  { %9107 = vmatprep.mubr.msk.f32.mxu1 %vm9450_vm3, %v9449_v23 }
0x1cd0   :  { %v8863_v25 = vpop.f32.mrf.mxu1 }
0x1cd1   :  { %v9997_v31 = vadd.f32 %v8863_v25, %v4379_v26  ;;  %v5813_v26 = vld [vmem:[#allocation2 + $0x3e0] sm:$0xff]  ;;  %v5812_v25 = vld [vmem:[#allocation2 + $0x3d8] sm:$0xff] }
0x1cd2   :  { %v5079_v32 = vpop.f32.mrf.mxu1 }
0x1cd3   :  { %v9999_v20 = vadd.f32 %v5079_v32, %v4378_v28  ;;  %v5811_v28 = vld [vmem:[#allocation2 + $0x3d0] sm:$0xff]  ;;  %v5810_v32 = vld [vmem:[#allocation2 + $0x3c8] sm:$0xff] }
0x1cf0   :  { %v8898_v33 = vpop.f32.mrf.mxu1 }
0x1cf1   :  { %v5187_v38 = vadd.f32 %v8898_v33, %v7285_v34  ;;  %v5809_v33 = vld [vmem:[#allocation2 + $0x3c0] sm:$0xff] }
0x1cf2   :  { %v5181_v35 = vpop.f32.mrf.mxu1 }
0x1cf3   :  { %v5182_v36 = vadd.f32 %v7285_v34, %v5181_v35  ;;  %v5391_v39 = vmul.f32 0.17677669, %v5187_v38  ;;  %v5808_v34 = vld [vmem:[#allocation2 + $0x3b8] sm:$0xff]  ;;  %v5807_v35 = vld [vmem:[#allocation2 + $0x3b0] sm:$0xff]  ;;  %v5805_v38 = vld [vmem:[#allocation2 + $0x3a0] sm:$0xff] }
0x1cf5   :  { %v5390_v41 = vmul.f32 0.17677669, %v5182_v36  ;;  %v5806_v36 = vld [vmem:[#allocation2 + $0x3a8] sm:$0xff] }
0x1cf7   :  { %8972 = vmatmul.mubr.msk.f32.vlgmr.msra.gmra.mxu0 %vm563_vm4, %v5390_v41  ;;  %v5804_v41 = vld [vmem:[#allocation2 + $0x398] sm:$0xff] }
0x1cf8   :  { %8975 = vmatpush3.xpose.msk.msra.mxu0 %vm563_vm4, %v9969_v60  ;;  %8976 = vmatprep.mubr.msk.f32.mxu0 %vm9450_vm3, %v9449_v23  ;;  %v7301_v60 = vld [vmem:[%s10165_s7 + $0x7] ss:$0 sm:$0xff] }
0x1cf9   :  { %8979 = vmatprep.subr.mxu0 %v9449_v23 }
0x1cfb   :  { %8977 = vmatmul.mubr.msk.f32.vlgmr.msra.gmra.mxu0 %vm563_vm4, %v5391_v39  ;;  %v5803_v39 = vld [vmem:[#allocation2 + $0x390] sm:$0xff] }
0x1cfc   :  { %8981 = vmatprep.mubr.msk.f32.mxu0 %vm9450_vm3, %v9449_v23 }
0x1d10   :  { %v8968_v42 = vpop.f32.mrf.mxu1 }
0x1d11   :  { %v5387_v44 = vadd.f32 %v8968_v42, %v7289_v40  ;;  %v5801_v42 = vld [vmem:[#allocation2 + $0x380] sm:$0xff] }
0x1d12   :  { %v5381_v47 = vpop.f32.mrf.mxu1 }
0x1d13   :  { %v5382_v48 = vadd.f32 %v7289_v40, %v5381_v47  ;;  %v5802_v40 = vld [vmem:[#allocation2 + $0x388] sm:$0xff]  ;;  %v6015_v47 = vld [vmem:[#allocation7 + $0x3f0] sm:$0xff] }
0x1d15   :  { %8980 = vmatpush3.msra.mxu0 %v5382_v48  ;;  %v6014_v48 = vld [vmem:[#allocation7 + $0x3e8] sm:$0xff] }
0x1d16   :  { %8984 = vmatprep.subr.mxu0 %v9449_v23 }
0x1d30   :  { %v9069_v37 = vpop.f32.mrf.mxu1 }
0x1d31   :  { %v10020_v51 = vadd.f32 %v9069_v37, %v7301_v60  ;;  %v6012_v37 = vld [vmem:[#allocation7 + $0x3d8] sm:$0xff] }
0x1d32   :  { %v5991_v52 = vpop.f32.mrf.mxu1 }
0x1d33   :  { %v5992_v54 = vadd.f32 %v7301_v60, %v5991_v52  ;;  %v6013_v60 = vld [vmem:[#allocation7 + $0x3e0] sm:$0xff]  ;;  %v6011_v52 = vld [vmem:[#allocation7 + $0x3d0] sm:$0xff] }
0x1d35   :  { %9106 = vmatpush3.xpose.msk.msra.mxu1 %vm563_vm4, %v5992_v54  ;;  %v6010_v54 = vld [vmem:[#allocation7 + $0x3c8] sm:$0xff] }
0x1d36   :  { %9110 = vmatprep.subr.mxu1 %v9449_v23 }
0x1db7   :  { %v5464_v56 = vpop.f32.mrf.mxu0 }
0x1db8   :  { %v5544_v57 = vsel %vm716_vm5, %v5464_v56, -inf }
0x1db9   :  { %5545 = vmax.xlane.f32.xlu1 %v5544_v57  ;;  %v8973_v58 = vpop.f32.mrf.mxu0  ;;  %v6008_v57 = vld [vmem:[#allocation7 + $0x3b8] sm:$0xff] }
0x1dba   :  { %v6007_v58 = vld [vmem:[#allocation7 + $0x3b0] sm:$0xff] }
0x1dbb   :  { %v5540_v8 = vpop.f32.mrf.mxu0 }
0x1dbc   :  { %v5547_v59 = vsel %vm716_vm5, %v5540_v8, -inf }
0x1dbd   :  { %5548 = vmax.xlane.f32.xlu0 %v5547_v59  ;;  %v8978_v45 = vpop.f32.mrf.mxu0  ;;  %v6005_v59 = vld [vmem:[#allocation7 + $0x3a0] sm:$0xff] }
0x1dbe   :  { %v6004_v45 = vld [vmem:[#allocation7 + $0x398] sm:$0xff] }
0x1e42   :  { %v5546_v46 = vpop.xlane.xlu1 %5545 }
0x1e43   :  { %v5550_v61 = vsub.f32 %v5464_v56, %v5546_v46  ;;  %v6009_v56 = vld [vmem:[#allocation7 + $0x3c0] sm:$0xff]  ;;  %v6003_v46 = vld [vmem:[#allocation7 + $0x390] sm:$0xff] }
0x1e45   :  { %v5552_v62 = vmul.f32 1.442695, %v5550_v61  ;;  %v6002_v61 = vld [vmem:[#allocation7 + $0x388] sm:$0xff] }
0x1e46   :  { %v5549_v63 = vpop.xlane.xlu0 %5548 }
0x1e47   :  { %9243 = vpow2.f32 %v5552_v62  ;;  %v5551_v0 = vsub.f32 %v5540_v8, %v5549_v63  ;;  %v6006_v8 = vld [vmem:[#allocation7 + $0x3a8] sm:$0xff]  ;;  %v6001_v62 = vld [vmem:[#allocation7 + $0x380] sm:$0xff] }
0x1e49   :  { %v5554_v1 = vmul.f32 1.442695, %v5551_v0 }
0x1e4b   :  { %9245 = vpow2.f32 %v5554_v1 }
0x1e54   :  { %v9244_v2 = vpop.eup %9243 }
0x1e55   :  { %v5556_v3 = vsel %vm716_vm5, %v9244_v2, 0.0 }
0x1e56   :  { %5557 = vadd.xlane.f32.xlu1 %v5556_v3 }
0x1e58   :  { %v9246_v4 = vpop.eup %9245 }
0x1e59   :  { %v5559_v5 = vsel %vm716_vm5, %v9246_v4, 0.0 }
0x1e5a   :  { %5560 = vadd.xlane.f32.xlu0 %v5559_v5 }
0x1edf   :  { %v5558_v6 = vpop.xlane.xlu1 %5557 }
0x1ee0   :  { %9247 = vrcp.f32 %v5558_v6 }
0x1ee3   :  { %v5561_v50 = vpop.xlane.xlu0 %5560 }
0x1ee4   :  { %9249 = vrcp.f32 %v5561_v50 }
0x1eed   :  { %v9248_v7 = vpop.eup %9247 }
0x1eee   :  { %v5564_v49 = vmul.f32 %v9248_v7, %v9244_v2 }
0x1ef0   :  { %8982 = vmatmul.mubr.msk.f32.vlgmr.msra.gmra.mxu0 %vm716_vm5, %v5564_v49 }
0x1ef1   :  { %v9250_v10 = vpop.eup %9249  ;;  %8985 = vmatpush3.msra.mxu0 %v5387_v44  ;;  %8986 = vmatprep.mubr.msk.f32.mxu0 %vm9450_vm3, %v9449_v23  ;;  %v6016_v44 = vld [vmem:[#allocation7 + $0x3f8] sm:$0xff] }
0x1ef2   :  { %v5565_v14 = vmul.f32 %v9250_v10, %v9246_v4  ;;  %8989 = vmatprep.subr.mxu0 %v5716_v9  ;;  %v7299_v4 = vld [vmem:[%s10164_s6 + $0x7] ss:$0 sm:$0xff] }
0x1ef4   :  { %8987 = vmatmul.mubr.msk.f32.vlgmr.msra.gmra.mxu0 %vm716_vm5, %v5565_v14 }
0x1ef5   :  { %8990 = vmatpush3.msra.mxu0 %v5716_v9 }
0x1ef6   :  { %8991 = vmatprep.subr.mxu0 %v5715_v15 }
0x1ef7   :  { %8992 = vmatpush3.msra.mxu0 %v5715_v15 }
0x1ef8   :  { %8993 = vmatprep.subr.mxu0 %v5714_v55 }
0x1ef9   :  { %8994 = vmatpush3.msra.mxu0 %v5714_v55 }
0x1efa   :  { %8995 = vmatprep.subr.mxu0 %v5713_v16 }
0x1efb   :  { %8996 = vmatpush3.msra.mxu0 %v5713_v16 }
0x1efc   :  { %9000 = vmatprep.subr.mxu0 %v5816_v17 }
0x1fb0   :  { %v5635_v18 = vpop.f32.mrf.mxu0 }
0x1fb1   :  { %8997 = vmatprep.mubr.msk.f32.mxu0 %vm563_vm4, %v5635_v18 }
0x1fb2   :  { %v8983_v19 = vpop.f32.mrf.mxu0 }
0x1fb4   :  { %v5708_v43 = vpop.f32.mrf.mxu0 }
0x1fb5   :  { %8998 = vmatmul.mubr.msk.f32.vlgmr.msra.gmra.mxu0 %vm563_vm4, %v5708_v43 }
0x1fb6   :  { %9001 = vmatpush3.msra.mxu0 %v5816_v17  ;;  %v8988_v22 = vpop.f32.mrf.mxu0  ;;  %9032 = vmatprep.mubr.f32.mxu0 %v9882_v12 }
0x1fb7   :  { %9002 = vmatprep.subr.mxu0 %v5815_v21 }
0x1fb8   :  { %9003 = vmatpush3.msra.mxu0 %v5815_v21 }
0x1fb9   :  { %9004 = vmatprep.subr.mxu0 %v5814_v24 }
0x1fba   :  { %9005 = vmatpush3.msra.mxu0 %v5814_v24 }
0x1fbb   :  { %9006 = vmatprep.subr.mxu0 %v5813_v26 }
0x1fbc   :  { %9007 = vmatpush3.msra.mxu0 %v5813_v26 }
0x1fbd   :  { %9008 = vmatprep.subr.mxu0 %v5812_v25 }
0x1fbe   :  { %9009 = vmatpush3.msra.mxu0 %v5812_v25 }
0x1fbf   :  { %9010 = vmatprep.subr.mxu0 %v5811_v28 }
0x1fc0   :  { %9011 = vmatpush3.msra.mxu0 %v5811_v28 }
0x1fc1   :  { %9012 = vmatprep.subr.mxu0 %v5810_v32 }
0x1fc2   :  { %9013 = vmatpush3.msra.mxu0 %v5810_v32 }
0x1fc3   :  { %9014 = vmatprep.subr.mxu0 %v5809_v33 }
0x1fc4   :  { %9015 = vmatpush3.msra.mxu0 %v5809_v33 }
0x1fc5   :  { %9016 = vmatprep.subr.mxu0 %v5808_v34 }
0x1fc6   :  { %9017 = vmatpush3.msra.mxu0 %v5808_v34 }
0x1fc7   :  { %9018 = vmatprep.subr.mxu0 %v5807_v35 }
0x1fc8   :  { %9019 = vmatpush3.msra.mxu0 %v5807_v35 }
0x1fc9   :  { %9020 = vmatprep.subr.mxu0 %v5806_v36 }
0x1fca   :  { %9021 = vmatpush3.msra.mxu0 %v5806_v36 }
0x1fcb   :  { %9022 = vmatprep.subr.mxu0 %v5805_v38 }
0x1fcc   :  { %9023 = vmatpush3.msra.mxu0 %v5805_v38 }
0x1fcd   :  { %9024 = vmatprep.subr.mxu0 %v5804_v41 }
0x1fce   :  { %9025 = vmatpush3.msra.mxu0 %v5804_v41  ;;  %v6426_v41 = vld [vmem:[#allocation8 + $0xf8] sm:$0xff] }
0x1fcf   :  { %9026 = vmatprep.subr.mxu0 %v5803_v39 }
0x1fd0   :  { %9027 = vmatpush3.msra.mxu0 %v5803_v39 }
0x1fd1   :  { %9028 = vmatprep.subr.mxu0 %v5802_v40 }
0x1fd2   :  { %9029 = vmatpush3.msra.mxu0 %v5802_v40 }
0x1fd3   :  { %9030 = vmatprep.subr.mxu0 %v5801_v42 }
0x1fd4   :  { %9031 = vmatpush3.msra.mxu0 %v5801_v42  ;;  %v6425_v42 = vld [vmem:[#allocation8 + $0xf0] sm:$0xff] }
0x1fd5   :  { %9033 = vmatmul.mubr.f32.vlgmr.msra.gmra.mxu0 %v9887_v53  ;;  %9070 = vmatprep.subr.mxu0 %v6016_v44 }
0x1fd6   :  { %9071 = vmatpush3.msra.mxu0 %v6016_v44  ;;  %9102 = vmatprep.mubr.f32.mxu0 %v9882_v12  ;;  %v6424_v44 = vld [vmem:[#allocation8 + $0xe8] sm:$0xff] }
0x1fd7   :  { %9072 = vmatprep.subr.mxu0 %v6015_v47 }
0x1fd8   :  { %9073 = vmatpush3.msra.mxu0 %v6015_v47  ;;  %v6423_v47 = vld [vmem:[#allocation8 + $0xe0] sm:$0xff] }
0x1fd9   :  { %9074 = vmatprep.subr.mxu0 %v6014_v48 }
0x1fda   :  { %9075 = vmatpush3.msra.mxu0 %v6014_v48 }
0x1fdb   :  { %9076 = vmatprep.subr.mxu0 %v6013_v60 }
0x1fdc   :  { %9077 = vmatpush3.msra.mxu0 %v6013_v60 }
0x1fdd   :  { %9078 = vmatprep.subr.mxu0 %v6012_v37 }
0x1fde   :  { %9079 = vmatpush3.msra.mxu0 %v6012_v37 }
0x1fdf   :  { %9080 = vmatprep.subr.mxu0 %v6011_v52 }
0x1fe0   :  { %9081 = vmatpush3.msra.mxu0 %v6011_v52 }
0x1fe1   :  { %9082 = vmatprep.subr.mxu0 %v6010_v54 }
0x1fe2   :  { %9083 = vmatpush3.msra.mxu0 %v6010_v54 }
0x1fe3   :  { %9084 = vmatprep.subr.mxu0 %v6009_v56 }
0x1fe4   :  { %9085 = vmatpush3.msra.mxu0 %v6009_v56 }
0x1fe5   :  { %9086 = vmatprep.subr.mxu0 %v6008_v57 }
0x1fe6   :  { %9087 = vmatpush3.msra.mxu0 %v6008_v57 }
0x1fe7   :  { %9088 = vmatprep.subr.mxu0 %v6007_v58 }
0x1fe8   :  { %9089 = vmatpush3.msra.mxu0 %v6007_v58 }
0x1fe9   :  { %9090 = vmatprep.subr.mxu0 %v6006_v8 }
0x1fea   :  { %9091 = vmatpush3.msra.mxu0 %v6006_v8 }
0x1feb   :  { %9092 = vmatprep.subr.mxu0 %v6005_v59 }
0x1fec   :  { %9093 = vmatpush3.msra.mxu0 %v6005_v59 }
0x1fed   :  { %9094 = vmatprep.subr.mxu0 %v6004_v45 }
0x1fee   :  { %9095 = vmatpush3.msra.mxu0 %v6004_v45  ;;  %v6616_v45 = vld [vmem:[#allocation10 + $0x3e8] sm:$0xff] }
0x1fef   :  { %9096 = vmatprep.subr.mxu0 %v6003_v46 }
0x1ff0   :  { %9097 = vmatpush3.msra.mxu0 %v6003_v46  ;;  %v6618_v46 = vld [vmem:[#allocation10 + $0x3f8] sm:$0xff] }
0x1ff1   :  { %9098 = vmatprep.subr.mxu0 %v6002_v61 }
0x1ff2   :  { %9099 = vmatpush3.msra.mxu0 %v6002_v61  ;;  %v6615_v61 = vld [vmem:[#allocation10 + $0x3e0] sm:$0xff] }
0x1ff3   :  { %9100 = vmatprep.subr.mxu0 %v6001_v62 }
0x1ff4   :  { %9101 = vmatpush3.msra.mxu0 %v6001_v62  ;;  %v6617_v62 = vld [vmem:[#allocation10 + $0x3f0] sm:$0xff] }
0x1ff5   :  { %9103 = vmatmul.mubr.f32.vlgmr.msra.gmra.mxu0 %v9887_v53  ;;  %6719 = vmatprep.subr.mxu0 %v6618_v46  ;;  %v6569_v46 = vld [vmem:[#allocation10 + $0x270] sm:$0xff] }
0x1ff6   :  { %6783 = vmatprep.mubr.f32.mxu0 %v9449_v23  ;;  %6720 = vmatpush1.msra.mxu0 %v6617_v62  ;;  %v6566_v62 = vld [vmem:[#allocation10 + $0x258] sm:$0xff] }
0x2075   :  { %v8999_v63 = vpop.f32.mrf.mxu0 }
0x2076   :  { %v10040_v0 = vadd.f32 %v8999_v63, %v9997_v31  ;;  %v6612_v63 = vld [vmem:[#allocation10 + $0x3c8] sm:$0xff] }
0x2077   :  { %v5789_v1 = vpop.f32.mrf.mxu0 }
0x2078   :  { %v10043_v2 = vadd.f32 %v5789_v1, %v9999_v20  ;;  %v7303_v20 = vld [vmem:[%s10166_s8 + $0x7] ss:$0 sm:$0xff]  ;;  %v6614_v1 = vld [vmem:[#allocation10 + $0x3d8] sm:$0xff] }
0x2079   :  { %6721 = vmatprep.subr.mxu0 %v6614_v1  ;;  %v6565_v1 = vld [vmem:[#allocation10 + $0x250] sm:$0xff] }
0x2095   :  { %v9034_v3 = vpop.f32.mrf.mxu0 }
0x2096   :  { %v5897_v50 = vadd.f32 %v9034_v3, %v7299_v4  ;;  %v6613_v3 = vld [vmem:[#allocation10 + $0x3d0] sm:$0xff] }
0x2097   :  { %v5891_v5 = vpop.f32.mrf.mxu0  ;;  %6722 = vmatpush1.msra.mxu0 %v6613_v3  ;;  %v6562_v3 = vld [vmem:[#allocation10 + $0x238] sm:$0xff] }
0x2098   :  { %v5892_v6 = vadd.f32 %v7299_v4, %v5891_v5  ;;  %v6101_v31 = vmul.f32 0.17677669, %v5897_v50  ;;  %v6608_v4 = vld [vmem:[#allocation10 + $0x3a8] sm:$0xff]  ;;  %v6609_v5 = vld [vmem:[#allocation10 + $0x3b0] sm:$0xff] }
0x209a   :  { %v6100_v7 = vmul.f32 0.17677669, %v5892_v6 }
0x209c   :  { %9108 = vmatmul.mubr.msk.f32.vlgmr.msra.gmra.mxu1 %vm563_vm4, %v6100_v7 }
0x209d   :  { %9111 = vmatpush3.xpose.msk.msra.mxu1 %vm563_vm4, %v10020_v51  ;;  %9112 = vmatprep.mubr.msk.f32.mxu1 %vm9450_vm3, %v9449_v23 }
0x209e   :  { %9115 = vmatprep.subr.mxu1 %v9449_v23 }
0x20a0   :  { %9113 = vmatmul.mubr.msk.f32.vlgmr.msra.gmra.mxu1 %vm563_vm4, %v6101_v31 }
0x20a1   :  { %9117 = vmatprep.mubr.msk.f32.mxu1 %vm9450_vm3, %v9449_v23 }
0x20b5   :  { %v9104_v49 = vpop.f32.mrf.mxu0 }
0x20b6   :  { %v6097_v9 = vadd.f32 %v9104_v49, %v7303_v20 }
0x20b7   :  { %v6091_v10 = vpop.f32.mrf.mxu0 }
0x20b8   :  { %v6092_v14 = vadd.f32 %v7303_v20, %v6091_v10  ;;  %v6604_v10 = vld [vmem:[#allocation10 + $0x388] sm:$0xff] }
0x20ba   :  { %9116 = vmatpush3.msra.mxu1 %v6092_v14  ;;  %v6606_v14 = vld [vmem:[#allocation10 + $0x398] sm:$0xff] }
0x20bb   :  { %9120 = vmatprep.subr.mxu1 %v9449_v23 }
0x215c   :  { %v6174_v51 = vpop.f32.mrf.mxu1 }
0x215d   :  { %v6254_v15 = vsel %vm716_vm5, %v6174_v51, -inf }
0x215e   :  { %6255 = vmax.xlane.f32.xlu1 %v6254_v15  ;;  %v9109_v55 = vpop.f32.mrf.mxu1  ;;  %v6605_v15 = vld [vmem:[#allocation10 + $0x390] sm:$0xff] }
0x215f   :  { %v6600_v55 = vld [vmem:[#allocation10 + $0x368] sm:$0xff] }
0x2160   :  { %v6250_v16 = vpop.f32.mrf.mxu1 }
0x2161   :  { %v6257_v17 = vsel %vm716_vm5, %v6250_v16, -inf }
0x2162   :  { %6258 = vmax.xlane.f32.xlu0 %v6257_v17  ;;  %v9114_v18 = vpop.f32.mrf.mxu1  ;;  %v6599_v17 = vld [vmem:[#allocation10 + $0x360] sm:$0xff] }
0x2163   :  { %v6601_v18 = vld [vmem:[#allocation10 + $0x370] sm:$0xff] }
0x21e7   :  { %v6256_v19 = vpop.xlane.xlu1 %6255 }
0x21e8   :  { %v6260_v43 = vsub.f32 %v6174_v51, %v6256_v19  ;;  %v6603_v51 = vld [vmem:[#allocation10 + $0x380] sm:$0xff]  ;;  %v6596_v19 = vld [vmem:[#allocation10 + $0x348] sm:$0xff] }
0x21ea   :  { %v6262_v21 = vmul.f32 1.442695, %v6260_v43  ;;  %v6598_v43 = vld [vmem:[#allocation10 + $0x358] sm:$0xff] }
0x21eb   :  { %v6259_v22 = vpop.xlane.xlu0 %6258 }
0x21ec   :  { %9251 = vpow2.f32 %v6262_v21  ;;  %v6261_v24 = vsub.f32 %v6250_v16, %v6259_v22  ;;  %v6602_v16 = vld [vmem:[#allocation10 + $0x378] sm:$0xff]  ;;  %v6595_v21 = vld [vmem:[#allocation10 + $0x340] sm:$0xff]  ;;  %v6597_v22 = vld [vmem:[#allocation10 + $0x350] sm:$0xff] }
0x21ee   :  { %v6264_v26 = vmul.f32 1.442695, %v6261_v24  ;;  %v6592_v24 = vld [vmem:[#allocation10 + $0x328] sm:$0xff] }
0x21f0   :  { %9253 = vpow2.f32 %v6264_v26  ;;  %v6594_v26 = vld [vmem:[#allocation10 + $0x338] sm:$0xff] }
0x21f9   :  { %v9252_v25 = vpop.eup %9251 }
0x21fa   :  { %v6266_v28 = vsel %vm716_vm5, %v9252_v25, 0.0 }
0x21fb   :  { %6267 = vadd.xlane.f32.xlu1 %v6266_v28  ;;  %v6593_v28 = vld [vmem:[#allocation10 + $0x330] sm:$0xff] }
0x21fd   :  { %v9254_v32 = vpop.eup %9253 }
0x21fe   :  { %v6269_v33 = vsel %vm716_vm5, %v9254_v32, 0.0 }
0x21ff   :  { %6270 = vadd.xlane.f32.xlu0 %v6269_v33  ;;  %v6590_v33 = vld [vmem:[#allocation10 + $0x318] sm:$0xff] }
0x2284   :  { %v6268_v34 = vpop.xlane.xlu1 %6267 }
0x2285   :  { %9255 = vrcp.f32 %v6268_v34  ;;  %v6587_v34 = vld [vmem:[#allocation10 + $0x300] sm:$0xff] }
0x2288   :  { %v6271_v35 = vpop.xlane.xlu0 %6270 }
0x2289   :  { %9257 = vrcp.f32 %v6271_v35  ;;  %v6589_v35 = vld [vmem:[#allocation10 + $0x310] sm:$0xff] }
0x2292   :  { %v9256_v36 = vpop.eup %9255 }
0x2293   :  { %v6274_v38 = vmul.f32 %v9256_v36, %v9252_v25  ;;  %v6591_v25 = vld [vmem:[#allocation10 + $0x320] sm:$0xff]  ;;  %v6584_v36 = vld [vmem:[#allocation10 + $0x2e8] sm:$0xff] }
0x2295   :  { %9118 = vmatmul.mubr.msk.f32.vlgmr.msra.gmra.mxu1 %vm716_vm5, %v6274_v38  ;;  %v6586_v38 = vld [vmem:[#allocation10 + $0x2f8] sm:$0xff] }
0x2296   :  { %v9258_v39 = vpop.eup %9257  ;;  %9121 = vmatpush3.msra.mxu1 %v6097_v9  ;;  %9122 = vmatprep.mubr.msk.f32.mxu1 %vm9450_vm3, %v9449_v23 }
0x2297   :  { %v6275_v40 = vmul.f32 %v9258_v39, %v9254_v32  ;;  %9125 = vmatprep.subr.mxu1 %v6426_v41  ;;  %v6588_v32 = vld [vmem:[#allocation10 + $0x308] sm:$0xff]  ;;  %v6585_v39 = vld [vmem:[#allocation10 + $0x2f0] sm:$0xff] }
0x2299   :  { %9123 = vmatmul.mubr.msk.f32.vlgmr.msra.gmra.mxu1 %vm716_vm5, %v6275_v40  ;;  %v6580_v40 = vld [vmem:[#allocation10 + $0x2c8] sm:$0xff] }
0x229a   :  { %9126 = vmatpush3.msra.mxu1 %v6426_v41  ;;  %v6583_v41 = vld [vmem:[#allocation10 + $0x2e0] sm:$0xff] }
0x229b   :  { %9127 = vmatprep.subr.mxu1 %v6425_v42 }
0x229c   :  { %9128 = vmatpush3.msra.mxu1 %v6425_v42  ;;  %v6582_v42 = vld [vmem:[#allocation10 + $0x2d8] sm:$0xff] }
0x229d   :  { %9129 = vmatprep.subr.mxu1 %v6424_v44 }
0x229e   :  { %9130 = vmatpush3.msra.mxu1 %v6424_v44  ;;  %v6579_v44 = vld [vmem:[#allocation10 + $0x2c0] sm:$0xff] }
0x229f   :  { %9131 = vmatprep.subr.mxu1 %v6423_v47 }
0x22a0   :  { %9132 = vmatpush3.msra.mxu1 %v6423_v47  ;;  %v6581_v47 = vld [vmem:[#allocation10 + $0x2d0] sm:$0xff] }
0x22a1   :  { %6642 = vmatprep.subr.mxu1 %v6616_v45  ;;  %v6567_v45 = vld [vmem:[#allocation10 + $0x260] sm:$0xff] }
0x2355   :  { %v6345_v48 = vpop.f32.mrf.mxu1 }
0x2356   :  { %9133 = vmatprep.mubr.msk.f32.mxu1 %vm563_vm4, %v6345_v48  ;;  %v6576_v48 = vld [vmem:[#allocation10 + $0x2a8] sm:$0xff] }
0x2357   :  { %v9119_v60 = vpop.f32.mrf.mxu1 }
0x2358   :  { %v6578_v60 = vld [vmem:[#allocation10 + $0x2b8] sm:$0xff] }
0x2359   :  { %v6418_v37 = vpop.f32.mrf.mxu1 }
0x235a   :  { %9134 = vmatmul.mubr.msk.f32.vlgmr.msra.gmra.mxu1 %vm563_vm4, %v6418_v37  ;;  %v6575_v37 = vld [vmem:[#allocation10 + $0x2a0] sm:$0xff] }
0x235b   :  { %v9124_v52 = vpop.f32.mrf.mxu1  ;;  %6706 = vmatprep.mubr.f32.mxu1 %v9449_v23  ;;  %6643 = vmatpush1.msra.mxu1 %v6615_v61  ;;  %v6564_v61 = vld [vmem:[#allocation10 + $0x248] sm:$0xff] }
0x235c   :  { %6644 = vmatprep.subr.mxu1 %v6612_v63  ;;  %v6577_v52 = vld [vmem:[#allocation10 + $0x2b0] sm:$0xff]  ;;  %v6563_v63 = vld [vmem:[#allocation10 + $0x240] sm:$0xff] }
0x241a   :  { %v9135_v54 = vpop.f32.mrf.mxu1 }
0x241b   :  { %v6509_v56 = vadd.f32 %v9135_v54, %v10040_v0  ;;  %v6611_v0 = vld [vmem:[#allocation10 + $0x3c0] sm:$0xff]  ;;  %v6572_v54 = vld [vmem:[#allocation10 + $0x288] sm:$0xff] }
0x241c   :  { %v6499_v57 = vpop.f32.mrf.mxu1  ;;  %6645 = vmatpush1.msra.mxu1 %v6611_v0  ;;  %v6560_v0 = vld [vmem:[#allocation10 + $0x228] sm:$0xff] }
0x241d   :  { %v6508_v58 = vadd.f32 %v6499_v57, %v10043_v2  ;;  %v6511_v8 = vadd.f32 %v6509_v56, %v9887_v53  ;;  %v6610_v53 = vld [vmem:[#allocation10 + $0x3b8] sm:$0xff]  ;;  %v6607_v2 = vld [vmem:[#allocation10 + $0x3a0] sm:$0xff]  ;;  %6646 = vmatprep.subr.mxu1 %v6608_v4 }
0x241e   :  { %6723 = vmatprep.subr.mxu0 %v6610_v53  ;;  %6647 = vmatpush1.msra.mxu1 %v6607_v2  ;;  %v6574_v56 = vld [vmem:[#allocation10 + $0x298] sm:$0xff]  ;;  %v6571_v57 = vld [vmem:[#allocation10 + $0x280] sm:$0xff]  ;;  %v6561_v53 = vld [vmem:[#allocation10 + $0x230] sm:$0xff] }
0x241f   :  { %6518 = vadd.xlane.f32.xlu0 %v6511_v8  ;;  %v6510_v59 = vadd.f32 %v6508_v58, %v9882_v12  ;;  %6724 = vmatpush1.msra.mxu0 %v6609_v5  ;;  %v6573_v58 = vld [vmem:[#allocation10 + $0x290] sm:$0xff]  ;;  %v6559_v4 = vld [vmem:[#allocation10 + $0x220] sm:$0xff]  ;;  %v6556_v2 = vld [vmem:[#allocation10 + $0x208] sm:$0xff] }
0x2420   :  { %6648 = vmatprep.subr.mxu1 %v6604_v10  ;;  %6725 = vmatprep.subr.mxu0 %v6606_v14  ;;  %v6558_v5 = vld [vmem:[#allocation10 + $0x218] sm:$0xff] }
0x2421   :  { %6516 = vadd.xlane.f32.xlu1 %v6510_v59  ;;  %6649 = vmatpush1.msra.mxu1 %v6603_v51 }
0x2422   :  { %6726 = vmatpush1.msra.mxu0 %v6605_v15  ;;  %6650 = vmatprep.subr.mxu1 %v6600_v55 }
0x2423   :  { %6727 = vmatprep.subr.mxu0 %v6602_v16  ;;  %6651 = vmatpush1.msra.mxu1 %v6599_v17 }
0x2424   :  { %6728 = vmatpush1.msra.mxu0 %v6601_v18  ;;  %6652 = vmatprep.subr.mxu1 %v6596_v19  ;;  %v7314_v19 = vld [vmem:[%s10169_s11 + $0x1] ss:$0 sm:$0xff] }
0x2425   :  { %6729 = vmatprep.subr.mxu0 %v6598_v43  ;;  %6653 = vmatpush1.msra.mxu1 %v6595_v21  ;;  %v7315_v21 = vld [vmem:[%s10170_s12 + $0x1] ss:$0 sm:$0xff] }
0x2426   :  { %6730 = vmatpush1.msra.mxu0 %v6597_v22  ;;  %6654 = vmatprep.subr.mxu1 %v6592_v24 }
0x2427   :  { %6731 = vmatprep.subr.mxu0 %v6594_v26  ;;  %6655 = vmatpush1.msra.mxu1 %v6591_v25  ;;  %v6820_v26 = vld [vmem:[#allocation11 + $0x278] sm:$0xff] }
0x2428   :  { %6732 = vmatpush1.msra.mxu0 %v6593_v28  ;;  %6656 = vmatprep.subr.mxu1 %v6588_v32  ;;  %v6852_v25 = vld [vmem:[#allocation11 + $0x378] sm:$0xff]  ;;  %v6819_v32 = vld [vmem:[#allocation11 + $0x270] sm:$0xff] }
0x2429   :  { %6733 = vmatprep.subr.mxu0 %v6590_v33  ;;  %6657 = vmatpush1.msra.mxu1 %v6587_v34  ;;  %v6851_v33 = vld [vmem:[#allocation11 + $0x370] sm:$0xff]  ;;  %v6834_v34 = vld [vmem:[#allocation11 + $0x2e8] sm:$0xff] }
0x242a   :  { %6734 = vmatpush1.msra.mxu0 %v6589_v35  ;;  %6658 = vmatprep.subr.mxu1 %v6584_v36  ;;  %v6866_v35 = vld [vmem:[#allocation11 + $0x3e8] sm:$0xff] }
0x242b   :  { %6735 = vmatprep.subr.mxu0 %v6586_v38  ;;  %6659 = vmatpush1.msra.mxu1 %v6583_v41  ;;  %v6818_v36 = vld [vmem:[#allocation11 + $0x268] sm:$0xff]  ;;  %v6833_v41 = vld [vmem:[#allocation11 + $0x2e0] sm:$0xff] }
0x242c   :  { %6736 = vmatpush1.msra.mxu0 %v6585_v39  ;;  %6660 = vmatprep.subr.mxu1 %v6580_v40  ;;  %v6850_v38 = vld [vmem:[#allocation11 + $0x368] sm:$0xff]  ;;  %v6865_v39 = vld [vmem:[#allocation11 + $0x3e0] sm:$0xff] }
0x242d   :  { %6737 = vmatprep.subr.mxu0 %v6582_v42  ;;  %6661 = vmatpush1.msra.mxu1 %v6579_v44  ;;  %v6817_v40 = vld [vmem:[#allocation11 + $0x260] sm:$0xff]  ;;  %v6832_v44 = vld [vmem:[#allocation11 + $0x2d8] sm:$0xff] }
0x242e   :  { %6738 = vmatpush1.msra.mxu0 %v6581_v47  ;;  %6662 = vmatprep.subr.mxu1 %v6576_v48  ;;  %v6849_v42 = vld [vmem:[#allocation11 + $0x360] sm:$0xff]  ;;  %v6864_v47 = vld [vmem:[#allocation11 + $0x3d8] sm:$0xff] }
0x242f   :  { %6739 = vmatprep.subr.mxu0 %v6578_v60  ;;  %6663 = vmatpush1.msra.mxu1 %v6575_v37  ;;  %v6816_v48 = vld [vmem:[#allocation11 + $0x258] sm:$0xff]  ;;  %v6831_v37 = vld [vmem:[#allocation11 + $0x2d0] sm:$0xff] }
0x2430   :  { %6740 = vmatpush1.msra.mxu0 %v6577_v52  ;;  %6664 = vmatprep.subr.mxu1 %v6572_v54  ;;  %v6848_v60 = vld [vmem:[#allocation11 + $0x358] sm:$0xff]  ;;  %v6863_v52 = vld [vmem:[#allocation11 + $0x3d0] sm:$0xff] }
0x2431   :  { %6741 = vmatprep.subr.mxu0 %v6574_v56  ;;  %6665 = vmatpush1.msra.mxu1 %v6571_v57  ;;  %v6815_v54 = vld [vmem:[#allocation11 + $0x250] sm:$0xff]  ;;  %v6830_v57 = vld [vmem:[#allocation11 + $0x2c8] sm:$0xff] }
0x2432   :  { %6742 = vmatpush1.msra.mxu0 %v6573_v58  ;;  %v6847_v56 = vld [vmem:[#allocation11 + $0x350] sm:$0xff]  ;;  %v6862_v58 = vld [vmem:[#allocation11 + $0x3c8] sm:$0xff] }
0x24a8   :  { %v6519_v12 = vpop.xlane.xlu0 %6518 }
0x24a9   :  { %v6521_v6 = vmul.f32 0.0078125, %v6519_v12  ;;  %v6555_v12 = vld [vmem:[#allocation10 + $0x200] sm:$0xff] }
0x24aa   :  { %v6517_v50 = vpop.xlane.xlu1 %6516 }
0x24ab   :  { %v10076_v7 = vsub.f32 %v6511_v8, %v6521_v6  ;;  %v6520_v31 = vmul.f32 0.0078125, %v6517_v50  ;;  %v6568_v8 = vld [vmem:[#allocation10 + $0x268] sm:$0xff]  ;;  %v6557_v6 = vld [vmem:[#allocation10 + $0x210] sm:$0xff]  ;;  %v6836_v50 = vld [vmem:[#allocation11 + $0x2f8] sm:$0xff] }
0x24ac   :  { %6666 = vmatprep.subr.mxu1 %v6568_v8  ;;  %v6814_v8 = vld [vmem:[#allocation11 + $0x248] sm:$0xff] }
0x24ad   :  { %v10078_v20 = vsub.f32 %v6510_v59, %v6520_v31  ;;  %v6525_v49 = vmul.f32 %v10076_v7, %v10076_v7  ;;  %v6570_v59 = vld [vmem:[#allocation10 + $0x278] sm:$0xff]  ;;  %6667 = vmatpush1.msra.mxu1 %v6567_v45  ;;  %v6829_v45 = vld [vmem:[#allocation11 + $0x2c0] sm:$0xff] }
0x24ae   :  { %6743 = vmatprep.subr.mxu0 %v6570_v59  ;;  %6668 = vmatprep.subr.mxu1 %v6564_v61  ;;  %v6868_v31 = vld [vmem:[#allocation11 + $0x3f8] sm:$0xff]  ;;  %v6846_v59 = vld [vmem:[#allocation11 + $0x348] sm:$0xff]  ;;  %v6813_v61 = vld [vmem:[#allocation11 + $0x240] sm:$0xff] }
0x24af   :  { %6528 = vadd.xlane.f32.xlu0 %v6525_v49  ;;  %v6524_v9 = vmul.f32 %v10078_v20, %v10078_v20  ;;  %6744 = vmatpush1.msra.mxu0 %v6569_v46  ;;  %v6861_v46 = vld [vmem:[#allocation11 + $0x3c0] sm:$0xff] }
0x24b0   :  { %6745 = vmatprep.subr.mxu0 %v6566_v62  ;;  %6669 = vmatpush1.msra.mxu1 %v6563_v63  ;;  %v6845_v62 = vld [vmem:[#allocation11 + $0x340] sm:$0xff]  ;;  %v6828_v63 = vld [vmem:[#allocation11 + $0x2b8] sm:$0xff] }
0x24b1   :  { %6526 = vadd.xlane.f32.xlu1 %v6524_v9  ;;  %6746 = vmatpush1.msra.mxu0 %v6565_v1  ;;  %v6860_v1 = vld [vmem:[#allocation11 + $0x3b8] sm:$0xff] }
0x24b2   :  { %6670 = vmatprep.subr.mxu1 %v6560_v0  ;;  %6747 = vmatprep.subr.mxu0 %v6562_v3  ;;  %v6812_v0 = vld [vmem:[#allocation11 + $0x238] sm:$0xff] }
0x24b3   :  { %6671 = vmatpush1.msra.mxu1 %v6559_v4  ;;  %6748 = vmatpush1.msra.mxu0 %v6561_v53  ;;  %v6844_v3 = vld [vmem:[#allocation11 + $0x338] sm:$0xff]  ;;  %v6827_v4 = vld [vmem:[#allocation11 + $0x2b0] sm:$0xff] }
0x24b4   :  { %6672 = vmatprep.subr.mxu1 %v6556_v2  ;;  %6749 = vmatprep.subr.mxu0 %v6558_v5  ;;  %v6859_v53 = vld [vmem:[#allocation11 + $0x3b0] sm:$0xff] }
0x24b5   :  { %6673 = vmatpush1.msra.mxu1 %v6555_v12  ;;  %6750 = vmatpush1.msra.mxu0 %v6557_v6  ;;  %v6811_v2 = vld [vmem:[#allocation11 + $0x230] sm:$0xff]  ;;  %v6826_v12 = vld [vmem:[#allocation11 + $0x2a8] sm:$0xff] }
0x24b6   :  { %7948 = vmatprep.subr.mxu1 %v6836_v50  ;;  %7986 = vmatprep.subr.mxu0 %v6868_v31  ;;  %v6843_v5 = vld [vmem:[#allocation11 + $0x330] sm:$0xff]  ;;  %v6858_v6 = vld [vmem:[#allocation11 + $0x3a8] sm:$0xff] }
0x24b7   :  { %v6810_v50 = vld [vmem:[#allocation11 + $0x228] sm:$0xff] }
0x24b8   :  { %v6842_v31 = vld [vmem:[#allocation11 + $0x328] sm:$0xff] }
0x2538   :  { %v6529_v49 = vpop.xlane.xlu0 %6528 }
0x2539   :  { %v6531_v9 = vmul.f32 0.0078125, %v6529_v49  ;;  %v6825_v49 = vld [vmem:[#allocation11 + $0x2a0] sm:$0xff] }
0x253a   :  { %v6527_v10 = vpop.xlane.xlu1 %6526 }
0x253b   :  { %v6533_v14 = vadd.f32 1e-05, %v6531_v9  ;;  %v6530_v51 = vmul.f32 0.0078125, %v6527_v10  ;;  %v6857_v9 = vld [vmem:[#allocation11 + $0x3a0] sm:$0xff] }
0x253c   :  { %v6809_v10 = vld [vmem:[#allocation11 + $0x220] sm:$0xff] }
0x253d   :  { %9259 = vrsqrt.f32 %v6533_v14  ;;  %v6532_v15 = vadd.f32 1e-05, %v6530_v51  ;;  %v6841_v14 = vld [vmem:[#allocation11 + $0x320] sm:$0xff]  ;;  %v6824_v51 = vld [vmem:[#allocation11 + $0x298] sm:$0xff] }
0x253f   :  { %9261 = vrsqrt.f32 %v6532_v15  ;;  %v6856_v15 = vld [vmem:[#allocation11 + $0x398] sm:$0xff] }
0x254a   :  { %v9260_v55 = vpop.eup %9259 }
0x254b   :  { %v6537_v18 = vmul.f32 %v9260_v55, %v10076_v7  ;;  %v6867_v7 = vld [vmem:[#allocation11 + $0x3f0] sm:$0xff]  ;;  %v6808_v55 = vld [vmem:[#allocation11 + $0x218] sm:$0xff] }
0x254c   :  { %v9262_v16 = vpop.eup %9261 }
0x254d   :  { %v6536_v17 = vmul.f32 %v9262_v16, %v10078_v20  ;;  %v6545_v24 = vmul.f32 %v7314_v19, %v6537_v18  ;;  %v6835_v20 = vld [vmem:[#allocation11 + $0x2f0] sm:$0xff]  ;;  %v6840_v16 = vld [vmem:[#allocation11 + $0x318] sm:$0xff] }
0x254e   :  { %v6855_v18 = vld [vmem:[#allocation11 + $0x390] sm:$0xff] }
0x254f   :  { %v6544_v43 = vmul.f32 %v7314_v19, %v6536_v17  ;;  %v10098_v28 = vadd.f32 %v7315_v21, %v6545_v24  ;;  %v6823_v17 = vld [vmem:[#allocation11 + $0x290] sm:$0xff]  ;;  %v6854_v24 = vld [vmem:[#allocation11 + $0x388] sm:$0xff] }
0x2550   :  { %v6807_v19 = vld [vmem:[#allocation11 + $0x210] sm:$0xff] }
0x2551   :  { %v10092_v22 = vadd.f32 %v7315_v21, %v6544_v43  ;;  %v6839_v43 = vld [vmem:[#allocation11 + $0x310] sm:$0xff]  ;;  %v6822_v21 = vld [vmem:[#allocation11 + $0x288] sm:$0xff] }
0x2553   :  { %6707 = vmatmul.mubr.f32.vlgmr.msra.gmra.mxu1 %v10092_v22  ;;  %6784 = vmatmul.mubr.f32.vlgmr.msra.gmra.mxu0 %v10092_v22 }
0x2554   :  { %6712 = vmatprep.mubr.f32.mxu1 %v9449_v23  ;;  %6789 = vmatprep.mubr.f32.mxu0 %v9449_v23 }
0x2555   :  { %7949 = vmatpush3.msra.mxu1 %v6820_v26  ;;  %7987 = vmatpush3.msra.mxu0 %v6852_v25  ;;  %v6806_v26 = vld [vmem:[#allocation11 + $0x208] sm:$0xff] }
0x2556   :  { %7950 = vmatprep.subr.mxu1 %v6835_v20  ;;  %7988 = vmatprep.subr.mxu0 %v6867_v7  ;;  %v6838_v25 = vld [vmem:[#allocation11 + $0x308] sm:$0xff]  ;;  %v6821_v20 = vld [vmem:[#allocation11 + $0x280] sm:$0xff] }
0x2557   :  { %6713 = vmatmul.mubr.f32.gmra.mxu1 %v10098_v28  ;;  %6790 = vmatmul.mubr.f32.gmra.mxu0 %v10098_v28  ;;  %v6853_v7 = vld [vmem:[#allocation11 + $0x380] sm:$0xff] }
0x2558   :  { %7951 = vmatpush3.msra.mxu1 %v6819_v32  ;;  %7989 = vmatpush3.msra.mxu0 %v6851_v33  ;;  %v6805_v32 = vld [vmem:[#allocation11 + $0x200] sm:$0xff] }
0x2559   :  { %7952 = vmatprep.subr.mxu1 %v6834_v34  ;;  %7990 = vmatprep.subr.mxu0 %v6866_v35  ;;  %v6837_v33 = vld [vmem:[#allocation11 + $0x300] sm:$0xff] }
0x255a   :  { %7953 = vmatpush3.msra.mxu1 %v6818_v36  ;;  %7991 = vmatpush3.msra.mxu0 %v6850_v38  ;;  %v7316_v34 = vld [vmem:[%s10172_s14 + $0x4] sm:$0xf] }
0x255b   :  { %7954 = vmatprep.subr.mxu1 %v6833_v41  ;;  %7992 = vmatprep.subr.mxu0 %v6865_v39  ;;  %v6625_v35 = vrot.slane %v7316_v34, %v3219_v11  ;;  %v6633_v36 = vrot.slane %v7316_v34, %v3227_v27  ;;  %v6629_v38 = vrot.slane %v7316_v34, %v3223_v29 }
0x255c   :  { %7955 = vmatpush3.msra.mxu1 %v6817_v40  ;;  %7993 = vmatpush3.msra.mxu0 %v6849_v42  ;;  %v6637_v41 = vrot.slane %v7316_v34, %v3231_v30  ;;  %v7079_v34 = vld [vmem:[#allocation13 + $0x40] sm:$0xff] }
0x255d   :  { %7956 = vmatprep.subr.mxu1 %v6832_v44  ;;  %7994 = vmatprep.subr.mxu0 %v6864_v47 }
0x255e   :  { %7957 = vmatpush3.msra.mxu1 %v6816_v48  ;;  %7995 = vmatpush3.msra.mxu0 %v6848_v60 }
0x255f   :  { %7958 = vmatprep.subr.mxu1 %v6831_v37  ;;  %7996 = vmatprep.subr.mxu0 %v6863_v52 }
0x2560   :  { %7959 = vmatpush3.msra.mxu1 %v6815_v54  ;;  %7997 = vmatpush3.msra.mxu0 %v6847_v56 }
0x2561   :  { %7960 = vmatprep.subr.mxu1 %v6830_v57  ;;  %7998 = vmatprep.subr.mxu0 %v6862_v58 }
0x2562   :  { %7961 = vmatpush3.msra.mxu1 %v6814_v8  ;;  %7999 = vmatpush3.msra.mxu0 %v6846_v59 }
0x2563   :  { %7962 = vmatprep.subr.mxu1 %v6829_v45  ;;  %8000 = vmatprep.subr.mxu0 %v6861_v46 }
0x2564   :  { %7963 = vmatpush3.msra.mxu1 %v6813_v61  ;;  %8001 = vmatpush3.msra.mxu0 %v6845_v62 }
0x2565   :  { %7964 = vmatprep.subr.mxu1 %v6828_v63  ;;  %8002 = vmatprep.subr.mxu0 %v6860_v1 }
0x2566   :  { %7965 = vmatpush3.msra.mxu1 %v6812_v0  ;;  %8003 = vmatpush3.msra.mxu0 %v6844_v3  ;;  %v7318_v0 = vld [vmem:[%s10174_s16 + $0x1] ss:$0 sm:$0xff] }
0x2567   :  { %7966 = vmatprep.subr.mxu1 %v6827_v4  ;;  %8004 = vmatprep.subr.mxu0 %v6859_v53 }
0x2568   :  { %7967 = vmatpush3.msra.mxu1 %v6811_v2  ;;  %8005 = vmatpush3.msra.mxu0 %v6843_v5 }
0x2569   :  { %7968 = vmatprep.subr.mxu1 %v6826_v12  ;;  %8006 = vmatprep.subr.mxu0 %v6858_v6 }
0x256a   :  { %7969 = vmatpush3.msra.mxu1 %v6810_v50  ;;  %8007 = vmatpush3.msra.mxu0 %v6842_v31 }
0x256b   :  { %7970 = vmatprep.subr.mxu1 %v6825_v49  ;;  %8008 = vmatprep.subr.mxu0 %v6857_v9 }
0x256c   :  { %7971 = vmatpush3.msra.mxu1 %v6809_v10  ;;  %8009 = vmatpush3.msra.mxu0 %v6841_v14 }
0x256d   :  { %7972 = vmatprep.subr.mxu1 %v6824_v51  ;;  %8010 = vmatprep.subr.mxu0 %v6856_v15 }
0x256e   :  { %7973 = vmatpush3.msra.mxu1 %v6808_v55  ;;  %8011 = vmatpush3.msra.mxu0 %v6840_v16 }
0x256f   :  { %7974 = vmatprep.subr.mxu1 %v6823_v17  ;;  %8012 = vmatprep.subr.mxu0 %v6855_v18 }
0x2570   :  { %7975 = vmatpush3.msra.mxu1 %v6807_v19  ;;  %8013 = vmatpush3.msra.mxu0 %v6839_v43 }
0x2571   :  { %7976 = vmatprep.subr.mxu1 %v6822_v21  ;;  %8014 = vmatprep.subr.mxu0 %v6854_v24 }
0x2572   :  { %7977 = vmatpush3.msra.mxu1 %v6806_v26  ;;  %8015 = vmatpush3.msra.mxu0 %v6838_v25  ;;  %v7086_v26 = vld [vmem:[#allocation13 + $0x78] sm:$0xff]  ;;  %v7084_v25 = vld [vmem:[#allocation13 + $0x68] sm:$0xff] }
0x2573   :  { %7978 = vmatprep.subr.mxu1 %v6821_v20  ;;  %8016 = vmatprep.subr.mxu0 %v6853_v7  ;;  %v7083_v20 = vld [vmem:[#allocation13 + $0x60] sm:$0xff]  ;;  %v7082_v7 = vld [vmem:[#allocation13 + $0x58] sm:$0xff] }
0x2574   :  { %7979 = vmatpush3.msra.mxu1 %v6805_v32  ;;  %8017 = vmatpush3.msra.mxu0 %v6837_v33  ;;  %v7081_v32 = vld [vmem:[#allocation13 + $0x50] sm:$0xff]  ;;  %v7080_v33 = vld [vmem:[#allocation13 + $0x48] sm:$0xff] }
0x2575   :  { %9136 = vmatprep.subr.mxu1 %v9449_v23 }
0x2613   :  { %v6708_v39 = vpop.f32.mrf.mxu1  ;;  %v6785_v40 = vpop.f32.mrf.mxu0 }
0x2614   :  { %v6709_v42 = vadd.f32 %v6708_v39, %v6625_v35  ;;  %v6786_v44 = vadd.f32 %v6785_v40, %v6633_v36  ;;  %v7074_v39 = vld [vmem:[#allocation13 + $0x18] sm:$0xff]  ;;  %v7073_v40 = vld [vmem:[#allocation13 + $0x10] sm:$0xff] }
0x2615   :  { %v6710_v47 = vpop.f32.mrf.mxu1  ;;  %v6787_v48 = vpop.f32.mrf.mxu0 }
0x2616   :  { %v6711_v60 = vadd.f32 %v6710_v47, %v6629_v38  ;;  %v6788_v37 = vadd.f32 %v6787_v48, %v6637_v41  ;;  %v6796_v57 = vmax.f32 %v6709_v42, 0.0  ;;  %v6798_v27 = vmax.f32 %v6786_v44, 0.0  ;;  %v7072_v42 = vld [vmem:[#allocation13 + $0x8] sm:$0xff]  ;;  %v7071_v44 = vld [vmem:[#allocation13] sm:$0xff] }
0x2617   :  { %v6714_v52 = vpop.f32.mrf.mxu1  ;;  %v6791_v54 = vpop.f32.mrf.mxu0 }
0x2618   :  { %v6797_v11 = vmax.f32 %v6711_v60, 0.0  ;;  %v6799_v56 = vmax.f32 %v6788_v37, 0.0  ;;  %v6715_v58 = vadd.f32 %v6714_v52, %v6625_v35  ;;  %v6792_v8 = vadd.f32 %v6791_v54, %v6633_v36  ;;  %v7078_v35 = vld [vmem:[#allocation13 + $0x38] sm:$0xff]  ;;  %v7077_v36 = vld [vmem:[#allocation13 + $0x30] sm:$0xff] }
0x2619   :  { %v6716_v29 = vpop.f32.mrf.mxu1  ;;  %v6793_v59 = vpop.f32.mrf.mxu0 }
0x261a   :  { %v6717_v13 = vadd.f32 %v6716_v29, %v6629_v38  ;;  %v6794_v30 = vadd.f32 %v6793_v59, %v6637_v41  ;;  %6941 = vmatprep.mubr.f32.mxu1 %v6797_v11  ;;  %7016 = vmatprep.mubr.f32.mxu0 %v6799_v56  ;;  %v6800_v61 = vmax.f32 %v6715_v58, 0.0  ;;  %v6802_v62 = vmax.f32 %v6792_v8, 0.0  ;;  %v7076_v38 = vld [vmem:[#allocation13 + $0x28] sm:$0xff]  ;;  %v7075_v41 = vld [vmem:[#allocation13 + $0x20] sm:$0xff] }
0x261b   :  { %6942 = vmatmul.mubr.f32.vlgmr.msra.gmra.mxu1 %v6796_v57  ;;  %7017 = vmatmul.mubr.f32.vlgmr.msra.gmra.mxu0 %v6798_v27  ;;  %v7321_v56 = vld [vmem:[%s10175_s17 + $0x1] ss:$0 sm:$0xff] }
0x261c   :  { %v6801_v45 = vmax.f32 %v6717_v13, 0.0  ;;  %v6803_v46 = vmax.f32 %v6794_v30, 0.0  ;;  %9137 = vmatpush3.msra.mxu1 %v7086_v26 }
0x261d   :  { %9138 = vmatprep.subr.mxu1 %v9449_v23 }
0x261e   :  { %6946 = vmatprep.mubr.f32.mxu1 %v6801_v45  ;;  %7021 = vmatprep.mubr.f32.mxu0 %v6803_v46 }
0x261f   :  { %6947 = vmatmul.mubr.f32.gmra.mxu1 %v6800_v61  ;;  %7022 = vmatmul.mubr.f32.gmra.mxu0 %v6802_v62  ;;  %v7323_v61 = vld [vmem:[%s10178_s20] ss:$0 sm:$0xff] }
0x2620   :  { %9168 = vmatprep.mubr.msk.f32.mxu1 %vm9450_vm3, %v9449_v23 }
0x26db   :  { %v7980_v63 = vpop.f32.mrf.mxu1  ;;  %v8018_v1 = vpop.f32.mrf.mxu0 }
0x26dd   :  { %v7981_v3 = vpop.f32.mrf.mxu1  ;;  %v8019_v4 = vpop.f32.mrf.mxu0 }
0x26de   :  { %v7982_v53 = vadd.f32 %v7981_v3, %v7980_v63  ;;  %v8020_v6 = vadd.f32 %v8019_v4, %v8018_v1 }
0x26df   :  { %v7983_v2 = vpop.f32.mrf.mxu1  ;;  %v8021_v5 = vpop.f32.mrf.mxu0 }
0x26e0   :  { %v6944_v12 = vadd.f32 %v7982_v53, %v7318_v0 }
0x26e1   :  { %v7984_v50 = vpop.f32.mrf.mxu1  ;;  %v8022_v31 = vpop.f32.mrf.mxu0 }
0x26e2   :  { %v7019_v49 = vadd.f32 %v8020_v6, %v6944_v12  ;;  %v7985_v9 = vadd.f32 %v7984_v50, %v7983_v2  ;;  %v8023_v14 = vadd.f32 %v8022_v31, %v8021_v5 }
0x26e4   :  { %v6949_v10 = vadd.f32 %v7985_v9, %v7318_v0  ;;  %v7027_v51 = vadd.f32 %v7019_v49, %v10092_v22 }
0x26e6   :  { %v7024_v15 = vadd.f32 %v8023_v14, %v6949_v10  ;;  %7033 = vadd.xlane.f32.xlu1 %v7027_v51 }
0x26e8   :  { %v7028_v55 = vadd.f32 %v7024_v15, %v10098_v28  ;;  %v7085_v28 = vld [vmem:[#allocation13 + $0x70] sm:$0xff] }
0x26e9   :  { %9139 = vmatpush3.msra.mxu1 %v7085_v28 }
0x26ea   :  { %7035 = vadd.xlane.f32.xlu0 %v7028_v55  ;;  %9140 = vmatprep.subr.mxu1 %v9449_v23 }
0x26eb   :  { %9141 = vmatpush3.msra.mxu1 %v7084_v25 }
0x26ec   :  { %9142 = vmatprep.subr.mxu1 %v9449_v23 }
0x26ed   :  { %9143 = vmatpush3.msra.mxu1 %v7083_v20 }
0x26ee   :  { %9144 = vmatprep.subr.mxu1 %v9449_v23 }
0x26ef   :  { %9145 = vmatpush3.msra.mxu1 %v7082_v7 }
0x26f0   :  { %9146 = vmatprep.subr.mxu1 %v9449_v23 }
0x26f1   :  { %9147 = vmatpush3.msra.mxu1 %v7081_v32 }
0x26f2   :  { %9148 = vmatprep.subr.mxu1 %v9449_v23 }
0x26f3   :  { %9149 = vmatpush3.msra.mxu1 %v7080_v33 }
0x26f4   :  { %9150 = vmatprep.subr.mxu1 %v9449_v23 }
0x26f5   :  { %9151 = vmatpush3.msra.mxu1 %v7079_v34 }
0x26f6   :  { %9152 = vmatprep.subr.mxu1 %v9449_v23 }
0x26f7   :  { %9153 = vmatpush3.msra.mxu1 %v7078_v35 }
0x26f8   :  { %9154 = vmatprep.subr.mxu1 %v9449_v23 }
0x26f9   :  { %9155 = vmatpush3.msra.mxu1 %v7077_v36 }
0x26fa   :  { %9156 = vmatprep.subr.mxu1 %v9449_v23 }
0x26fb   :  { %9157 = vmatpush3.msra.mxu1 %v7076_v38 }
0x26fc   :  { %9158 = vmatprep.subr.mxu1 %v9449_v23 }
0x26fd   :  { %9159 = vmatpush3.msra.mxu1 %v7075_v41 }
0x26fe   :  { %9160 = vmatprep.subr.mxu1 %v9449_v23 }
0x26ff   :  { %9161 = vmatpush3.msra.mxu1 %v7074_v39 }
0x2700   :  { %9162 = vmatprep.subr.mxu1 %v9449_v23 }
0x2701   :  { %9163 = vmatpush3.msra.mxu1 %v7073_v40 }
0x2702   :  { %9164 = vmatprep.subr.mxu1 %v9449_v23 }
0x2703   :  { %9165 = vmatpush3.msra.mxu1 %v7072_v42 }
0x2704   :  { %9166 = vmatprep.subr.mxu1 %v9449_v23  ;;  %v7322_v23 = vld [vmem:[%s10176_s18 + $0x1] ss:$0 sm:$0xff]  ;;  %s9407_s18 = scalar_lea.vmem %s7180_s26, 32 }
0x2705   :  { %9167 = vmatpush3.msra.mxu1 %v7071_v44  ;;  %p9408_p7 = scmp.ne.s32.totalorder %s7180_s26, %s9407_s18  ;;  %p9413_p9 = scmp.lt.s32.totalorder %s9407_s18, %s9407_s18 }
0x2707   :  { %p9414_p10 = por %p9413_p9, %p9412_p8 }
0x2709   :  { %p9415_p11 = pnand %p9414_p10, %p9408_p7 }
0x276f   :  { %v7034_v16 = vpop.xlane.xlu1 %7033 }
0x2770   :  { %v7037_v17 = vmul.f32 0.0078125, %v7034_v16 }
0x2772   :  { %v10121_v18 = vsub.f32 %v7027_v51, %v7037_v17 }
0x2773   :  { %v7036_v19 = vpop.xlane.xlu0 %7035 }
0x2774   :  { %v7038_v43 = vmul.f32 0.0078125, %v7036_v19  ;;  %v7041_v21 = vmul.f32 %v10121_v18, %v10121_v18 }
0x2776   :  { %v10125_v24 = vsub.f32 %v7028_v55, %v7038_v43  ;;  %7043 = vadd.xlane.f32.xlu1 %v7041_v21 }
0x2778   :  { %v7042_v22 = vmul.f32 %v10125_v24, %v10125_v24 }
0x277a   :  { %7045 = vadd.xlane.f32.xlu0 %v7042_v22 }
0x27ff   :  { %v7044_v47 = vpop.xlane.xlu1 %7043 }
0x2800   :  { %v7047_v48 = vmul.f32 0.0078125, %v7044_v47 }
0x2802   :  { %v7049_v60 = vadd.f32 1e-05, %v7047_v48 }
0x2803   :  { %v7046_v37 = vpop.xlane.xlu0 %7045 }
0x2804   :  { %9263 = vrsqrt.f32 %v7049_v60  ;;  %v7048_v52 = vmul.f32 0.0078125, %v7046_v37 }
0x2806   :  { %v7050_v54 = vadd.f32 1e-05, %v7048_v52 }
0x2808   :  { %9265 = vrsqrt.f32 %v7050_v54 }
0x2811   :  { %v9264_v11 = vpop.eup %9263 }
0x2812   :  { %v7053_v57 = vmul.f32 %v9264_v11, %v10121_v18 }
0x2814   :  { %v7061_v27 = vmul.f32 %v7321_v56, %v7053_v57 }
0x2815   :  { %v9266_v58 = vpop.eup %9265 }
0x2816   :  { %v7054_v8 = vmul.f32 %v9266_v58, %v10125_v24  ;;  %v7069_v59 = vadd.f32 %v7322_v23, %v7061_v27 }
0x2818   :  { %v7062_v29 = vmul.f32 %v7321_v56, %v7054_v8  ;;  %v7096_v30 = vrot.slane %v7069_v59, 7 }
0x281a   :  { %v7070_v13 = vadd.f32 %v7322_v23, %v7062_v29 }
0x281c   :  { %v7097_v45 = vrot.slane %v7070_v13, 6 }
0x281e   :  { %v7099_v46 = vsel %vm7098_vm6, %v7097_v45, %v7096_v30 }
0x281f   :  { %9169 = vmatmul.mubr.f32.vlgmr.msra.gmra.mxu1 %v7099_v46 }
0x28df   :  { %v7167_v62 = vpop.f32.mrf.mxu1 }
0x28e0   :  { %v7168_v63 = vadd.f32 %v7323_v61, %v7167_v62 }
0x28e1   :  { %v9170_v1 = vpop.f32.mrf.mxu1 }
0x28e2   :  { %7172 = vst.msk [vmem:[#allocation14] sm:$0x3] %vm7171_vm7, %v7168_v63 }
0x28e3   :  { %9418 = shalt.err (!%p9415_p11)
}
0x28e4   :  { %7182 = dma.vmem_to_hbm [thread:$0]  %s7180_s26, 32, %s10179_s21, [#allocation4]  }
0x28e5   :  { %9435 = dma.done.wait [#allocation4], 32  }
0x28e6   :  { %9436 = vsyncadd [#allocation4], 4294967264 }
0x28e7   :  { %7186 = vsyncpa [#allocation3], 1 }
0x28e8   :  { %7187 = vsyncpa [#allocation6], 1 }
0x28e9   :  { %7188 = vsyncpa [#allocation9], 1 }
0x28ea   :  { %7189 = vsyncpa [#allocation12], 1 }
0x28eb   :  { %7190 = vsyncpa [#allocation4], 1 }

</bundles_post_ra>
